<compile_context>
chip_gen: v7x
topology: tpu7x:2x2x1
jax: 0.10.0
libtpu: 0.0.40
codegen_flags: <defaults>
</compile_context>

<pallas_src>
import functools
import math

import jax
import jax.numpy as jnp
from jax.experimental import pallas as pl
from jax.experimental.pallas import tpu as pltpu


def _round_up(x, m):
    return -(-x // m) * m


def fusion_kernel(h_ref, f_ref, w_ref, o_ref, *, tau, d, ci, mxu_bf16):
    # h_ref, f_ref: (TM, d) natural token-major blocks.
    # w_ref: (d, d*d) with W[k, j*d + i] = layerV[k, i, j] / tau.
    # o_ref: (d, TM) lane-dense output slab.
    h_nat = h_ref[...].astype(jnp.float32)            # h[m, j]
    f_nat = f_ref[...].astype(jnp.float32)            # f[m, i]
    w = w_ref[...].astype(jnp.float32)

    # --- In-kernel transpose to token-on-lanes (d, TM) via identity matmuls
    #     (avoids separate XLA transpose HBM passes; MXU is nearly idle). ---
    rows = jax.lax.broadcasted_iota(jnp.int32, (d, d), 0)
    cols = jax.lax.broadcasted_iota(jnp.int32, (d, d), 1)
    eye = (rows == cols).astype(jnp.float32)
    ddn = (((1,), (1,)), ((), ()))                    # contract minor-with-minor (A @ B.T)
    ht = jax.lax.dot_general(eye, h_nat, ddn,
                             preferred_element_type=jnp.float32)     # (d, TM): ht[j, m]
    tf = jax.lax.dot_general(eye * tau, f_nat, ddn,
                             preferred_element_type=jnp.float32)     # (d, TM): tau*f[m, i]

    # --- Attention outer product (softmax logits), built once, reused as MXU input.
    #     att3[j, i, m] = tau * f[m, i] * h[m, j]
    att3 = ht[:, None, :] * tf[None, :, :]                           # (d_j, d_i, TM)
    att_flat = att3.reshape(d * d, -1)                               # rows = j*d + i

    # --- V from one deep MXU matmul: K = d*d fills the systolic array.
    #     (1/tau pre-folded into w, so v is the true V.) ---
    if mxu_bf16:
        v = jnp.dot(w.astype(jnp.bfloat16), att_flat.astype(jnp.bfloat16),
                    preferred_element_type=jnp.float32)              # (d, TM)
    else:
        v = jnp.dot(w, att_flat, preferred_element_type=jnp.float32)  # (d, TM)
    vb = v[:, None, :]                                               # hoisted broadcast view

    # --- Algebraic softmax max: max_j tf[i,m]*h[j,m] = max(tf*hmax, tf*hmin). ---
    hmax = jnp.max(ht, axis=0, keepdims=True)                        # (1, TM)
    hmin = jnp.min(ht, axis=0, keepdims=True)                        # (1, TM)
    mmax = jnp.maximum(tf * hmax, tf * hmin)                         # (d_i, TM)

    # --- Softmax + weighted sum over j, chunked over i: both reductions fuse
    #     into one pass per chunk; the full (d, d, TM) p tensor never exists. ---
    for c in range(d // ci):
        sl = slice(c * ci, (c + 1) * ci)
        p_c = jnp.exp(att3[:, sl, :] - mmax[None, sl, :])            # (d_j, ci, TM)
        denom_c = jnp.sum(p_c, axis=0)                               # (ci, TM)
        num_c = jnp.sum(p_c * vb, axis=0)                            # (ci, TM)
        o_ref[sl, :] = (num_c * pl.reciprocal(denom_c, approx=True)
                        ).astype(o_ref.dtype)


def fusion_forward(h, f, layerV, tau=0.5, *, tm=512, ci=8, mxu_bf16=False):
    B, N, d = h.shape
    M = B * N
    # Token tile: multiple of 256 (fills the 256-wide MXU N-dim on v6e/v7x),
    # large enough to amortize ~0.35us/grid-step overhead, no larger than the
    # padded problem needs.  (v7x note: for large M this yields >=2 grid steps
    # so both TensorCores are used via dimension_semantics=("parallel",).)
    tm = min(tm, _round_up(M, 256))
    M_pad = _round_up(M, tm)
    ci = math.gcd(ci, d)                     # i-chunk size must divide d

    h2 = h.reshape(M, d)
    f2 = f.reshape(M, d)
    if M_pad != M:
        h2 = jnp.pad(h2, ((0, M_pad - M), (0, 0)))
        f2 = jnp.pad(f2, ((0, M_pad - M), (0, 0)))

    # layerV[k, i, j] -> W[k, j*d + i], with 1/tau folded in (free, tiny array)
    # so the kernel's tau-scaled attention slab yields the un-scaled V.
    w = jnp.transpose(layerV, (0, 2, 1)).reshape(d, d * d) / tau

    cost = pl.CostEstimate(
        flops=int(2 * M_pad * d**3 + 12 * M_pad * d**2),
        transcendentals=int(M_pad * (d * d + d)),
        bytes_accessed=int((3 * M_pad * d + d**3) * 4),
    )

    out_t = pl.pallas_call(
        functools.partial(fusion_kernel, tau=float(tau), d=d, ci=ci,
                          mxu_bf16=mxu_bf16),
        out_shape=jax.ShapeDtypeStruct((d, M_pad), h.dtype),
        grid_spec=pltpu.PrefetchScalarGridSpec(
            num_scalar_prefetch=0,
            grid=(M_pad // tm,),
            in_specs=[
                pl.BlockSpec((tm, d), lambda t: (t, 0)),      # h: natural (tokens, d) block
                pl.BlockSpec((tm, d), lambda t: (t, 0)),      # f: natural (tokens, d) block
                pl.BlockSpec((d, d * d), lambda t: (0, 0)),   # weights, VMEM-resident
            ],
            out_specs=pl.BlockSpec((d, tm), lambda t: (0, t)),  # lane-dense output slab
        ),
        compiler_params=pltpu.CompilerParams(
            dimension_semantics=("parallel",),
            vmem_limit_bytes=32 * 1024 * 1024,
        ),
        cost_estimate=cost,
    )(h2, f2, w)

    # Single output transpose back to the module's (B, N, d) layout.
    # TODO(synk): if the surrounding model keeps activations token-transposed
    # (d, M), this transpose and the input reshape/pad disappear entirely.
    return jnp.transpose(out_t[:, :M]).reshape(B, N, d)


def fusion_ref(h, f, layerV, tau=0.5):
    # Pure-JAX reference mirroring the PyTorch forward.
    V = jnp.einsum("bni,kij,bnj->bnk", f, layerV, h)
    att = f[..., :, None] * h[..., None, :]
    norm = jax.nn.softmax(att * tau, axis=-1)
    return jnp.einsum("bnij,bnj->bni", norm, V)


if __name__ == "__main__":
    key = jax.random.PRNGKey(0)
    B, N, d = 2, 8, 32          # batch, nodes/seq, d_mode
    k1, k2, k3 = jax.random.split(key, 3)
    h = jax.random.normal(k1, (B, N, d), dtype=jnp.float32)
    f = jax.random.normal(k2, (B, N, d), dtype=jnp.float32)
    # Deterministic synthetic init of nn.Parameter(torch.FloatTensor(d, d, d)).
    layerV = jax.random.normal(k3, (d, d, d), dtype=jnp.float32) / d

    out = fusion_forward(h, f, layerV, tau=0.5)
    out = jax.block_until_ready(out)

    ref = fusion_ref(h, f, layerV, tau=0.5)
    assert out.shape == (B, N, d)
    assert jnp.allclose(out, ref, atol=1e-3, rtol=1e-3), "mismatch vs reference"
    print("KERNEL_OK")
</pallas_src>

<mosaic_0001>
module attributes {stable_mosaic.version = 11 : i64} {
  func.func @fusion_kernel(%arg0: i32, %arg1: memref<256x32xf32, #tpu.memory_space<vmem>>, %arg2: memref<256x32xf32, #tpu.memory_space<vmem>>, %arg3: memref<32x1024xf32, #tpu.memory_space<vmem>>, %arg4: memref<32x256xf32, #tpu.memory_space<vmem>>) attributes {dimension_semantics = [#tpu.dimension_semantics<parallel>], iteration_bounds = array<i64: 1>, scalar_prefetch = 0 : i64, scratch_operands = 0 : i64, tpu.core_type = #tpu.core_type<tc>, window_params = [{transform_indices = @transform_0, window_bounds = array<i64: 256, 32>}, {transform_indices = @transform_1, window_bounds = array<i64: 256, 32>}, {pipeline_mode = #tpu.pipeline_mode<synchronous>, transform_indices = @transform_2, window_bounds = array<i64: 32, 1024>}, {transform_indices = @transform_3, window_bounds = array<i64: 32, 256>}]} {
    %c0 = arith.constant 0 : index
    %c0_0 = arith.constant 0 : index
    %0 = vector.load %arg1[%c0, %c0_0] : memref<256x32xf32, #tpu.memory_space<vmem>>, vector<256x32xf32>
    %c0_1 = arith.constant 0 : index
    %c0_2 = arith.constant 0 : index
    %1 = vector.load %arg2[%c0_1, %c0_2] : memref<256x32xf32, #tpu.memory_space<vmem>>, vector<256x32xf32>
    %c0_3 = arith.constant 0 : index
    %c0_4 = arith.constant 0 : index
    %2 = vector.load %arg3[%c0_3, %c0_4] : memref<32x1024xf32, #tpu.memory_space<vmem>>, vector<32x1024xf32>
    %3 = tpu.iota {dimensions = array<i32: 0>} : vector<32x32xi32>
    %4 = tpu.iota {dimensions = array<i32: 1>} : vector<32x32xi32>
    %5 = arith.cmpi eq, %3, %4 : vector<32x32xi32>
    %6 = arith.extui %5 : vector<32x32xi1> to vector<32x32xi32>
    %7 = arith.sitofp %6 : vector<32x32xi32> to vector<32x32xf32>
    %cst = arith.constant dense<0.000000e+00> : vector<32x256xf32>
    %8 = tpu.matmul %7, %0, %cst {dimension_numbers = #tpu.dot_dimension_numbers<[1], [1], [0], [0], [0, 0, 1, 0], [], []>} : vector<32x32xf32>, vector<256x32xf32>, vector<32x256xf32> -> vector<32x256xf32>
    %cst_5 = arith.constant 5.000000e-01 : f32
    %9 = vector.broadcast %cst_5 : f32 to vector<32x32xf32>
    %10 = arith.mulf %7, %9 : vector<32x32xf32>
    %cst_6 = arith.constant dense<0.000000e+00> : vector<32x256xf32>
    %11 = tpu.matmul %10, %1, %cst_6 {dimension_numbers = #tpu.dot_dimension_numbers<[1], [1], [0], [0], [0, 0, 1, 0], [], []>} : vector<32x32xf32>, vector<256x32xf32>, vector<32x256xf32> -> vector<32x256xf32>
    %12 = vector.shape_cast %8 : vector<32x256xf32> to vector<32x1x256xf32>
    %13 = vector.shape_cast %11 : vector<32x256xf32> to vector<1x32x256xf32>
    %14 = vector.broadcast %12 : vector<32x1x256xf32> to vector<32x32x256xf32>
    %15 = vector.broadcast %13 : vector<1x32x256xf32> to vector<32x32x256xf32>
    %16 = arith.mulf %14, %15 : vector<32x32x256xf32>
    %17 = vector.shape_cast %16 : vector<32x32x256xf32> to vector<1024x256xf32>
    %cst_7 = arith.constant dense<0.000000e+00> : vector<32x256xf32>
    %18 = tpu.matmul %2, %17, %cst_7 {dimension_numbers = #tpu.dot_dimension_numbers<[1], [0], [0], [1], [0, 0, 1, 1], [], []>} : vector<32x1024xf32>, vector<1024x256xf32>, vector<32x256xf32> -> vector<32x256xf32>
    %19 = vector.shape_cast %18 : vector<32x256xf32> to vector<32x1x256xf32>
    %cst_8 = arith.constant dense<0xFF800000> : vector<256xf32>
    %20 = vector.multi_reduction <maximumf>, %8, %cst_8 [0] : vector<32x256xf32> to vector<256xf32>
    %21 = vector.shape_cast %20 : vector<256xf32> to vector<1x256xf32>
    %cst_9 = arith.constant dense<0x7F800000> : vector<256xf32>
    %22 = vector.multi_reduction <minimumf>, %8, %cst_9 [0] : vector<32x256xf32> to vector<256xf32>
    %23 = vector.shape_cast %22 : vector<256xf32> to vector<1x256xf32>
    %24 = vector.broadcast %21 : vector<1x256xf32> to vector<32x256xf32>
    %25 = arith.mulf %11, %24 : vector<32x256xf32>
    %26 = vector.broadcast %23 : vector<1x256xf32> to vector<32x256xf32>
    %27 = arith.mulf %11, %26 : vector<32x256xf32>
    %28 = arith.maximumf %25, %27 : vector<32x256xf32>
    %29 = vector.extract_strided_slice %16 {offsets = [0, 0, 0], sizes = [32, 8, 256], strides = [1, 1, 1]} : vector<32x32x256xf32> to vector<32x8x256xf32>
    %30 = vector.extract_strided_slice %28 {offsets = [0, 0], sizes = [8, 256], strides = [1, 1]} : vector<32x256xf32> to vector<8x256xf32>
    %31 = vector.shape_cast %30 : vector<8x256xf32> to vector<1x8x256xf32>
    %32 = vector.broadcast %31 : vector<1x8x256xf32> to vector<32x8x256xf32>
    %33 = arith.subf %29, %32 : vector<32x8x256xf32>
    %34 = math.exp %33 : vector<32x8x256xf32>
    %cst_10 = arith.constant dense<0.000000e+00> : vector<8x256xf32>
    %35 = vector.multi_reduction <add>, %34, %cst_10 [0] : vector<32x8x256xf32> to vector<8x256xf32>
    %36 = vector.broadcast %19 : vector<32x1x256xf32> to vector<32x8x256xf32>
    %37 = arith.mulf %34, %36 : vector<32x8x256xf32>
    %cst_11 = arith.constant dense<0.000000e+00> : vector<8x256xf32>
    %38 = vector.multi_reduction <add>, %37, %cst_11 [0] : vector<32x8x256xf32> to vector<8x256xf32>
    %39 = tpu.reciprocal %35 {approx = true} : vector<8x256xf32> -> vector<8x256xf32>
    %40 = arith.mulf %38, %39 : vector<8x256xf32>
    %c0_12 = arith.constant 0 : index
    %c0_13 = arith.constant 0 : index
    %41 = vector.load %arg4[%c0_12, %c0_13] : memref<32x256xf32, #tpu.memory_space<vmem>>, vector<8x256xf32>
    tpu.vector_store %arg4[%c0_12, %c0_13], %40 {strides = array<i32>} : memref<32x256xf32, #tpu.memory_space<vmem>>, vector<8x256xf32>,
    %42 = vector.extract_strided_slice %16 {offsets = [0, 8, 0], sizes = [32, 8, 256], strides = [1, 1, 1]} : vector<32x32x256xf32> to vector<32x8x256xf32>
    %43 = vector.extract_strided_slice %28 {offsets = [8, 0], sizes = [8, 256], strides = [1, 1]} : vector<32x256xf32> to vector<8x256xf32>
    %44 = vector.shape_cast %43 : vector<8x256xf32> to vector<1x8x256xf32>
    %45 = vector.broadcast %44 : vector<1x8x256xf32> to vector<32x8x256xf32>
    %46 = arith.subf %42, %45 : vector<32x8x256xf32>
    %47 = math.exp %46 : vector<32x8x256xf32>
    %cst_14 = arith.constant dense<0.000000e+00> : vector<8x256xf32>
    %48 = vector.multi_reduction <add>, %47, %cst_14 [0] : vector<32x8x256xf32> to vector<8x256xf32>
    %49 = vector.broadcast %19 : vector<32x1x256xf32> to vector<32x8x256xf32>
    %50 = arith.mulf %47, %49 : vector<32x8x256xf32>
    %cst_15 = arith.constant dense<0.000000e+00> : vector<8x256xf32>
    %51 = vector.multi_reduction <add>, %50, %cst_15 [0] : vector<32x8x256xf32> to vector<8x256xf32>
    %52 = tpu.reciprocal %48 {approx = true} : vector<8x256xf32> -> vector<8x256xf32>
    %53 = arith.mulf %51, %52 : vector<8x256xf32>
    %c8 = arith.constant 8 : index
    %c0_16 = arith.constant 0 : index
    %54 = vector.load %arg4[%c8, %c0_16] : memref<32x256xf32, #tpu.memory_space<vmem>>, vector<8x256xf32>
    tpu.vector_store %arg4[%c8, %c0_16], %53 {strides = array<i32>} : memref<32x256xf32, #tpu.memory_space<vmem>>, vector<8x256xf32>,
    %55 = vector.extract_strided_slice %16 {offsets = [0, 16, 0], sizes = [32, 8, 256], strides = [1, 1, 1]} : vector<32x32x256xf32> to vector<32x8x256xf32>
    %56 = vector.extract_strided_slice %28 {offsets = [16, 0], sizes = [8, 256], strides = [1, 1]} : vector<32x256xf32> to vector<8x256xf32>
    %57 = vector.shape_cast %56 : vector<8x256xf32> to vector<1x8x256xf32>
    %58 = vector.broadcast %57 : vector<1x8x256xf32> to vector<32x8x256xf32>
    %59 = arith.subf %55, %58 : vector<32x8x256xf32>
    %60 = math.exp %59 : vector<32x8x256xf32>
    %cst_17 = arith.constant dense<0.000000e+00> : vector<8x256xf32>
    %61 = vector.multi_reduction <add>, %60, %cst_17 [0] : vector<32x8x256xf32> to vector<8x256xf32>
    %62 = vector.broadcast %19 : vector<32x1x256xf32> to vector<32x8x256xf32>
    %63 = arith.mulf %60, %62 : vector<32x8x256xf32>
    %cst_18 = arith.constant dense<0.000000e+00> : vector<8x256xf32>
    %64 = vector.multi_reduction <add>, %63, %cst_18 [0] : vector<32x8x256xf32> to vector<8x256xf32>
    %65 = tpu.reciprocal %61 {approx = true} : vector<8x256xf32> -> vector<8x256xf32>
    %66 = arith.mulf %64, %65 : vector<8x256xf32>
    %c16 = arith.constant 16 : index
    %c0_19 = arith.constant 0 : index
    %67 = vector.load %arg4[%c16, %c0_19] : memref<32x256xf32, #tpu.memory_space<vmem>>, vector<8x256xf32>
    tpu.vector_store %arg4[%c16, %c0_19], %66 {strides = array<i32>} : memref<32x256xf32, #tpu.memory_space<vmem>>, vector<8x256xf32>,
    %68 = vector.extract_strided_slice %16 {offsets = [0, 24, 0], sizes = [32, 8, 256], strides = [1, 1, 1]} : vector<32x32x256xf32> to vector<32x8x256xf32>
    %69 = vector.extract_strided_slice %28 {offsets = [24, 0], sizes = [8, 256], strides = [1, 1]} : vector<32x256xf32> to vector<8x256xf32>
    %70 = vector.shape_cast %69 : vector<8x256xf32> to vector<1x8x256xf32>
    %71 = vector.broadcast %70 : vector<1x8x256xf32> to vector<32x8x256xf32>
    %72 = arith.subf %68, %71 : vector<32x8x256xf32>
    %73 = math.exp %72 : vector<32x8x256xf32>
    %cst_20 = arith.constant dense<0.000000e+00> : vector<8x256xf32>
    %74 = vector.multi_reduction <add>, %73, %cst_20 [0] : vector<32x8x256xf32> to vector<8x256xf32>
    %75 = vector.broadcast %19 : vector<32x1x256xf32> to vector<32x8x256xf32>
    %76 = arith.mulf %73, %75 : vector<32x8x256xf32>
    %cst_21 = arith.constant dense<0.000000e+00> : vector<8x256xf32>
    %77 = vector.multi_reduction <add>, %76, %cst_21 [0] : vector<32x8x256xf32> to vector<8x256xf32>
    %78 = tpu.reciprocal %74 {approx = true} : vector<8x256xf32> -> vector<8x256xf32>
    %79 = arith.mulf %77, %78 : vector<8x256xf32>
    %c24 = arith.constant 24 : index
    %c0_22 = arith.constant 0 : index
    %80 = vector.load %arg4[%c24, %c0_22] : memref<32x256xf32, #tpu.memory_space<vmem>>, vector<8x256xf32>
    tpu.vector_store %arg4[%c24, %c0_22], %79 {strides = array<i32>} : memref<32x256xf32, #tpu.memory_space<vmem>>, vector<8x256xf32>,
    return
  }
  func.func @transform_0(%arg0: i32) -> (i32, i32) {
    %c0_i32 = arith.constant 0 : i32
    %c0_i32_0 = arith.constant 0 : i32
    return %arg0, %c0_i32 : i32, i32
  }
  func.func @transform_1(%arg0: i32) -> (i32, i32) {
    %c0_i32 = arith.constant 0 : i32
    %c0_i32_0 = arith.constant 0 : i32
    return %arg0, %c0_i32 : i32, i32
  }
  func.func @transform_2(%arg0: i32) -> (i32, i32) {
    %c0_i32 = arith.constant 0 : i32
    %c0_i32_0 = arith.constant 0 : i32
    %c0_i32_1 = arith.constant 0 : i32
    return %c0_i32, %c0_i32_0 : i32, i32
  }
  func.func @transform_3(%arg0: i32) -> (i32, i32) {
    %c0_i32 = arith.constant 0 : i32
    %c0_i32_0 = arith.constant 0 : i32
    return %c0_i32, %arg0 : i32, i32
  }
}

</mosaic_0001>

<bundles_post_ra>
// kernel: tpu_custom_call.1
= control target key start
LH: loop header
LB: loop body
LE: loop exit
PB: predicated region body
PF: predicated region fallthrough
CT: control target
= control target key end

     0   :  { %vm130_vm0 = vcmask 261120   ;;  %v111_v3 = vlaneseq  ;;  %v4906_v15 = vmov 0.0   ;;  %s8489_s0 = inlined_call_operand.vmem [shape: f32[256,32], index: 0, kind: input, shape index: {}]   ;;  %s8490_s1 = inlined_call_operand.vmem [shape: f32[256,32], index: 1, kind: input, shape index: {}]   ;;  %s8491_s2 = inlined_call_operand.vmem [shape: f32[32,1024], index: 2, kind: input, shape index: {}]   ;;  %s8492_s3 = inlined_call_operand.hbm [shape: f32[32,256], index: 3, kind: output, shape index: {}]  }
   0x1   :  { %v31_v0 = vld [vmem:[%s8489_s0 + $0x80] sm:$0xff]  ;;  %v32_v1 = vld [vmem:[%s8489_s0 + $0x88] sm:$0xff]  ;;  %vm4942_vm1 = vmpackc.low %vm130_vm0, %vm130_vm0 }
   0x2   :  { %v15_v2 = vld [vmem:[%s8489_s0] sm:$0xff]  ;;  %v3973_v4 = vpack.c.bf16 %v32_v1, %v31_v0  ;;  %v16_v6 = vld [vmem:[%s8489_s0 + $0x8] sm:$0xff]  ;;  %v33_v7 = vld [vmem:[%s8489_s0 + $0x90] sm:$0xff]  ;;  %v4955_v10 = vshrl.u32 %v111_v3, 7  ;;  %v4957_v11 = vand.u32 127, %v111_v3 }
   0x3   :  { %v3976_v8 = vpack.c.bf16 %v16_v6, %v15_v2  ;;  %v34_v9 = vld [vmem:[%s8489_s0 + $0x98] sm:$0xff]  ;;  %v17_v13 = vld [vmem:[%s8489_s0 + $0x10] sm:$0xff]  ;;  %v35_v17 = vld [vmem:[%s8489_s0 + $0xa0] sm:$0xff] }
   0x4   :  { %3975 = vmatprep.subr.msk.bf16.mxu1 %vm4942_vm1, %v3973_v4  ;;  %v3979_v12 = vpack.c.bf16 %v34_v9, %v33_v7  ;;  %vm118_vm2 = vcmp.eq.s32.totalorder %v4955_v10, %v4957_v11  ;;  %v18_v14 = vld [vmem:[%s8489_s0 + $0x18] sm:$0xff]  ;;  %v36_v18 = vld [vmem:[%s8489_s0 + $0xa8] sm:$0xff]  ;;  %v114_v19 = vadd.s32 16, %v4955_v10  ;;  %v115_v20 = vadd.s32 24, %v4955_v10  ;;  %v19_v25 = vld [vmem:[%s8489_s0 + $0x20] sm:$0xff] }
   0x5   :  { %3978 = vmatpush3.bf16.xpose.msk.msra.mxu1 %vm4942_vm1, %v3976_v8  ;;  %v4974_v16 = vsel %vm118_vm2, 1.0, %v4906_v15  ;;  %v3982_v21 = vpack.c.bf16 %v18_v14, %v17_v13  ;;  %v3985_v22 = vpack.c.bf16 %v36_v18, %v35_v17  ;;  %v20_v26 = vld [vmem:[%s8489_s0 + $0x28] sm:$0xff]  ;;  %v37_v27 = vld [vmem:[%s8489_s0 + $0xb0] sm:$0xff]  ;;  %v38_v28 = vld [vmem:[%s8489_s0 + $0xb8] sm:$0xff] }
   0x6   :  { %3981 = vmatprep.subr.msk.bf16.mxu1 %vm4942_vm1, %v3979_v12  ;;  %3925 = vmatprep.mubr.msk.f32.mxu1 %vm130_vm0, %v4974_v16  ;;  %vm120_vm3 = vcmp.eq.s32.totalorder %v114_v19, %v4957_v11  ;;  %vm121_vm4 = vcmp.eq.s32.totalorder %v115_v20, %v4957_v11  ;;  %v3988_v29 = vpack.c.bf16 %v20_v26, %v19_v25  ;;  %v21_v31 = vld [vmem:[%s8489_s0 + $0x30] sm:$0xff]  ;;  %v22_v32 = vld [vmem:[%s8489_s0 + $0x38] sm:$0xff] }
   0x7   :  { %v4988_v23 = vsel %vm120_vm3, 1.0, %v4906_v15  ;;  %v4992_v24 = vsel %vm121_vm4, 1.0, %v4906_v15  ;;  %v3991_v30 = vpack.c.bf16 %v38_v28, %v37_v27 }
   0xd   :  { %3984 = vmatpush3.bf16.xpose.msk.msra.mxu1 %vm4942_vm1, %v3982_v21 }
   0xe   :  { %3987 = vmatprep.subr.msk.bf16.mxu1 %vm4942_vm1, %v3985_v22 }
  0x15   :  { %3990 = vmatpush3.bf16.xpose.msk.msra.mxu1 %vm4942_vm1, %v3988_v29 }
  0x16   :  { %3993 = vmatprep.subr.msk.bf16.mxu1 %vm4942_vm1, %v3991_v30 }
  0x17   :  { %8 = vsyncpa [#allocation3], 0  ;;  %v39_v33 = vld [vmem:[%s8489_s0 + $0xc0] sm:$0xff]  ;;  %v40_v34 = vld [vmem:[%s8489_s0 + $0xc8] sm:$0xff]  ;;  %v3994_v35 = vpack.c.bf16 %v22_v32, %v21_v31  ;;  %v113_v61 = vadd.s32 8, %v4955_v10  ;;  %v328_v13 = vmul.f32 0.5, %v4974_v16 }
  0x18   :  { %v3997_v36 = vpack.c.bf16 %v40_v34, %v39_v33  ;;  %v23_v37 = vld [vmem:[%s8489_s0 + $0x40] sm:$0xff]  ;;  %v24_v38 = vld [vmem:[%s8489_s0 + $0x48] sm:$0xff]  ;;  %v41_v39 = vld [vmem:[%s8489_s0 + $0xd0] sm:$0xff] }
  0x19   :  { %v42_v40 = vld [vmem:[%s8489_s0 + $0xd8] sm:$0xff]  ;;  %v4000_v41 = vpack.c.bf16 %v24_v38, %v23_v37  ;;  %v25_v43 = vld [vmem:[%s8489_s0 + $0x50] sm:$0xff]  ;;  %v43_v45 = vld [vmem:[%s8489_s0 + $0xe0] sm:$0xff]  ;;  %vm119_vm5 = vcmp.eq.s32.totalorder %v113_v61, %v4957_v11 }
  0x1a   :  { %v4003_v42 = vpack.c.bf16 %v42_v40, %v41_v39  ;;  %v26_v44 = vld [vmem:[%s8489_s0 + $0x58] sm:$0xff]  ;;  %v44_v46 = vld [vmem:[%s8489_s0 + $0xe8] sm:$0xff]  ;;  %v27_v49 = vld [vmem:[%s8489_s0 + $0x60] sm:$0xff]  ;;  %v5109_v3 = vsel %vm119_vm5, 1.0, %v4906_v15 }
  0x1b   :  { %v4006_v47 = vpack.c.bf16 %v26_v44, %v25_v43  ;;  %v4009_v48 = vpack.c.bf16 %v44_v46, %v43_v45  ;;  %v28_v50 = vld [vmem:[%s8489_s0 + $0x68] sm:$0xff]  ;;  %v45_v51 = vld [vmem:[%s8489_s0 + $0xf0] sm:$0xff]  ;;  %v46_v52 = vld [vmem:[%s8489_s0 + $0xf8] sm:$0xff] }
  0x1c   :  { %v4012_v53 = vpack.c.bf16 %v28_v50, %v27_v49  ;;  %v4015_v54 = vpack.c.bf16 %v46_v52, %v45_v51  ;;  %v29_v55 = vld [vmem:[%s8489_s0 + $0x70] sm:$0xff]  ;;  %v30_v56 = vld [vmem:[%s8489_s0 + $0x78] sm:$0xff]  ;;  %v63_v57 = vld [vmem:[%s8490_s1 + $0x80] sm:$0xff]  ;;  %v329_v49 = vmul.f32 0.5, %v5109_v3  ;;  %v330_v50 = vmul.f32 0.5, %v4988_v23 }
  0x1d   :  { %3996 = vmatpush3.bf16.xpose.msk.msra.mxu1 %vm4942_vm1, %v3994_v35  ;;  %v64_v58 = vld [vmem:[%s8490_s1 + $0x88] sm:$0xff]  ;;  %v4018_v59 = vpack.c.bf16 %v30_v56, %v29_v55  ;;  %v47_v62 = vld [vmem:[%s8490_s1] sm:$0xff]  ;;  %v65_v0 = vld [vmem:[%s8490_s1 + $0x90] sm:$0xff]  ;;  %v331_v51 = vmul.f32 0.5, %v4992_v24 }
  0x1e   :  { %3999 = vmatprep.subr.msk.bf16.mxu1 %vm4942_vm1, %v3997_v36  ;;  %v4021_v60 = vpack.c.bf16 %v64_v58, %v63_v57  ;;  %v48_v63 = vld [vmem:[%s8490_s1 + $0x8] sm:$0xff]  ;;  %v66_v1 = vld [vmem:[%s8490_s1 + $0x98] sm:$0xff]  ;;  %v49_v6 = vld [vmem:[%s8490_s1 + $0x10] sm:$0xff] }
  0x1f   :  { %v4024_v2 = vpack.c.bf16 %v48_v63, %v47_v62  ;;  %v4027_v4 = vpack.c.bf16 %v66_v1, %v65_v0  ;;  %v50_v7 = vld [vmem:[%s8490_s1 + $0x18] sm:$0xff]  ;;  %v67_v8 = vld [vmem:[%s8490_s1 + $0xa0] sm:$0xff]  ;;  %v68_v9 = vld [vmem:[%s8490_s1 + $0xa8] sm:$0xff] }
  0x20   :  { %v4030_v11 = vpack.c.bf16 %v50_v7, %v49_v6  ;;  %v4033_v12 = vpack.c.bf16 %v68_v9, %v67_v8  ;;  %v51_v14 = vld [vmem:[%s8490_s1 + $0x20] sm:$0xff]  ;;  %v52_v15 = vld [vmem:[%s8490_s1 + $0x28] sm:$0xff]  ;;  %v70_v17 = vld [vmem:[%s8490_s1 + $0xb8] sm:$0xff]  ;;  %v4907_v8 = vmov 1966171168  }
  0x21   :  { %v4036_v18 = vpack.c.bf16 %v52_v15, %v51_v14  ;;  %v53_v20 = vld [vmem:[%s8490_s1 + $0x30] sm:$0xff]  ;;  %v54_v21 = vld [vmem:[%s8490_s1 + $0x38] sm:$0xff]  ;;  %v71_v22 = vld [vmem:[%s8490_s1 + $0xc0] sm:$0xff]  ;;  %v540_v9 = vunpack.c.l.s4 %v4907_v8 }
  0x22   :  { %v72_v25 = vld [vmem:[%s8490_s1 + $0xc8] sm:$0xff]  ;;  %v4042_v26 = vpack.c.bf16 %v54_v21, %v53_v20  ;;  %v55_v28 = vld [vmem:[%s8490_s1 + $0x40] sm:$0xff]  ;;  %v73_v30 = vld [vmem:[%s8490_s1 + $0xd0] sm:$0xff] }
  0x23   :  { %v4045_v27 = vpack.c.bf16 %v72_v25, %v71_v22  ;;  %v56_v29 = vld [vmem:[%s8490_s1 + $0x48] sm:$0xff]  ;;  %v74_v31 = vld [vmem:[%s8490_s1 + $0xd8] sm:$0xff]  ;;  %v57_v34 = vld [vmem:[%s8490_s1 + $0x50] sm:$0xff] }
  0x24   :  { %v4048_v32 = vpack.c.bf16 %v56_v29, %v55_v28  ;;  %v4051_v33 = vpack.c.bf16 %v74_v31, %v73_v30  ;;  %v58_v35 = vld [vmem:[%s8490_s1 + $0x58] sm:$0xff]  ;;  %v75_v36 = vld [vmem:[%s8490_s1 + $0xe0] sm:$0xff]  ;;  %v76_v37 = vld [vmem:[%s8490_s1 + $0xe8] sm:$0xff] }
  0x25   :  { %4002 = vmatpush3.bf16.xpose.msk.msra.mxu1 %vm4942_vm1, %v4000_v41  ;;  %v4054_v38 = vpack.c.bf16 %v58_v35, %v57_v34  ;;  %v4057_v39 = vpack.c.bf16 %v76_v37, %v75_v36  ;;  %v59_v40 = vld [vmem:[%s8490_s1 + $0x60] sm:$0xff]  ;;  %v60_v41 = vld [vmem:[%s8490_s1 + $0x68] sm:$0xff]  ;;  %v78_v43 = vld [vmem:[%s8490_s1 + $0xf8] sm:$0xff]  ;;  %v5276_v36 = vsub.s32 1, %v4955_v10 }
  0x26   :  { %4005 = vmatprep.subr.msk.bf16.mxu1 %vm4942_vm1, %v4003_v42  ;;  %v77_v42 = vld [vmem:[%s8490_s1 + $0xf0] sm:$0xff]  ;;  %v4060_v44 = vpack.c.bf16 %v60_v41, %v59_v40 }
  0x27   :  { %v4063_v45 = vpack.c.bf16 %v78_v43, %v77_v42  ;;  %v61_v46 = vld [vmem:[%s8490_s1 + $0x70] sm:$0xff]  ;;  %8798 = vst [vmem:[#allocation7_spill] sm:$0xff] %v5276_v36 }
  0x2d   :  { %4008 = vmatpush3.bf16.xpose.msk.msra.mxu1 %vm4942_vm1, %v4006_v47  ;;  %v62_v47 = vld [vmem:[%s8490_s1 + $0x78] sm:$0xff] }
  0x2e   :  { %4011 = vmatprep.subr.msk.bf16.mxu1 %vm4942_vm1, %v4009_v48  ;;  %v4066_v48 = vpack.c.bf16 %v62_v47, %v61_v46 }
  0x35   :  { %4014 = vmatpush3.bf16.xpose.msk.msra.mxu1 %vm4942_vm1, %v4012_v53 }
  0x36   :  { %4017 = vmatprep.subr.msk.bf16.mxu1 %vm4942_vm1, %v4015_v54 }
  0x3d   :  { %4020 = vmatpush3.bf16.xpose.msk.msra.mxu1 %vm4942_vm1, %v4018_v59 }
  0x3e   :  { %4023 = vmatprep.subr.msk.bf16.mxu1 %vm4942_vm1, %v4021_v60 }
  0x44   :  { %3926 = vmatmul.mubr.msk.f32.vlgmr.msra.gmra.mrb[0].mxu1 %vm130_vm0, %v4974_v16  ;;  %v69_v16 = vld [vmem:[%s8490_s1 + $0xb0] sm:$0xff] }
  0x45   :  { %4026 = vmatpush3.bf16.xpose.msk.msra.mxu1 %vm4942_vm1, %v4024_v2  ;;  %3927 = vmatprep.mubr.msk.f32.mxu1 %vm130_vm0, %v5109_v3  ;;  %v4039_v19 = vpack.c.bf16 %v70_v17, %v69_v16 }
  0x46   :  { %4029 = vmatprep.subr.msk.bf16.mxu1 %vm4942_vm1, %v4027_v4 }
  0x48   :  { %3928 = vmatmul.mubr.msk.f32.gmra.mrb[2].mxu1 %vm130_vm0, %v5109_v3 }
  0x49   :  { %3929 = vmatprep.mubr.msk.f32.mxu1 %vm130_vm0, %v4988_v23 }
  0x4c   :  { %3930 = vmatmul.mubr.msk.f32.gmra.mrb[4].mxu1 %vm130_vm0, %v4988_v23 }
  0x4d   :  { %4032 = vmatpush3.bf16.xpose.msk.msra.mxu1 %vm4942_vm1, %v4030_v11  ;;  %3931 = vmatprep.mubr.msk.f32.mxu1 %vm130_vm0, %v4992_v24 }
  0x4e   :  { %4035 = vmatprep.subr.msk.bf16.mxu1 %vm4942_vm1, %v4033_v12 }
  0x50   :  { %3932 = vmatmul.mubr.msk.f32.gmra.mrb[6].mxu1 %vm130_vm0, %v4992_v24 }
  0x51   :  { %3965 = vmatprep.mubr.msk.f32.mxu1 %vm130_vm0, %v328_v13 }
  0x55   :  { %4038 = vmatpush3.bf16.xpose.msk.msra.mxu1 %vm4942_vm1, %v4036_v18 }
  0x56   :  { %4041 = vmatprep.subr.msk.bf16.mxu1 %vm4942_vm1, %v4039_v19 }
  0x5d   :  { %4044 = vmatpush3.bf16.xpose.msk.msra.mxu1 %vm4942_vm1, %v4042_v26 }
  0x5e   :  { %4047 = vmatprep.subr.msk.bf16.mxu1 %vm4942_vm1, %v4045_v27  ;;  %v5257_v27 = vsub.s32 0, %v4955_v10 }
  0x60   :  { %8797 = vst [vmem:[#allocation6_spill] sm:$0xff] %v5257_v27 }
  0x65   :  { %4050 = vmatpush3.bf16.xpose.msk.msra.mxu1 %vm4942_vm1, %v4048_v32 }
  0x66   :  { %4053 = vmatprep.subr.msk.bf16.mxu1 %vm4942_vm1, %v4051_v33 }
  0x6d   :  { %4056 = vmatpush3.bf16.xpose.msk.msra.mxu1 %vm4942_vm1, %v4054_v38 }
  0x6e   :  { %4059 = vmatprep.subr.msk.bf16.mxu1 %vm4942_vm1, %v4057_v39 }
  0x75   :  { %4062 = vmatpush3.bf16.xpose.msk.msra.mxu1 %vm4942_vm1, %v4060_v44 }
  0x76   :  { %4065 = vmatprep.subr.msk.bf16.mxu1 %vm4942_vm1, %v4063_v45 }
  0x7d   :  { %4068 = vmatpush3.bf16.xpose.msk.msra.mxu1 %vm4942_vm1, %v4066_v48 }
  0x84   :  { %3966 = vmatmul.mubr.msk.f32.vlgmr.msra.gmra.mrb[8].mxu1 %vm130_vm0, %v328_v13  ;;  %v541_v13 = vunpack.c.0.s8 %v540_v9 }
  0x85   :  { %3967 = vmatprep.mubr.msk.f32.mxu1 %vm130_vm0, %v329_v49 }
  0x86   :  { %v5246_v16 = vsub.s32 %v541_v13, %v4955_v10 }
  0x88   :  { %3968 = vmatmul.mubr.msk.f32.gmra.mrb[10].mxu1 %vm130_vm0, %v329_v49  ;;  %8796 = vst [vmem:[#allocation5_spill] sm:$0xff] %v5246_v16 }
  0x89   :  { %3969 = vmatprep.mubr.msk.f32.mxu1 %vm130_vm0, %v330_v50 }
  0x8c   :  { %3970 = vmatmul.mubr.msk.f32.gmra.mrb[12].mxu1 %vm130_vm0, %v330_v50 }
  0x8d   :  { %3971 = vmatprep.mubr.msk.f32.mxu1 %vm130_vm0, %v331_v51 }
  0x90   :  { %3972 = vmatmul.mubr.msk.f32.gmra.mrb[14].mxu1 %vm130_vm0, %v331_v51 }
 0x117   :  { %v305_v5 = vpop.f32.mrb[0].mxu1 }
 0x118   :  { %v307_v52 = vpop.f32.mrb[1].mxu1 }
 0x119   :  { %v537_v53 = vcombine.low %v305_v5, %v307_v52  ;;  %v538_v54 = vcombine.high %v305_v5, %v307_v52 }
 0x11b   :  { %v311_v55 = vpop.f32.mrb[2].mxu1  ;;  %v545_v19 = vrot.slane %v537_v53, %v5246_v16  ;;  %v552_v20 = vrot.slane %v538_v54, %v5246_v16 }
 0x11c   :  { %v313_v23 = vpop.f32.mrb[3].mxu1 }
 0x11d   :  { %v587_v56 = vcombine.low %v311_v55, %v313_v23  ;;  %v588_v57 = vcombine.high %v311_v55, %v313_v23  ;;  %v553_v21 = vcombine.high %v545_v19, %v545_v19  ;;  %v5251_v22 = vrot.slane %v545_v19, %v5246_v16 }
 0x11e   :  { %v554_v25 = vcombine.high %v552_v20, %v552_v20  ;;  %v5254_v26 = vrot.slane %v552_v20, %v5246_v16 }
 0x11f   :  { %v317_v58 = vpop.f32.mrb[4].mxu1  ;;  %v5260_v28 = vrot.slane %v553_v21, %v5246_v16  ;;  %v5264_v29 = vcombine.high %v5251_v22, %v5251_v22  ;;  %v595_v33 = vrot.slane %v587_v56, %v5246_v16  ;;  %v602_v34 = vrot.slane %v588_v57, %v5246_v16 }
 0x120   :  { %v319_v59 = vpop.f32.mrb[5].mxu1  ;;  %v1877_v60 = vmax.f32 %v305_v5, %v317_v58  ;;  %v1895_v24 = vmin.f32 %v305_v5, %v317_v58  ;;  %v5267_v32 = vrot.slane %v554_v25, %v5246_v16  ;;  %v5273_v35 = vcombine.high %v5254_v26, %v5254_v26 }
 0x121   :  { %v637_v61 = vcombine.low %v317_v58, %v319_v59  ;;  %v638_v62 = vcombine.high %v317_v58, %v319_v59  ;;  %v1886_v1 = vmax.f32 %v307_v52, %v319_v59  ;;  %v1904_v2 = vmin.f32 %v307_v52, %v319_v59 }
 0x122   :  { %v5280_v37 = vrot.slane %v5251_v22, %v5257_v27  ;;  %v5284_v38 = vrot.slane %v5260_v28, %v5257_v27  ;;  %v5288_v39 = vrot.slane %v5254_v26, %v5257_v27  ;;  %v5292_v40 = vrot.slane %v5264_v29, %v5257_v27 }
 0x123   :  { %v323_v63 = vpop.f32.mrb[6].mxu1  ;;  %v645_v41 = vrot.slane %v637_v61, %v5246_v16  ;;  %v5297_v43 = vrot.slane %v5267_v32, %v5257_v27  ;;  %v603_v44 = vcombine.high %v595_v33, %v595_v33  ;;  %v604_v45 = vcombine.high %v602_v34, %v602_v34 }
 0x124   :  { %v325_v0 = vpop.f32.mrb[7].mxu1  ;;  %v1878_v3 = vmax.f32 %v311_v55, %v323_v63  ;;  %v1896_v4 = vmin.f32 %v311_v55, %v323_v63  ;;  %v652_v46 = vrot.slane %v638_v62, %v5246_v16  ;;  %v5302_v47 = vrot.slane %v5273_v35, %v5257_v27 }
 0x125   :  { %v687_v6 = vcombine.low %v323_v63, %v325_v0  ;;  %v688_v7 = vcombine.high %v323_v63, %v325_v0  ;;  %v1887_v14 = vmax.f32 %v313_v23, %v325_v0  ;;  %v1905_v15 = vmin.f32 %v313_v23, %v325_v0 }
 0x126   :  { %v1879_v11 = vmax.f32 %v1877_v60, %v1878_v3  ;;  %v1897_v12 = vmin.f32 %v1895_v24, %v1896_v4  ;;  %8799 = vst [vmem:[#allocation8_spill] sm:$0xff] %v5302_v47  ;;  %v611_v48 = vrot.slane %v595_v33, %v5246_v16  ;;  %v5306_v51 = vrot.slane %v602_v34, %v5246_v16 }
 0x127   :  { %v1888_v17 = vmax.f32 %v1886_v1, %v1887_v14  ;;  %v1906_v18 = vmin.f32 %v1904_v2, %v1905_v15  ;;  %v5309_v5 = vrot.slane %v645_v41, %v5246_v16  ;;  %v695_v52 = vrot.slane %v687_v6, %v5246_v16 }
 0x128   :  { %v1880_v30 = vrot.slane %v1879_v11, 4  ;;  %v1898_v31 = vrot.slane %v1897_v12, 4  ;;  %v702_v53 = vrot.slane %v688_v7, %v5246_v16  ;;  %v653_v54 = vcombine.high %v645_v41, %v645_v41 }
 0x129   :  { %v1889_v49 = vrot.slane %v1888_v17, 4  ;;  %v1907_v50 = vrot.slane %v1906_v18, 4  ;;  %8800 = vst [vmem:[#allocation9_spill] sm:$0xff] %v5309_v5  ;;  %v5314_v55 = vrot.slane %v652_v46, %v5246_v16  ;;  %v625_v57 = vrot.slane %v603_v44, %v5246_v16 }
 0x12a   :  { %v1881_v10 = vmax.f32 %v1879_v11, %v1880_v30  ;;  %v1899_v42 = vmin.f32 %v1897_v12, %v1898_v31  ;;  %v5318_v58 = vrot.slane %v604_v45, %v5246_v16  ;;  %v654_v59 = vcombine.high %v652_v46, %v652_v46 }
 0x12b   :  { %8801 = vst [vmem:[#allocation10_spill] sm:$0xff] %v5314_v55  ;;  %v5321_v60 = vrot.slane %v695_v52, %v5246_v16  ;;  %v633_v24 = vcombine.high %v611_v48, %v611_v48  ;;  %v5324_v61 = vrot.slane %v702_v53, %v5246_v16  ;;  %v1890_v62 = vmax.f32 %v1888_v17, %v1889_v49 }
 0x12c   :  { %v1882_v23 = vrot.slane %v1881_v10, 2  ;;  %v1900_v56 = vrot.slane %v1899_v42, 2  ;;  %8802 = vst [vmem:[#allocation11_spill] sm:$0xff] %v5318_v58  ;;  %v1908_v63 = vmin.f32 %v1906_v18, %v1907_v50  ;;  %v5328_v0 = vcombine.high %v5306_v51, %v5306_v51 }
 0x12d   :  { %8803 = vst [vmem:[#allocation12_spill] sm:$0xff] %v5321_v60  ;;  %8804 = vst [vmem:[#allocation13_spill] sm:$0xff] %v5324_v61  ;;  %v5332_v1 = vcombine.high %v5309_v5, %v5309_v5  ;;  %v703_v2 = vcombine.high %v695_v52, %v695_v52  ;;  %v704_v3 = vcombine.high %v702_v53, %v702_v53  ;;  %v1891_v17 = vrot.slane %v1890_v62, 2 }
 0x12e   :  { %v5335_v4 = vrot.slane %v653_v54, %v5246_v16  ;;  %v5339_v6 = vcombine.high %v5314_v55, %v5314_v55  ;;  %v1883_v7 = vmax.f32 %v1881_v10, %v1882_v23  ;;  %v1901_v8 = vmin.f32 %v1899_v42, %v1900_v56 }
 0x12f   :  { %8805 = vst [vmem:[#allocation14_spill] sm:$0xff] %v5332_v1  ;;  %v5342_v9 = vrot.slane %v654_v59, %v5246_v16  ;;  %v5346_v11 = vrot.slane %v5309_v5, %v5257_v27  ;;  %v5350_v12 = vrot.slane %v5314_v55, %v5257_v27  ;;  %v5354_v13 = vcombine.high %v5321_v60, %v5321_v60 }
 0x130   :  { %8806 = vst [vmem:[#allocation15_spill] sm:$0xff] %v5335_v4  ;;  %8807 = vst [vmem:[#allocation16_spill] sm:$0xff] %v5339_v6  ;;  %v5358_v14 = vrot.slane %v5335_v4, %v5257_v27  ;;  %v5362_v15 = vcombine.high %v5324_v61, %v5324_v61  ;;  %v1909_v18 = vrot.slane %v1908_v63, 2  ;;  %v5366_v19 = vrot.slane %v5332_v1, %v5257_v27 }
 0x131   :  { %8808 = vst [vmem:[#allocation17_spill] sm:$0xff] %v5342_v9  ;;  %8809 = vst [vmem:[#allocation18_spill] sm:$0xff] %v5346_v11  ;;  %v5370_v20 = vrot.slane %v5342_v9, %v5257_v27  ;;  %v5373_v21 = vrot.slane %v703_v2, %v5246_v16  ;;  %v5376_v25 = vrot.slane %v704_v3, %v5246_v16  ;;  %v1884_v31 = vrot.slane %v1883_v7, 1 }
 0x132   :  { %8810 = vst [vmem:[#allocation19_spill] sm:$0xff] %v5350_v12  ;;  %8811 = vst [vmem:[#allocation20_spill] sm:$0xff] %v5354_v13  ;;  %v5380_v30 = vrot.slane %v5339_v6, %v5257_v27  ;;  %v1902_v33 = vrot.slane %v1901_v8, 1  ;;  %v5384_v34 = vrot.slane %v5321_v60, %v5257_v27  ;;  %v5392_v10 = vrot.slane %v5354_v13, %v5257_v27 }
 0x133   :  { %8812 = vst [vmem:[#allocation21_spill] sm:$0xff] %v5358_v14  ;;  %8813 = vst [vmem:[#allocation22_spill] sm:$0xff] %v5362_v15  ;;  %v5388_v41 = vrot.slane %v5373_v21, %v5257_v27  ;;  %v5396_v42 = vrot.slane %v5324_v61, %v5257_v27  ;;  %v5400_v44 = vrot.slane %v5376_v25, %v5257_v27 }
 0x134   :  { %8814 = vst [vmem:[#allocation23_spill] sm:$0xff] %v5366_v19  ;;  %8815 = vst [vmem:[#allocation24_spill] sm:$0xff] %v5370_v20  ;;  %v5404_v45 = vrot.slane %v5362_v15, %v5257_v27  ;;  %v1892_v46 = vmax.f32 %v1890_v62, %v1891_v17  ;;  %v1910_v49 = vmin.f32 %v1908_v63, %v1909_v18 }
 0x135   :  { %8816 = vst [vmem:[#allocation25_spill] sm:$0xff] %v5373_v21  ;;  %8817 = vst [vmem:[#allocation26_spill] sm:$0xff] %v5376_v25  ;;  %v5408_v50 = vrot.slane %v5251_v22, %v5276_v36  ;;  %v5411_v52 = vrot.slane %v611_v48, %v5276_v36  ;;  %v5414_v53 = vrot.slane %v611_v48, %v5257_v27 }
 0x136   :  { %8818 = vst [vmem:[#allocation27_spill] sm:$0xff] %v5380_v30  ;;  %8819 = vst [vmem:[#allocation28_spill] sm:$0xff] %v5384_v34  ;;  %v585_v54 = vcombine.high %v5260_v28, %v5260_v28  ;;  %v635_v23 = vcombine.high %v625_v57, %v625_v57  ;;  %v5418_v56 = vmax.f32 %v1883_v7, %v1884_v31  ;;  %v1893_v7 = vrot.slane %v1892_v46, 1 }
 0x137   :  { %8820 = vst [vmem:[#allocation29_spill] sm:$0xff] %v5388_v41  ;;  %8821 = vst [vmem:[#allocation30_spill] sm:$0xff] %v5392_v10  ;;  %v5420_v59 = vmin.f32 %v1901_v8, %v1902_v33  ;;  %v5424_v62 = vrot.slane %v5260_v28, %v5276_v36  ;;  %v5427_v22 = vrot.slane %v625_v57, %v5276_v36  ;;  %v1911_v8 = vrot.slane %v1910_v49, 1 }
 0x138   :  { %8822 = vst [vmem:[#allocation31_spill] sm:$0xff] %v5396_v42  ;;  %8823 = vst [vmem:[#allocation32_spill] sm:$0xff] %v5400_v44  ;;  %v5430_v63 = vrot.slane %v625_v57, %v5257_v27  ;;  %v5434_v48 = vrot.slane %v5264_v29, %v5276_v36  ;;  %v5437_v2 = vrot.slane %v633_v24, %v5276_v36 }
 0x139   :  { %8824 = vst [vmem:[#allocation33_spill] sm:$0xff] %v5404_v45  ;;  %v586_v3 = vcombine.high %v5267_v32, %v5267_v32  ;;  %v5442_v28 = vrot.slane %v633_v24, %v5257_v27  ;;  %v5446_v17 = vrot.slane %v5254_v26, %v5276_v36  ;;  %v5449_v57 = vrot.slane %v585_v54, %v5276_v36 }
 0x13a   :  { %v5452_v29 = vrot.slane %v635_v23, %v5276_v36  ;;  %v5456_v18 = vrot.slane %v5306_v51, %v5276_v36  ;;  %v5460_v31 = vrot.slane %v5306_v51, %v5257_v27  ;;  %v5463_v24 = vrot.slane %v585_v54, %v5257_v27 }
 0x13b   :  { %v5466_v26 = vrot.slane %v635_v23, %v5257_v27  ;;  %v5470_v33 = vrot.slane %v5267_v32, %v5276_v36  ;;  %v5474_v16 = vrot.slane %v5318_v58, %v5276_v36  ;;  %v5478_v45 = vrot.slane %v5318_v58, %v5257_v27 }
 0x13c   :  { %v5482_v51 = vrot.slane %v5273_v35, %v5276_v36  ;;  %v5485_v54 = vrot.slane %v586_v3, %v5276_v36  ;;  %v5488_v23 = vrot.slane %v586_v3, %v5257_v27  ;;  %v5490_v32 = vmax.f32 %v1892_v46, %v1893_v7 }
 0x13d   :  { %8825 = vst [vmem:[#allocation34_spill] sm:$0xff] %v5478_v45  ;;  %v5492_v15 = vmin.f32 %v1910_v49, %v1911_v8  ;;  %v5498_v25 = vrot.slane %v5328_v0, %v5276_v36  ;;  %v5502_v35 = vrot.slane %v5328_v0, %v5257_v27 }
 0x13e   :  { %8826 = vst [vmem:[#allocation35_spill] sm:$0xff] %v5482_v51  ;;  %8827 = vst [vmem:[#allocation36_spill] sm:$0xff] %v5485_v54 }
 0x13f   :  { %8828 = vst [vmem:[#allocation37_spill] sm:$0xff] %v5488_v23  ;;  %8829 = vst [vmem:[#allocation38_spill] sm:$0xff] %v5498_v25 }
 0x140   :  { %8830 = vst [vmem:[#allocation39_spill] sm:$0xff] %v5502_v35 }
 0x157   :  { %v5494_v44 = vpop.f32.mrb[8].mxu1 }
 0x158   :  { %v1913_v42 = vmul.f32 %v5418_v56, %v5494_v44  ;;  %v1921_v3 = vmul.f32 %v5420_v59, %v5494_v44  ;;  %v5508_v46 = vpop.f32.mrb[9].mxu1  ;;  %v1057_v49 = vmul.f32 %v5280_v37, %v5494_v44  ;;  %v5514_v7 = vmul.f32 %v5414_v53, %v5494_v44 }
 0x159   :  { %v1914_v8 = vmul.f32 %v5490_v32, %v5508_v46  ;;  %v1922_v0 = vmul.f32 %v5492_v15, %v5508_v46  ;;  %v1058_v61 = vmul.f32 %v5408_v50, %v5508_v46  ;;  %v1122_v10 = vmul.f32 %v5411_v52, %v5508_v46 }
 0x15a   :  { %v5524_v13 = vmax.f32 %v1913_v42, %v1921_v3  ;;  %v5528_v41 = vmul.f32 %v5424_v62, %v5508_v46  ;;  %v5532_v21 = vmul.f32 %v5427_v22, %v5508_v46  ;;  %v5536_v34 = vmul.f32 %v5284_v38, %v5494_v44 }
 0x15b   :  { %v5538_v60 = vmax.f32 %v1914_v8, %v1922_v0  ;;  %v5540_v30 = vpop.f32.mrb[10].mxu1  ;;  %v5544_v42 = vmul.f32 %v5430_v63, %v5494_v44  ;;  %v5548_v3 = vmul.f32 %v5434_v48, %v5508_v46  ;;  %v5552_v6 = vmul.f32 %v5437_v2, %v5508_v46 }
 0x15c   :  { %v1915_v20 = vmul.f32 %v5418_v56, %v5540_v30  ;;  %v1923_v8 = vmul.f32 %v5420_v59, %v5540_v30  ;;  %v5558_v0 = vpop.f32.mrb[11].mxu1  ;;  %v1059_v9 = vmul.f32 %v5280_v37, %v5540_v30  ;;  %v1937_v12 = vsub.f32 %v1057_v49, %v5524_v13 }
 0x15d   :  { %v1916_v55 = vmul.f32 %v5490_v32, %v5558_v0  ;;  %v1924_v19 = vmul.f32 %v5492_v15, %v5558_v0  ;;  %v1060_v1 = vmul.f32 %v5408_v50, %v5558_v0  ;;  %v1938_v14 = vsub.f32 %v1058_v61, %v5538_v60 }
 0x15e   :  { %v5570_v4 = vmax.f32 %v1915_v20, %v1923_v8  ;;  %v1124_v11 = vmul.f32 %v5411_v52, %v5558_v0  ;;  %v1954_v5 = vsub.f32 %v1122_v10, %v5538_v60  ;;  %v4071_v27 = vpack.c.bf16 %v1059_v9, %v1057_v49 }
 0x15f   :  { %v5575_v36 = vmax.f32 %v1916_v55, %v1924_v19  ;;  %v5577_v23 = vpop.f32.mrb[12].mxu1  ;;  %v4069_v58 = vpack.c.bf16 %v1060_v1, %v1058_v61  ;;  %v2003_v54 = vmul.f32 1.442695, %v1938_v14  ;;  %v2001_v35 = vmul.f32 1.442695, %v1937_v12 }
 0x160   :  { %v1917_v47 = vmul.f32 %v5418_v56, %v5577_v23  ;;  %v1925_v20 = vmul.f32 %v5420_v59, %v5577_v23  ;;  %v5583_v8 = vpop.f32.mrb[13].mxu1  ;;  %v4133_v25 = vpack.c.bf16 %v1124_v11, %v1122_v10  ;;  %v2035_v51 = vmul.f32 1.442695, %v1954_v5 }
 0x161   :  { %v1918_v49 = vmul.f32 %v5490_v32, %v5583_v8  ;;  %v1926_v55 = vmul.f32 %v5492_v15, %v5583_v8  ;;  %4070 = vmatprep.subr.bf16.mxu1 %v4069_v58  ;;  %4354 = vpow2.f32 %v2003_v54  ;;  %v2644_v61 = vsub.f32 %v1060_v1, %v5575_v36 }
 0x162   :  { %v5590_v12 = vmax.f32 %v1917_v47, %v1925_v20  ;;  %4134 = vmatprep.subr.bf16.mxu0 %v4133_v25  ;;  %4356 = vpow2.f32 %v2035_v51  ;;  %v2660_v14 = vsub.f32 %v1124_v11, %v5575_v36  ;;  %4072 = vmatpush1.bf16.msra.mxu1 %v4071_v27  ;;  %v2643_v19 = vsub.f32 %v1059_v9, %v5570_v4 }
 0x163   :  { %v5594_v5 = vmax.f32 %v1918_v49, %v1926_v55  ;;  %v2709_v10 = vmul.f32 1.442695, %v2644_v61  ;;  %4358 = vpow2.f32 %v2001_v35  ;;  %v1123_v45 = vmul.f32 %v5414_v53, %v5540_v30  ;;  %v5598_v58 = vpop.f32.mrb[14].mxu1 }
 0x164   :  { %v2741_v54 = vmul.f32 1.442695, %v2660_v14  ;;  %v2707_v1 = vmul.f32 1.442695, %v2643_v19  ;;  %v1953_v47 = vsub.f32 %v5514_v7, %v5524_v13  ;;  %v1919_v11 = vmul.f32 %v5418_v56, %v5598_v58  ;;  %v5604_v27 = vpop.f32.mrb[15].mxu1 }
 0x165   :  { %4360 = vpow2.f32 %v2709_v10  ;;  %v4135_v9 = vpack.c.bf16 %v1123_v45, %v5514_v7  ;;  %v2659_v25 = vsub.f32 %v1123_v45, %v5570_v4  ;;  %v1927_v51 = vmul.f32 %v5420_v59, %v5598_v58 }
 0x166   :  { %4362 = vpow2.f32 %v2741_v54  ;;  %v2033_v35 = vmul.f32 1.442695, %v1953_v47  ;;  %v1920_v20 = vmul.f32 %v5490_v32, %v5604_v27  ;;  %v1928_v49 = vmul.f32 %v5492_v15, %v5604_v27 }
 0x167   :  { %4364 = vpow2.f32 %v2707_v1  ;;  %4136 = vmatpush1.bf16.msra.mxu0 %v4135_v9  ;;  %v2739_v56 = vmul.f32 1.442695, %v2659_v25  ;;  %v5614_v55 = vmax.f32 %v1919_v11, %v1927_v51  ;;  %v1062_v7 = vmul.f32 %v5408_v50, %v5583_v8 }
 0x168   :  { %4366 = vpow2.f32 %v2033_v35  ;;  %v5618_v45 = vmax.f32 %v1920_v20, %v1928_v49  ;;  %v1064_v59 = vmul.f32 %v5408_v50, %v5604_v27  ;;  %v1126_v32 = vmul.f32 %v5411_v52, %v5583_v8 }
 0x169   :  { %4368 = vpow2.f32 %v2739_v56  ;;  %v3030_v15 = vsub.f32 %v1062_v7, %v5594_v5  ;;  %v1128_v61 = vmul.f32 %v5411_v52, %v5604_v27  ;;  %v1061_v14 = vmul.f32 %v5280_v37, %v5577_v23 }
 0x16a   :  { %v4073_v19 = vpack.c.bf16 %v1064_v59, %v1062_v7  ;;  %v3416_v10 = vsub.f32 %v1064_v59, %v5618_v45  ;;  %v3046_v54 = vsub.f32 %v1126_v32, %v5594_v5  ;;  %v1063_v50 = vmul.f32 %v5280_v37, %v5598_v58 }
 0x16b   :  { %v5633_v1 = vpop.eup %4354  ;;  %v3095_v47 = vmul.f32 1.442695, %v3030_v15  ;;  %v4137_v11 = vpack.c.bf16 %v1128_v61, %v1126_v32  ;;  %v3432_v9 = vsub.f32 %v1128_v61, %v5618_v45  ;;  %v3029_v25 = vsub.f32 %v1061_v14, %v5590_v12 }
 0x16c   :  { %8831 = vst [vmem:[#allocation40_spill] sm:$0xff] %v5633_v1  ;;  %v5637_v52 = vpop.eup %4356  ;;  %4074 = vmatprep.subr.bf16.mxu1 %v4073_v19  ;;  %v3481_v51 = vmul.f32 1.442695, %v3416_v10  ;;  %v3127_v35 = vmul.f32 1.442695, %v3046_v54  ;;  %v4075_v20 = vpack.c.bf16 %v1063_v50, %v1061_v14  ;;  %v3415_v49 = vsub.f32 %v1063_v50, %v5614_v55 }
 0x16d   :  { %8832 = vst [vmem:[#allocation41_spill] sm:$0xff] %v5637_v52  ;;  %v5640_v56 = vpop.eup %4358  ;;  %4370 = vpow2.f32 %v3095_v47  ;;  %4138 = vmatprep.subr.bf16.mxu0 %v4137_v11  ;;  %v3513_v37 = vmul.f32 1.442695, %v3432_v9  ;;  %v3093_v7 = vmul.f32 1.442695, %v3029_v25  ;;  %v1125_v59 = vmul.f32 %v5414_v53, %v5577_v23 }
 0x16e   :  { %8833 = vst [vmem:[#allocation42_spill] sm:$0xff] %v5640_v56  ;;  %4372 = vpow2.f32 %v3481_v51  ;;  %4076 = vmatpush1.bf16.msra.mxu1 %v4075_v20  ;;  %v3479_v32 = vmul.f32 1.442695, %v3415_v49  ;;  %v1127_v15 = vmul.f32 %v5414_v53, %v5598_v58  ;;  %v1068_v61 = vmul.f32 %v5424_v62, %v5558_v0 }
 0x16f   :  { %v5648_v14 = vpop.eup %4360  ;;  %4374 = vpow2.f32 %v3127_v35  ;;  %v3045_v19 = vsub.f32 %v1125_v59, %v5590_v12  ;;  %v1940_v10 = vsub.f32 %v5528_v41, %v5538_v60  ;;  %v1132_v54 = vmul.f32 %v5427_v22, %v5558_v0 }
 0x170   :  { %8834 = vst [vmem:[#allocation43_spill] sm:$0xff] %v5648_v14  ;;  %v5655_v50 = vpop.eup %4362  ;;  %4376 = vpow2.f32 %v3513_v37  ;;  %v4139_v47 = vpack.c.bf16 %v1127_v15, %v1125_v59  ;;  %v3431_v53 = vsub.f32 %v1127_v15, %v5614_v55  ;;  %v4077_v11 = vpack.c.bf16 %v1068_v61, %v5528_v41 }
 0x171   :  { %8835 = vst [vmem:[#allocation44_spill] sm:$0xff] %v5655_v50  ;;  %v5659_v9 = vpop.eup %4364  ;;  %4378 = vpow2.f32 %v3093_v7  ;;  %v3125_v25 = vmul.f32 1.442695, %v3045_v19  ;;  %v2007_v51 = vmul.f32 1.442695, %v1940_v10  ;;  %v2646_v35 = vsub.f32 %v1068_v61, %v5575_v36 }
 0x172   :  { %8836 = vst [vmem:[#allocation45_spill] sm:$0xff] %v5659_v9  ;;  %v5662_v20 = vpop.eup %4366  ;;  %4380 = vpow2.f32 %v3479_v32  ;;  %4140 = vmatpush1.bf16.msra.mxu0 %v4139_v47  ;;  %v3511_v49 = vmul.f32 1.442695, %v3431_v53  ;;  %4078 = vmatprep.subr.bf16.mxu1 %v4077_v11  ;;  %v4141_v37 = vpack.c.bf16 %v1132_v54, %v5532_v21  ;;  %v1956_v59 = vsub.f32 %v5532_v21, %v5538_v60 }
 0x173   :  { %8837 = vst [vmem:[#allocation46_spill] sm:$0xff] %v5662_v20  ;;  %v5667_v15 = vpop.eup %4368  ;;  %4382 = vpow2.f32 %v3125_v25  ;;  %v2713_v41 = vmul.f32 1.442695, %v2646_v35  ;;  %v2662_v7 = vsub.f32 %v1132_v54, %v5575_v36  ;;  %v1067_v61 = vmul.f32 %v5284_v38, %v5540_v30 }
 0x174   :  { %8838 = vst [vmem:[#allocation47_spill] sm:$0xff] %v5667_v15  ;;  %4384 = vpow2.f32 %v3511_v49  ;;  %4142 = vmatprep.subr.bf16.mxu0 %v4141_v37  ;;  %v2039_v32 = vmul.f32 1.442695, %v1956_v59  ;;  %v1939_v19 = vsub.f32 %v5536_v34, %v5524_v13  ;;  %v1131_v10 = vmul.f32 %v5430_v63, %v5540_v30 }
 0x175   :  { %4386 = vpow2.f32 %v2007_v51  ;;  %v2745_v21 = vmul.f32 1.442695, %v2662_v7  ;;  %v4079_v47 = vpack.c.bf16 %v1067_v61, %v5536_v34  ;;  %v2645_v53 = vsub.f32 %v1067_v61, %v5570_v4 }
 0x176   :  { %4388 = vpow2.f32 %v2713_v41  ;;  %v2005_v54 = vmul.f32 1.442695, %v1939_v19  ;;  %v4143_v11 = vpack.c.bf16 %v1131_v10, %v5544_v42  ;;  %v1955_v25 = vsub.f32 %v5544_v42, %v5524_v13 }
 0x177   :  { %v5681_v35 = vpop.eup %4370  ;;  %4390 = vpow2.f32 %v2039_v32  ;;  %4080 = vmatpush1.bf16.msra.mxu1 %v4079_v47  ;;  %v2711_v49 = vmul.f32 1.442695, %v2645_v53  ;;  %v2661_v37 = vsub.f32 %v1131_v10, %v5570_v4  ;;  %v1070_v51 = vmul.f32 %v5424_v62, %v5583_v8 }
 0x178   :  { %8839 = vst [vmem:[#allocation48_spill] sm:$0xff] %v5681_v35  ;;  %v5686_v34 = vpop.eup %4372  ;;  %4392 = vpow2.f32 %v2745_v21  ;;  %4144 = vmatpush1.bf16.msra.mxu0 %v4143_v11  ;;  %v2037_v59 = vmul.f32 1.442695, %v1955_v25  ;;  %v1072_v41 = vmul.f32 %v5424_v62, %v5604_v27  ;;  %v1134_v42 = vmul.f32 %v5427_v22, %v5583_v8 }
 0x179   :  { %8840 = vst [vmem:[#allocation49_spill] sm:$0xff] %v5686_v34  ;;  %v5692_v7 = vpop.eup %4374  ;;  %4394 = vpow2.f32 %v2005_v54  ;;  %v2743_v61 = vmul.f32 1.442695, %v2661_v37  ;;  %v3032_v32 = vsub.f32 %v1070_v51, %v5594_v5  ;;  %v1136_v19 = vmul.f32 %v5427_v22, %v5604_v27 }
 0x17a   :  { %8841 = vst [vmem:[#allocation50_spill] sm:$0xff] %v5692_v7  ;;  %v5697_v10 = vpop.eup %4376  ;;  %4396 = vpow2.f32 %v2711_v49  ;;  %v4081_v21 = vpack.c.bf16 %v1072_v41, %v1070_v51  ;;  %v3418_v47 = vsub.f32 %v1072_v41, %v5618_v45  ;;  %v3048_v62 = vsub.f32 %v1134_v42, %v5594_v5 }
 0x17b   :  { %8842 = vst [vmem:[#allocation51_spill] sm:$0xff] %v5697_v10  ;;  %v5701_v53 = vpop.eup %4378  ;;  %4398 = vpow2.f32 %v2037_v59  ;;  %v3099_v11 = vmul.f32 1.442695, %v3032_v32  ;;  %v4145_v25 = vpack.c.bf16 %v1136_v19, %v1134_v42  ;;  %v3434_v54 = vsub.f32 %v1136_v19, %v5618_v45 }
 0x17c   :  { %8843 = vst [vmem:[#allocation52_spill] sm:$0xff] %v5701_v53  ;;  %v5704_v37 = vpop.eup %4380  ;;  %4400 = vpow2.f32 %v2743_v61  ;;  %4082 = vmatprep.subr.bf16.mxu1 %v4081_v21  ;;  %v3485_v22 = vmul.f32 1.442695, %v3418_v47  ;;  %v3131_v7 = vmul.f32 1.442695, %v3048_v62  ;;  %v1069_v49 = vmul.f32 %v5284_v38, %v5577_v23 }
 0x17d   :  { %8844 = vst [vmem:[#allocation53_spill] sm:$0xff] %v5704_v37  ;;  %v5708_v51 = vpop.eup %4382  ;;  %4402 = vpow2.f32 %v3099_v11  ;;  %4146 = vmatprep.subr.bf16.mxu0 %v4145_v25  ;;  %v3517_v41 = vmul.f32 1.442695, %v3434_v54  ;;  %v1071_v59 = vmul.f32 %v5284_v38, %v5598_v58  ;;  %v1133_v42 = vmul.f32 %v5430_v63, %v5577_v23 }
 0x17e   :  { %8845 = vst [vmem:[#allocation54_spill] sm:$0xff] %v5708_v51  ;;  %v5714_v32 = vpop.eup %4384  ;;  %4404 = vpow2.f32 %v3485_v22  ;;  %v3031_v61 = vsub.f32 %v1069_v49, %v5590_v12  ;;  %v1135_v19 = vmul.f32 %v5430_v63, %v5598_v58  ;;  %v1076_v21 = vmul.f32 %v5434_v48, %v5558_v0 }
 0x17f   :  { %8846 = vst [vmem:[#allocation55_spill] sm:$0xff] %v5714_v32  ;;  %v5721_v47 = vpop.eup %4386  ;;  %4406 = vpow2.f32 %v3131_v7  ;;  %v4083_v62 = vpack.c.bf16 %v1071_v59, %v1069_v49  ;;  %v3417_v38 = vsub.f32 %v1071_v59, %v5614_v55  ;;  %v3047_v11 = vsub.f32 %v1133_v42, %v5590_v12 }
 0x180   :  { %8847 = vst [vmem:[#allocation56_spill] sm:$0xff] %v5721_v47  ;;  %v5725_v25 = vpop.eup %4388  ;;  %v5729_v54 = vadd.f32 %v5721_v47, %v5633_v1  ;;  %4408 = vpow2.f32 %v3517_v41  ;;  %v3097_v22 = vmul.f32 1.442695, %v3031_v61  ;;  %v4147_v63 = vpack.c.bf16 %v1135_v19, %v1133_v42 }
 0x181   :  { %8848 = vst [vmem:[#allocation57_spill] sm:$0xff] %v5725_v25  ;;  %v5731_v32 = vpop.eup %4390  ;;  %v5735_v51 = vadd.f32 %v5725_v25, %v5648_v14  ;;  %4084 = vmatpush1.bf16.msra.mxu1 %v4083_v62  ;;  %v3483_v7 = vmul.f32 1.442695, %v3417_v38  ;;  %v3129_v49 = vmul.f32 1.442695, %v3047_v11  ;;  %v3433_v59 = vsub.f32 %v1135_v19, %v5614_v55 }
 0x182   :  { %8849 = vst [vmem:[#allocation58_spill] sm:$0xff] %v5731_v32  ;;  %v5738_v10 = vpop.eup %4392  ;;  %4410 = vpow2.f32 %v3097_v22  ;;  %4148 = vmatpush1.bf16.msra.mxu0 %v4147_v63  ;;  %v4085_v47 = vpack.c.bf16 %v1076_v21, %v5548_v3  ;;  %v1942_v41 = vsub.f32 %v5548_v3, %v5538_v60  ;;  %v2648_v42 = vsub.f32 %v1076_v21, %v5575_v36 }
 0x183   :  { %8850 = vst [vmem:[#allocation59_spill] sm:$0xff] %v5738_v10  ;;  %v5744_v61 = vpop.eup %4394  ;;  %4412 = vpow2.f32 %v3483_v7  ;;  %v3515_v25 = vmul.f32 1.442695, %v3433_v59  ;;  %v1140_v62 = vmul.f32 %v5437_v2, %v5558_v0  ;;  %v1958_v19 = vsub.f32 %v5552_v6, %v5538_v60 }
 0x184   :  { %8851 = vst [vmem:[#allocation60_spill] sm:$0xff] %v5744_v61  ;;  %v5750_v38 = vpop.eup %4396  ;;  %v5754_v11 = vadd.f32 %v5744_v61, %v5640_v56  ;;  %4414 = vpow2.f32 %v3129_v49  ;;  %4086 = vmatprep.subr.bf16.mxu1 %v4085_v47  ;;  %v2011_v3 = vmul.f32 1.442695, %v1942_v41  ;;  %v2717_v21 = vmul.f32 1.442695, %v2648_v42 }
 0x185   :  { %8852 = vst [vmem:[#allocation61_spill] sm:$0xff] %v5750_v38  ;;  %v5756_v22 = vpop.eup %4398  ;;  %v5760_v63 = vadd.f32 %v5750_v38, %v5659_v9  ;;  %4416 = vpow2.f32 %v3515_v25  ;;  %v4149_v7 = vpack.c.bf16 %v1140_v62, %v5552_v6  ;;  %v2043_v59 = vmul.f32 1.442695, %v1958_v19 }
 0x186   :  { %8853 = vst [vmem:[#allocation62_spill] sm:$0xff] %v5756_v22  ;;  %v5763_v14 = vpop.eup %4400  ;;  %4418 = vpow2.f32 %v2011_v3  ;;  %v2664_v61 = vsub.f32 %v1140_v62, %v5575_v36  ;;  %v1073_v47 = vmul.f32 %v5292_v40, %v5494_v44  ;;  %v1075_v49 = vmul.f32 %v5292_v40, %v5540_v30 }
 0x187   :  { %8854 = vst [vmem:[#allocation63_spill] sm:$0xff] %v5763_v14  ;;  %v5770_v41 = vpop.eup %4402  ;;  %4420 = vpow2.f32 %v2717_v21  ;;  %4150 = vmatprep.subr.bf16.mxu0 %v4149_v7  ;;  %v1137_v25 = vmul.f32 %v5442_v28, %v5494_v44  ;;  %v1139_v6 = vmul.f32 %v5442_v28, %v5540_v30  ;;  %v1078_v42 = vmul.f32 %v5434_v48, %v5583_v8 }
 0x188   :  { %8855 = vst [vmem:[#allocation64_spill] sm:$0xff] %v5770_v41  ;;  %v5778_v62 = vpop.eup %4404  ;;  %v5782_v19 = vadd.f32 %v5770_v41, %v5681_v35  ;;  %4422 = vpow2.f32 %v2043_v59  ;;  %v2749_v3 = vmul.f32 1.442695, %v2664_v61  ;;  %v4087_v38 = vpack.c.bf16 %v1075_v49, %v1073_v47 }
 0x189   :  { %8856 = vst [vmem:[#allocation65_spill] sm:$0xff] %v5778_v62  ;;  %v5784_v21 = vpop.eup %4406  ;;  %v5788_v7 = vadd.f32 %v5778_v62, %v5686_v34  ;;  %v1941_v9 = vsub.f32 %v1073_v47, %v5524_v13  ;;  %v2647_v1 = vsub.f32 %v1075_v49, %v5570_v4  ;;  %v4151_v56 = vpack.c.bf16 %v1139_v6, %v1137_v25 }
 0x18a   :  { %8857 = vst [vmem:[#allocation66_spill] sm:$0xff] %v5784_v21  ;;  %v5792_v14 = vpop.eup %4408  ;;  %4424 = vpow2.f32 %v2749_v3  ;;  %4088 = vmatpush1.bf16.msra.mxu1 %v4087_v38  ;;  %v1957_v41 = vsub.f32 %v1137_v25, %v5524_v13  ;;  %v2663_v61 = vsub.f32 %v1139_v6, %v5570_v4  ;;  %v1080_v59 = vmul.f32 %v5434_v48, %v5604_v27 }
 0x18b   :  { %8858 = vst [vmem:[#allocation67_spill] sm:$0xff] %v5792_v14  ;;  %v2009_v35 = vmul.f32 1.442695, %v1941_v9  ;;  %v2715_v21 = vmul.f32 1.442695, %v2647_v1  ;;  %4152 = vmatpush1.bf16.msra.mxu0 %v4151_v56  ;;  %v3034_v62 = vsub.f32 %v1078_v42, %v5594_v5  ;;  %v1142_v47 = vmul.f32 %v5437_v2, %v5583_v8 }
 0x18c   :  { %v5801_v49 = vpop.eup %4410  ;;  %v2041_v34 = vmul.f32 1.442695, %v1957_v41  ;;  %v2747_v3 = vmul.f32 1.442695, %v2663_v61  ;;  %v4089_v38 = vpack.c.bf16 %v1080_v59, %v1078_v42  ;;  %v3420_v25 = vsub.f32 %v1080_v59, %v5618_v45 }
 0x18d   :  { %8859 = vst [vmem:[#allocation68_spill] sm:$0xff] %v5801_v49  ;;  %v5804_v14 = vpop.eup %4412  ;;  %v5808_v48 = vadd.f32 %v5801_v49, %v5701_v53  ;;  %4426 = vpow2.f32 %v2009_v35  ;;  %v3103_v1 = vmul.f32 1.442695, %v3034_v62  ;;  %v1144_v56 = vmul.f32 %v5437_v2, %v5604_v27 }
 0x18e   :  { %8860 = vst [vmem:[#allocation69_spill] sm:$0xff] %v5804_v14  ;;  %v5812_v9 = vpop.eup %4414  ;;  %v5816_v41 = vadd.f32 %v5804_v14, %v5704_v37  ;;  %4428 = vpow2.f32 %v2715_v21  ;;  %4090 = vmatprep.subr.bf16.mxu1 %v4089_v38  ;;  %v3489_v6 = vmul.f32 1.442695, %v3420_v25  ;;  %v3050_v42 = vsub.f32 %v1142_v47, %v5594_v5 }
 0x18f   :  { %8861 = vst [vmem:[#allocation70_spill] sm:$0xff] %v5812_v9  ;;  %v5819_v61 = vpop.eup %4416  ;;  %4430 = vpow2.f32 %v2041_v34  ;;  %v4153_v59 = vpack.c.bf16 %v1144_v56, %v1142_v47  ;;  %v3436_v35 = vsub.f32 %v1144_v56, %v5618_v45  ;;  %v1077_v2 = vmul.f32 %v5292_v40, %v5577_v23 }
 0x190   :  { %8862 = vst [vmem:[#allocation71_spill] sm:$0xff] %v5819_v61  ;;  %v5824_v62 = vpop.eup %4418  ;;  %4432 = vpow2.f32 %v2747_v3  ;;  %v3135_v49 = vmul.f32 1.442695, %v3050_v42  ;;  %v1079_v21 = vmul.f32 %v5292_v40, %v5598_v58  ;;  %v1141_v38 = vmul.f32 %v5442_v28, %v5577_v23 }
 0x191   :  { %8863 = vst [vmem:[#allocation72_spill] sm:$0xff] %v5824_v62  ;;  %v5830_v25 = vpop.eup %4420  ;;  %v5834_v34 = vadd.f32 %v5824_v62, %v5729_v54  ;;  %4434 = vpow2.f32 %v3103_v1  ;;  %4154 = vmatprep.subr.bf16.mxu0 %v4153_v59  ;;  %v3521_v47 = vmul.f32 1.442695, %v3436_v35  ;;  %v3033_v56 = vsub.f32 %v1077_v2, %v5590_v12 }
 0x192   :  { %8864 = vst [vmem:[#allocation73_spill] sm:$0xff] %v5830_v25  ;;  %v5837_v14 = vpop.eup %4422  ;;  %v5841_v3 = vadd.f32 %v5830_v25, %v5735_v51  ;;  %4436 = vpow2.f32 %v3489_v6  ;;  %v4091_v40 = vpack.c.bf16 %v1079_v21, %v1077_v2  ;;  %v3419_v42 = vsub.f32 %v1079_v21, %v5614_v55 }
 0x193   :  { %8865 = vst [vmem:[#allocation74_spill] sm:$0xff] %v5837_v14  ;;  %4438 = vpow2.f32 %v3135_v49  ;;  %v3101_v37 = vmul.f32 1.442695, %v3033_v56  ;;  %v1143_v54 = vmul.f32 %v5442_v28, %v5598_v58  ;;  %v3049_v1 = vsub.f32 %v1141_v38, %v5590_v12 }
 0x194   :  { %v5847_v59 = vpop.eup %4424  ;;  %4440 = vpow2.f32 %v3521_v47  ;;  %4092 = vmatpush1.bf16.msra.mxu1 %v4091_v40  ;;  %v3487_v35 = vmul.f32 1.442695, %v3419_v42  ;;  %v1082_v51 = vmul.f32 %v5449_v57, %v5508_v46  ;;  %v1084_v6 = vmul.f32 %v5449_v57, %v5558_v0 }
 0x195   :  { %8866 = vst [vmem:[#allocation75_spill] sm:$0xff] %v5847_v59  ;;  %4442 = vpow2.f32 %v3101_v37  ;;  %v4155_v2 = vpack.c.bf16 %v1143_v54, %v1141_v38  ;;  %v3133_v49 = vmul.f32 1.442695, %v3049_v1  ;;  %v3435_v21 = vsub.f32 %v1143_v54, %v5614_v55  ;;  %v82_v38 = vld [vmem:[%s8491_s2 + $0x18] sm:$0xff] }
 0x196   :  { %4444 = vpow2.f32 %v3487_v35  ;;  %v4093_v28 = vpack.c.bf16 %v1084_v6, %v1082_v51  ;;  %v1944_v56 = vsub.f32 %v1082_v51, %v5538_v60  ;;  %v2650_v53 = vsub.f32 %v1084_v6, %v5575_v36  ;;  %1466 = vmatprep.mubr.f32.mxu0 %v82_v38 }
 0x197   :  { %v5856_v47 = vpop.eup %4426  ;;  %4156 = vmatpush1.bf16.msra.mxu0 %v4155_v2  ;;  %4446 = vpow2.f32 %v3133_v49  ;;  %v3519_v40 = vmul.f32 1.442695, %v3435_v21  ;;  %v1146_v42 = vmul.f32 %v5452_v29, %v5508_v46  ;;  %v1148_v37 = vmul.f32 %v5452_v29, %v5558_v0 }
 0x198   :  { %8867 = vst [vmem:[#allocation76_spill] sm:$0xff] %v5856_v47  ;;  %v5865_v54 = vpop.eup %4428  ;;  %v5869_v1 = vadd.f32 %v5856_v47, %v5754_v11  ;;  %4094 = vmatprep.subr.bf16.mxu1 %v4093_v28  ;;  %v2015_v35 = vmul.f32 1.442695, %v1944_v56  ;;  %v2721_v51 = vmul.f32 1.442695, %v2650_v53  ;;  %v1081_v6 = vmul.f32 %v5463_v24, %v5494_v44 }
 0x199   :  { %8868 = vst [vmem:[#allocation77_spill] sm:$0xff] %v5865_v54  ;;  %v5873_v2 = vpop.eup %4430  ;;  %v5877_v49 = vadd.f32 %v5865_v54, %v5760_v63  ;;  %4448 = vpow2.f32 %v3519_v40  ;;  %v4157_v21 = vpack.c.bf16 %v1148_v37, %v1146_v42  ;;  %v1960_v25 = vsub.f32 %v1146_v42, %v5538_v60 }
 0x19a   :  { %8869 = vst [vmem:[#allocation78_spill] sm:$0xff] %v5873_v2  ;;  %v5880_v62 = vpop.eup %4432  ;;  %4450 = vpow2.f32 %v2015_v35  ;;  %v2666_v11 = vsub.f32 %v1148_v37, %v5575_v36  ;;  %v1083_v53 = vmul.f32 %v5463_v24, %v5540_v30  ;;  %v1943_v28 = vsub.f32 %v1081_v6, %v5524_v13 }
 0x19b   :  { %8870 = vst [vmem:[#allocation79_spill] sm:$0xff] %v5880_v62  ;;  %v5886_v56 = vpop.eup %4434  ;;  %4452 = vpow2.f32 %v2721_v51  ;;  %4158 = vmatprep.subr.bf16.mxu0 %v4157_v21  ;;  %v2047_v63 = vmul.f32 1.442695, %v1960_v25  ;;  %v1145_v40 = vmul.f32 %v5466_v26, %v5494_v44  ;;  %v1147_v42 = vmul.f32 %v5466_v26, %v5540_v30 }
 0x19c   :  { %8871 = vst [vmem:[#allocation80_spill] sm:$0xff] %v5886_v56  ;;  %v5892_v38 = vpop.eup %4436  ;;  %v5896_v37 = vadd.f32 %v5886_v56, %v5782_v19  ;;  %v2753_v35 = vmul.f32 1.442695, %v2666_v11  ;;  %v4095_v54 = vpack.c.bf16 %v1083_v53, %v1081_v6  ;;  %v2013_v47 = vmul.f32 1.442695, %v1943_v28 }
 0x19d   :  { %8872 = vst [vmem:[#allocation81_spill] sm:$0xff] %v5892_v38  ;;  %v5898_v61 = vpop.eup %4438  ;;  %v5902_v25 = vadd.f32 %v5892_v38, %v5788_v7  ;;  %4454 = vpow2.f32 %v2047_v63  ;;  %v2649_v51 = vsub.f32 %v1083_v53, %v5570_v4  ;;  %v4159_v21 = vpack.c.bf16 %v1147_v42, %v1145_v40 }
 0x19e   :  { %8873 = vst [vmem:[#allocation82_spill] sm:$0xff] %v5898_v61  ;;  %v5905_v9 = vpop.eup %4440  ;;  %4456 = vpow2.f32 %v2753_v35  ;;  %4096 = vmatpush1.bf16.msra.mxu1 %v4095_v54  ;;  %v1959_v19 = vsub.f32 %v1145_v40, %v5524_v13  ;;  %v2665_v11 = vsub.f32 %v1147_v42, %v5570_v4  ;;  %v1086_v6 = vmul.f32 %v5449_v57, %v5583_v8 }
 0x19f   :  { %8874 = vst [vmem:[#allocation83_spill] sm:$0xff] %v5905_v9  ;;  %v5911_v28 = vpop.eup %4442  ;;  %4458 = vpow2.f32 %v2013_v47  ;;  %v2719_v7 = vmul.f32 1.442695, %v2649_v51  ;;  %4160 = vmatpush1.bf16.msra.mxu0 %v4159_v21  ;;  %v1088_v53 = vmul.f32 %v5449_v57, %v5604_v27  ;;  %v1150_v63 = vmul.f32 %v5452_v29, %v5583_v8 }
 0x1a0   :  { %8875 = vst [vmem:[#allocation84_spill] sm:$0xff] %v5911_v28  ;;  %v5917_v35 = vpop.eup %4444  ;;  %v5921_v54 = vadd.f32 %v5911_v28, %v5808_v48  ;;  %v2045_v40 = vmul.f32 1.442695, %v1959_v19  ;;  %v2751_v42 = vmul.f32 1.442695, %v2665_v11  ;;  %v3036_v38 = vsub.f32 %v1086_v6, %v5594_v5 }
 0x1a1   :  { %8876 = vst [vmem:[#allocation85_spill] sm:$0xff] %v5917_v35  ;;  %v5924_v56 = vpop.eup %4446  ;;  %v5928_v47 = vadd.f32 %v5917_v35, %v5816_v41  ;;  %4460 = vpow2.f32 %v2719_v7  ;;  %v4097_v57 = vpack.c.bf16 %v1088_v53, %v1086_v6  ;;  %v3422_v51 = vsub.f32 %v1088_v53, %v5618_v45 }
 0x1a2   :  { %8877 = vst [vmem:[#allocation86_spill] sm:$0xff] %v5924_v56  ;;  %4462 = vpow2.f32 %v2045_v40  ;;  %v3107_v21 = vmul.f32 1.442695, %v3036_v38  ;;  %v1152_v48 = vmul.f32 %v5452_v29, %v5604_v27  ;;  %v3052_v19 = vsub.f32 %v1150_v63, %v5594_v5 }
 0x1a3   :  { %v5934_v11 = vpop.eup %4448  ;;  %4464 = vpow2.f32 %v2751_v42  ;;  %4098 = vmatprep.subr.bf16.mxu1 %v4097_v57  ;;  %v3493_v28 = vmul.f32 1.442695, %v3422_v51  ;;  %v1085_v41 = vmul.f32 %v5463_v24, %v5577_v23  ;;  %v1087_v6 = vmul.f32 %v5463_v24, %v5598_v58 }
 0x1a4   :  { %8878 = vst [vmem:[#allocation87_spill] sm:$0xff] %v5934_v11  ;;  %v5940_v7 = vpop.eup %4450  ;;  %4466 = vpow2.f32 %v3107_v21  ;;  %v4161_v38 = vpack.c.bf16 %v1152_v48, %v1150_v63  ;;  %v3139_v53 = vmul.f32 1.442695, %v3052_v19  ;;  %v3438_v29 = vsub.f32 %v1152_v48, %v5618_v45 }
 0x1a5   :  { %8879 = vst [vmem:[#allocation88_spill] sm:$0xff] %v5940_v7  ;;  %v5943_v40 = vpop.eup %4452  ;;  %v5947_v42 = vadd.f32 %v5940_v7, %v5834_v34  ;;  %4468 = vpow2.f32 %v3493_v28  ;;  %v4099_v57 = vpack.c.bf16 %v1087_v6, %v1085_v41  ;;  %v3035_v51 = vsub.f32 %v1085_v41, %v5590_v12 }
 0x1a6   :  { %8880 = vst [vmem:[#allocation89_spill] sm:$0xff] %v5943_v40  ;;  %v5952_v24 = vadd.f32 %v5943_v40, %v5841_v3  ;;  %4162 = vmatprep.subr.bf16.mxu0 %v4161_v38  ;;  %4470 = vpow2.f32 %v3139_v53  ;;  %v3525_v63 = vmul.f32 1.442695, %v3438_v29  ;;  %v3421_v21 = vsub.f32 %v1087_v6, %v5614_v55 }
 0x1a7   :  { %v5955_v48 = vpop.eup %4454  ;;  %4100 = vmatpush1.bf16.msra.mxu1 %v4099_v57  ;;  %v3105_v19 = vmul.f32 1.442695, %v3035_v51  ;;  %v1149_v34 = vmul.f32 %v5466_v26, %v5577_v23  ;;  %v1151_v28 = vmul.f32 %v5466_v26, %v5598_v58  ;;  %v1090_v41 = vmul.f32 %v5446_v17, %v5508_v46 }
 0x1a8   :  { %8881 = vst [vmem:[#allocation90_spill] sm:$0xff] %v5955_v48  ;;  %v5963_v3 = vpop.eup %4456  ;;  %4472 = vpow2.f32 %v3525_v63  ;;  %v3491_v38 = vmul.f32 1.442695, %v3421_v21  ;;  %v1092_v6 = vmul.f32 %v5446_v17, %v5558_v0  ;;  %v1154_v53 = vmul.f32 %v5456_v18, %v5508_v46 }
 0x1a9   :  { %8882 = vst [vmem:[#allocation91_spill] sm:$0xff] %v5963_v3  ;;  %v5969_v29 = vpop.eup %4458  ;;  %4474 = vpow2.f32 %v3105_v19  ;;  %v4163_v57 = vpack.c.bf16 %v1151_v28, %v1149_v34  ;;  %v3051_v51 = vsub.f32 %v1149_v34, %v5590_v12  ;;  %v3437_v26 = vsub.f32 %v1151_v28, %v5614_v55 }
 0x1aa   :  { %8883 = vst [vmem:[#allocation92_spill] sm:$0xff] %v5969_v29  ;;  %v5975_v35 = vadd.f32 %v5969_v29, %v5869_v1  ;;  %4476 = vpow2.f32 %v3491_v38  ;;  %v4101_v63 = vpack.c.bf16 %v1092_v6, %v1090_v41  ;;  %v1946_v21 = vsub.f32 %v1090_v41, %v5538_v60 }
 0x1ab   :  { %v5978_v40 = vpop.eup %4460  ;;  %4164 = vmatpush1.bf16.msra.mxu0 %v4163_v57  ;;  %v3137_v7 = vmul.f32 1.442695, %v3051_v51  ;;  %v3523_v11 = vmul.f32 1.442695, %v3437_v26  ;;  %v2652_v19 = vsub.f32 %v1092_v6, %v5575_v36  ;;  %v1156_v34 = vmul.f32 %v5456_v18, %v5558_v0 }
 0x1ac   :  { %8884 = vst [vmem:[#allocation93_spill] sm:$0xff] %v5978_v40  ;;  %v5983_v56 = vpop.eup %4462  ;;  %v5987_v1 = vadd.f32 %v5978_v40, %v5877_v49  ;;  %4102 = vmatprep.subr.bf16.mxu1 %v4101_v63  ;;  %v2019_v28 = vmul.f32 1.442695, %v1946_v21  ;;  %v1962_v41 = vsub.f32 %v1154_v53, %v5538_v60  ;;  %v1089_v38 = vmul.f32 %v5288_v39, %v5494_v44 }
 0x1ad   :  { %8885 = vst [vmem:[#allocation94_spill] sm:$0xff] %v5983_v56  ;;  %v5992_v57 = vpop.eup %4464  ;;  %4478 = vpow2.f32 %v3137_v7  ;;  %v2725_v6 = vmul.f32 1.442695, %v2652_v19  ;;  %v4165_v51 = vpack.c.bf16 %v1156_v34, %v1154_v53  ;;  %v2668_v26 = vsub.f32 %v1156_v34, %v5575_v36 }
 0x1ae   :  { %8886 = vst [vmem:[#allocation95_spill] sm:$0xff] %v5992_v57  ;;  %v5995_v29 = vpop.eup %4466  ;;  %4480 = vpow2.f32 %v3523_v11  ;;  %v2051_v9 = vmul.f32 1.442695, %v1962_v41  ;;  %v1091_v49 = vmul.f32 %v5288_v39, %v5540_v30  ;;  %v1945_v63 = vsub.f32 %v1089_v38, %v5524_v13 }
 0x1af   :  { %8887 = vst [vmem:[#allocation96_spill] sm:$0xff] %v5995_v29  ;;  %v6000_v21 = vpop.eup %4468  ;;  %v6004_v40 = vadd.f32 %v5995_v29, %v5896_v37  ;;  %4482 = vpow2.f32 %v2019_v28  ;;  %4166 = vmatprep.subr.bf16.mxu0 %v4165_v51  ;;  %v2757_v7 = vmul.f32 1.442695, %v2668_v26  ;;  %v1153_v53 = vmul.f32 %v5460_v31, %v5494_v44 }
 0x1b0   :  { %8888 = vst [vmem:[#allocation97_spill] sm:$0xff] %v6000_v21  ;;  %v6008_v19 = vpop.eup %4470  ;;  %v6012_v11 = vadd.f32 %v6000_v21, %v5902_v25  ;;  %4484 = vpow2.f32 %v2725_v6  ;;  %v4103_v34 = vpack.c.bf16 %v1091_v49, %v1089_v38  ;;  %v2017_v41 = vmul.f32 1.442695, %v1945_v63 }
 0x1b1   :  { %8889 = vst [vmem:[#allocation98_spill] sm:$0xff] %v6008_v19  ;;  %4486 = vpow2.f32 %v2051_v9  ;;  %v2651_v61 = vsub.f32 %v1091_v49, %v5570_v4  ;;  %v1155_v37 = vmul.f32 %v5460_v31, %v5540_v30  ;;  %v1961_v28 = vsub.f32 %v1153_v53, %v5524_v13 }
 0x1b2   :  { %v6018_v51 = vpop.eup %4472  ;;  %4488 = vpow2.f32 %v2757_v7  ;;  %4104 = vmatpush1.bf16.msra.mxu1 %v4103_v34  ;;  %v1094_v26 = vmul.f32 %v5446_v17, %v5583_v8  ;;  %v1096_v25 = vmul.f32 %v5446_v17, %v5604_v27  ;;  %v1158_v9 = vmul.f32 %v5456_v18, %v5583_v8 }
 0x1b3   :  { %8890 = vst [vmem:[#allocation99_spill] sm:$0xff] %v6018_v51  ;;  %v6026_v38 = vpop.eup %4474  ;;  %4490 = vpow2.f32 %v2017_v41  ;;  %v2723_v6 = vmul.f32 1.442695, %v2651_v61  ;;  %v4167_v49 = vpack.c.bf16 %v1155_v37, %v1153_v53  ;;  %v2049_v63 = vmul.f32 1.442695, %v1961_v28 }
 0x1b4   :  { %8891 = vst [vmem:[#allocation100_spill] sm:$0xff] %v6026_v38  ;;  %v6028_v21 = vpop.eup %4476  ;;  %v6032_v7 = vadd.f32 %v6026_v38, %v5921_v54  ;;  %v2667_v34 = vsub.f32 %v1155_v37, %v5570_v4  ;;  %v4105_v29 = vpack.c.bf16 %v1096_v25, %v1094_v26  ;;  %v3038_v17 = vsub.f32 %v1094_v26, %v5594_v5 }
 0x1b5   :  { %8892 = vst [vmem:[#allocation101_spill] sm:$0xff] %v6028_v21  ;;  %v6038_v51 = vadd.f32 %v6028_v21, %v5928_v47  ;;  %4492 = vpow2.f32 %v2723_v6  ;;  %4168 = vmatpush1.bf16.msra.mxu0 %v4167_v49  ;;  %v3424_v61 = vsub.f32 %v1096_v25, %v5618_v45  ;;  %v1160_v53 = vmul.f32 %v5456_v18, %v5604_v27 }
 0x1b6   :  { %4494 = vpow2.f32 %v2049_v63  ;;  %v2755_v41 = vmul.f32 1.442695, %v2667_v34  ;;  %4106 = vmatprep.subr.bf16.mxu1 %v4105_v29  ;;  %v3111_v54 = vmul.f32 1.442695, %v3038_v17  ;;  %v3054_v37 = vsub.f32 %v1158_v9, %v5594_v5 }
 0x1b7   :  { %v6044_v28 = vpop.eup %4478  ;;  %v3497_v26 = vmul.f32 1.442695, %v3424_v61  ;;  %v4169_v38 = vpack.c.bf16 %v1160_v53, %v1158_v9  ;;  %v3440_v47 = vsub.f32 %v1160_v53, %v5618_v45  ;;  %v1093_v6 = vmul.f32 %v5288_v39, %v5577_v23 }
 0x1b8   :  { %8893 = vst [vmem:[#allocation102_spill] sm:$0xff] %v6044_v28  ;;  %v6049_v49 = vpop.eup %4480  ;;  %4496 = vpow2.f32 %v2755_v41  ;;  %v3143_v25 = vmul.f32 1.442695, %v3054_v37  ;;  %v1095_v18 = vmul.f32 %v5288_v39, %v5598_v58  ;;  %v1157_v29 = vmul.f32 %v5460_v31, %v5577_v23 }
 0x1b9   :  { %8894 = vst [vmem:[#allocation103_spill] sm:$0xff] %v6049_v49  ;;  %v6055_v63 = vpop.eup %4482  ;;  %4498 = vpow2.f32 %v3111_v54  ;;  %4170 = vmatprep.subr.bf16.mxu0 %v4169_v38  ;;  %v3529_v9 = vmul.f32 1.442695, %v3440_v47  ;;  %v3037_v34 = vsub.f32 %v1093_v6, %v5590_v12  ;;  %v1159_v17 = vmul.f32 %v5460_v31, %v5598_v58 }
 0x1ba   :  { %8895 = vst [vmem:[#allocation104_spill] sm:$0xff] %v6055_v63  ;;  %v6060_v61 = vpop.eup %4484  ;;  %v6064_v53 = vadd.f32 %v6055_v63, %v5947_v42  ;;  %4500 = vpow2.f32 %v3497_v26  ;;  %v4107_v39 = vpack.c.bf16 %v1095_v18, %v1093_v6  ;;  %v3423_v41 = vsub.f32 %v1095_v18, %v5614_v55 }
 0x1bb   :  { %8896 = vst [vmem:[#allocation105_spill] sm:$0xff] %v6060_v61  ;;  %v6067_v37 = vpop.eup %4486  ;;  %v6071_v38 = vadd.f32 %v6060_v61, %v5952_v24  ;;  %4502 = vpow2.f32 %v3143_v25  ;;  %v3109_v54 = vmul.f32 1.442695, %v3037_v34  ;;  %v4171_v47 = vpack.c.bf16 %v1159_v17, %v1157_v29 }
 0x1bc   :  { %8897 = vst [vmem:[#allocation106_spill] sm:$0xff] %v6067_v37  ;;  %v6073_v31 = vpop.eup %4488  ;;  %4504 = vpow2.f32 %v3529_v9  ;;  %4108 = vmatpush1.bf16.msra.mxu1 %v4107_v39  ;;  %v3495_v21 = vmul.f32 1.442695, %v3423_v41  ;;  %v3053_v42 = vsub.f32 %v1157_v29, %v5590_v12  ;;  %v3439_v26 = vsub.f32 %v1159_v17, %v5614_v55 }
 0x1bd   :  { %8898 = vst [vmem:[#allocation107_spill] sm:$0xff] %v6073_v31  ;;  %v6077_v6 = vpop.eup %4490  ;;  %4506 = vpow2.f32 %v3109_v54  ;;  %4172 = vmatpush1.bf16.msra.mxu0 %v4171_v47  ;;  %v1098_v24 = vmul.f32 %v5470_v33, %v5508_v46  ;;  %v1100_v25 = vmul.f32 %v5470_v33, %v5558_v0  ;;  %v1162_v18 = vmul.f32 %v5474_v16, %v5508_v46 }
 0x1be   :  { %8899 = vst [vmem:[#allocation108_spill] sm:$0xff] %v6077_v6  ;;  %v6087_v9 = vadd.f32 %v6077_v6, %v5975_v35  ;;  %4508 = vpow2.f32 %v3495_v21  ;;  %v3141_v29 = vmul.f32 1.442695, %v3053_v42  ;;  %v3527_v34 = vmul.f32 1.442695, %v3439_v26 }
 0x1bf   :  { %v6089_v17 = vpop.eup %4492  ;;  %v4109_v39 = vpack.c.bf16 %v1100_v25, %v1098_v24  ;;  %v1948_v41 = vsub.f32 %v1098_v24, %v5538_v60  ;;  %v2654_v54 = vsub.f32 %v1100_v25, %v5575_v36  ;;  %v1164_v47 = vmul.f32 %v5474_v16, %v5558_v0 }
 0x1c0   :  { %8900 = vst [vmem:[#allocation109_spill] sm:$0xff] %v6089_v17  ;;  %v6095_v61 = vpop.eup %4494  ;;  %v6099_v63 = vadd.f32 %v6089_v17, %v5987_v1  ;;  %4510 = vpow2.f32 %v3141_v29  ;;  %v1964_v35 = vsub.f32 %v1162_v18, %v5538_v60  ;;  %v1097_v21 = vmul.f32 %v5297_v43, %v5494_v44 }
 0x1c1   :  { %8901 = vst [vmem:[#allocation110_spill] sm:$0xff] %v6095_v61  ;;  %4512 = vpow2.f32 %v3527_v34  ;;  %4110 = vmatprep.subr.bf16.mxu1 %v4109_v39  ;;  %v2023_v42 = vmul.f32 1.442695, %v1948_v41  ;;  %v2729_v26 = vmul.f32 1.442695, %v2654_v54  ;;  %v4173_v24 = vpack.c.bf16 %v1164_v47, %v1162_v18  ;;  %v8904_v34 = vld [vmem:[#allocation34_spill] sm:$0xff] }
 0x1c2   :  { %v6104_v25 = vpop.eup %4496  ;;  %v2055_v6 = vmul.f32 1.442695, %v1964_v35  ;;  %v2670_v49 = vsub.f32 %v1164_v47, %v5575_v36  ;;  %v1099_v1 = vmul.f32 %v5297_v43, %v5540_v30  ;;  %v1947_v29 = vsub.f32 %v1097_v21, %v5524_v13 }
 0x1c3   :  { %8902 = vst [vmem:[#allocation111_spill] sm:$0xff] %v6104_v25  ;;  %v6110_v17 = vpop.eup %4498  ;;  %4514 = vpow2.f32 %v2023_v42  ;;  %4174 = vmatprep.subr.bf16.mxu0 %v4173_v24  ;;  %v1161_v39 = vmul.f32 %v8904_v34, %v5494_v44  ;;  %v1163_v18 = vmul.f32 %v8904_v34, %v5540_v30  ;;  %v1102_v41 = vmul.f32 %v5470_v33, %v5583_v8 }
 0x1c4   :  { %8903 = vst [vmem:[#allocation112_spill] sm:$0xff] %v6110_v17  ;;  %v6118_v54 = vpop.eup %4500  ;;  %v6122_v47 = vadd.f32 %v6110_v17, %v6004_v40  ;;  %4516 = vpow2.f32 %v2729_v26  ;;  %v2761_v35 = vmul.f32 1.442695, %v2670_v49  ;;  %v4111_v28 = vpack.c.bf16 %v1099_v1, %v1097_v21 }
 0x1c5   :  { %8905 = vst [vmem:[#allocation34_spill] sm:$0xff] %v6118_v54  ;;  %v6124_v42 = vpop.eup %4502  ;;  %v6128_v24 = vadd.f32 %v6118_v54, %v6012_v11  ;;  %4518 = vpow2.f32 %v2055_v6  ;;  %v2021_v19 = vmul.f32 1.442695, %v1947_v29  ;;  %v2653_v25 = vsub.f32 %v1099_v1, %v5570_v4 }
 0x1c6   :  { %8906 = vst [vmem:[#allocation113_spill] sm:$0xff] %v6124_v42  ;;  %v6131_v57 = vpop.eup %4504  ;;  %4520 = vpow2.f32 %v2761_v35  ;;  %4112 = vmatpush1.bf16.msra.mxu1 %v4111_v28  ;;  %v4175_v61 = vpack.c.bf16 %v1163_v18, %v1161_v39  ;;  %v1963_v40 = vsub.f32 %v1161_v39, %v5524_v13  ;;  %v2669_v49 = vsub.f32 %v1163_v18, %v5570_v4 }
 0x1c7   :  { %8907 = vst [vmem:[#allocation114_spill] sm:$0xff] %v6131_v57  ;;  %v6135_v21 = vpop.eup %4506  ;;  %4522 = vpow2.f32 %v2021_v19  ;;  %v2727_v26 = vmul.f32 1.442695, %v2653_v25  ;;  %v1104_v11 = vmul.f32 %v5470_v33, %v5604_v27  ;;  %v3040_v6 = vsub.f32 %v1102_v41, %v5594_v5  ;;  %v8923_v57 = vld [vmem:[#allocation8_spill] sm:$0xff] }
 0x1c8   :  { %8908 = vst [vmem:[#allocation115_spill] sm:$0xff] %v6135_v21  ;;  %v6140_v29 = vpop.eup %4508  ;;  %v6144_v1 = vadd.f32 %v6135_v21, %v6032_v7  ;;  %4176 = vmatpush1.bf16.msra.mxu0 %v4175_v61  ;;  %v2053_v28 = vmul.f32 1.442695, %v1963_v40  ;;  %v2759_v39 = vmul.f32 1.442695, %v2669_v49  ;;  %v1166_v18 = vmul.f32 %v5474_v16, %v5583_v8 }
 0x1c9   :  { %8909 = vst [vmem:[#allocation116_spill] sm:$0xff] %v6140_v29  ;;  %v6150_v19 = vadd.f32 %v6140_v29, %v6038_v51  ;;  %4524 = vpow2.f32 %v2727_v26  ;;  %v4113_v33 = vpack.c.bf16 %v1104_v11, %v1102_v41  ;;  %v3115_v25 = vmul.f32 1.442695, %v3040_v6 }
 0x1ca   :  { %v6152_v35 = vpop.eup %4510  ;;  %4526 = vpow2.f32 %v2053_v28  ;;  %v3426_v54 = vsub.f32 %v1104_v11, %v5618_v45  ;;  %v1168_v7 = vmul.f32 %v5474_v16, %v5604_v27  ;;  %v3056_v61 = vsub.f32 %v1166_v18, %v5594_v5 }
 0x1cb   :  { %8910 = vst [vmem:[#allocation117_spill] sm:$0xff] %v6152_v35  ;;  %v6158_v40 = vpop.eup %4512  ;;  %4528 = vpow2.f32 %v2759_v39  ;;  %4114 = vmatprep.subr.bf16.mxu1 %v4113_v33  ;;  %v1101_v51 = vmul.f32 %v5297_v43, %v5577_v23  ;;  %v1103_v41 = vmul.f32 %v5297_v43, %v5598_v58  ;;  %v1165_v49 = vmul.f32 %v8904_v34, %v5577_v23 }
 0x1cc   :  { %8911 = vst [vmem:[#allocation118_spill] sm:$0xff] %v6158_v40  ;;  %4530 = vpow2.f32 %v3115_v25  ;;  %v3501_v26 = vmul.f32 1.442695, %v3426_v54  ;;  %v4177_v11 = vpack.c.bf16 %v1168_v7, %v1166_v18  ;;  %v3147_v6 = vmul.f32 1.442695, %v3056_v61 }
 0x1cd   :  { %v6166_v16 = vpop.eup %4514  ;;  %v3442_v28 = vsub.f32 %v1168_v7, %v5618_v45  ;;  %v4115_v29 = vpack.c.bf16 %v1103_v41, %v1101_v51  ;;  %v3039_v39 = vsub.f32 %v1101_v51, %v5590_v12  ;;  %v3425_v33 = vsub.f32 %v1103_v41, %v5614_v55 }
 0x1ce   :  { %8912 = vst [vmem:[#allocation119_spill] sm:$0xff] %v6166_v16  ;;  %v6171_v17 = vpop.eup %4516  ;;  %v6175_v43 = vadd.f32 %v6166_v16, %v6064_v53  ;;  %4532 = vpow2.f32 %v3501_v26  ;;  %4178 = vmatprep.subr.bf16.mxu0 %v4177_v11  ;;  %v1167_v54 = vmul.f32 %v8904_v34, %v5598_v58  ;;  %v3055_v18 = vsub.f32 %v1165_v49, %v5590_v12  ;;  %v8917_v16 = vld [vmem:[#allocation35_spill] sm:$0xff] }
 0x1cf   :  { %8913 = vst [vmem:[#allocation120_spill] sm:$0xff] %v6171_v17  ;;  %v6180_v25 = vpop.eup %4518  ;;  %v6184_v7 = vadd.f32 %v6171_v17, %v6071_v38  ;;  %4534 = vpow2.f32 %v3147_v6  ;;  %v3533_v61 = vmul.f32 1.442695, %v3442_v28  ;;  %4116 = vmatpush1.bf16.msra.mxu1 %v4115_v29  ;;  %v3113_v51 = vmul.f32 1.442695, %v3039_v39  ;;  %v8918_v6 = vld [vmem:[#allocation38_spill] sm:$0xff] }
 0x1d0   :  { %8914 = vst [vmem:[#allocation121_spill] sm:$0xff] %v6180_v25  ;;  %v6186_v41 = vpop.eup %4520  ;;  %v3499_v53 = vmul.f32 1.442695, %v3425_v33  ;;  %v4179_v26 = vpack.c.bf16 %v1167_v54, %v1165_v49  ;;  %v3145_v11 = vmul.f32 1.442695, %v3055_v18  ;;  %v3441_v21 = vsub.f32 %v1167_v54, %v5614_v55 }
 0x1d1   :  { %8915 = vst [vmem:[#allocation122_spill] sm:$0xff] %v6186_v41  ;;  %v6189_v34 = vpop.eup %4522  ;;  %4536 = vpow2.f32 %v3533_v61  ;;  %v1106_v40 = vmul.f32 %v8917_v16, %v5508_v46  ;;  %v1108_v38 = vmul.f32 %v8917_v16, %v5558_v0  ;;  %v1170_v29 = vmul.f32 %v8918_v6, %v5508_v46 }
 0x1d2   :  { %8916 = vst [vmem:[#allocation123_spill] sm:$0xff] %v6189_v34  ;;  %v6199_v28 = vadd.f32 %v6189_v34, %v6087_v9  ;;  %4538 = vpow2.f32 %v3113_v51  ;;  %4180 = vmatpush1.bf16.msra.mxu0 %v4179_v26  ;;  %v3531_v49 = vmul.f32 1.442695, %v3441_v21  ;;  %v1172_v39 = vmul.f32 %v8918_v6, %v5558_v0 }
 0x1d3   :  { %v6203_v33 = vpop.eup %4524  ;;  %4540 = vpow2.f32 %v3499_v53  ;;  %v4117_v54 = vpack.c.bf16 %v1108_v38, %v1106_v40  ;;  %v1950_v18 = vsub.f32 %v1106_v40, %v5538_v60  ;;  %v2656_v61 = vsub.f32 %v1108_v38, %v5575_v36 }
 0x1d4   :  { %8919 = vst [vmem:[#allocation35_spill] sm:$0xff] %v6203_v33  ;;  %v6207_v17 = vpop.eup %4526  ;;  %v6211_v9 = vadd.f32 %v6203_v33, %v6099_v63  ;;  %4542 = vpow2.f32 %v3145_v11  ;;  %v4181_v51 = vpack.c.bf16 %v1172_v39, %v1170_v29  ;;  %v1966_v21 = vsub.f32 %v1170_v29, %v5538_v60  ;;  %v8924_v29 = vld [vmem:[#allocation39_spill] sm:$0xff] }
 0x1d5   :  { %8920 = vst [vmem:[#allocation38_spill] sm:$0xff] %v6207_v17  ;;  %v6214_v26 = vpop.eup %4528  ;;  %4544 = vpow2.f32 %v3531_v49  ;;  %4118 = vmatprep.subr.bf16.mxu1 %v4117_v54  ;;  %v2027_v53 = vmul.f32 1.442695, %v1950_v18  ;;  %v2733_v34 = vmul.f32 1.442695, %v2656_v61  ;;  %v2672_v40 = vsub.f32 %v1172_v39, %v5575_v36 }
 0x1d6   :  { %8921 = vst [vmem:[#allocation124_spill] sm:$0xff] %v6214_v26  ;;  %v6217_v35 = vpop.eup %4530  ;;  %4182 = vmatprep.subr.bf16.mxu0 %v4181_v51  ;;  %v2059_v38 = vmul.f32 1.442695, %v1966_v21  ;;  %v1105_v63 = vmul.f32 %v8923_v57, %v5494_v44  ;;  %v1107_v11 = vmul.f32 %v8923_v57, %v5540_v30  ;;  %v1169_v33 = vmul.f32 %v8924_v29, %v5494_v44 }
 0x1d7   :  { %8922 = vst [vmem:[#allocation125_spill] sm:$0xff] %v6217_v35  ;;  %v6227_v49 = vadd.f32 %v6217_v35, %v6122_v47  ;;  %4546 = vpow2.f32 %v2027_v53  ;;  %v2765_v54 = vmul.f32 1.442695, %v2672_v40  ;;  %v1171_v39 = vmul.f32 %v8924_v29, %v5540_v30 }
 0x1d8   :  { %v6231_v18 = vpop.eup %4532  ;;  %4548 = vpow2.f32 %v2733_v34  ;;  %v4119_v61 = vpack.c.bf16 %v1107_v11, %v1105_v63  ;;  %v1949_v51 = vsub.f32 %v1105_v63, %v5524_v13  ;;  %v2655_v21 = vsub.f32 %v1107_v11, %v5570_v4 }
 0x1d9   :  { %8925 = vst [vmem:[#allocation8_spill] sm:$0xff] %v6231_v18  ;;  %v6235_v42 = vpop.eup %4534  ;;  %v6239_v26 = vadd.f32 %v6231_v18, %v6128_v24  ;;  %4550 = vpow2.f32 %v2059_v38  ;;  %v4183_v47 = vpack.c.bf16 %v1171_v39, %v1169_v33  ;;  %v1965_v53 = vsub.f32 %v1169_v33, %v5524_v13 }
 0x1da   :  { %8926 = vst [vmem:[#allocation39_spill] sm:$0xff] %v6235_v42  ;;  %4552 = vpow2.f32 %v2765_v54  ;;  %4120 = vmatpush1.bf16.msra.mxu1 %v4119_v61  ;;  %v2025_v40 = vmul.f32 1.442695, %v1949_v51  ;;  %v2731_v35 = vmul.f32 1.442695, %v2655_v21  ;;  %v2671_v34 = vsub.f32 %v1171_v39, %v5570_v4 }
 0x1db   :  { %v6243_v17 = vpop.eup %4536  ;;  %4184 = vmatpush1.bf16.msra.mxu0 %v4183_v47  ;;  %v2057_v63 = vmul.f32 1.442695, %v1965_v53  ;;  %v1110_v11 = vmul.f32 %v8917_v16, %v5583_v8  ;;  %v1112_v24 = vmul.f32 %v8917_v16, %v5604_v27  ;;  %v1174_v38 = vmul.f32 %v8918_v6, %v5583_v8 }
 0x1dc   :  { %8927 = vst [vmem:[#allocation126_spill] sm:$0xff] %v6243_v17  ;;  %v6251_v33 = vpop.eup %4538  ;;  %4554 = vpow2.f32 %v2025_v40  ;;  %v2763_v54 = vmul.f32 1.442695, %v2671_v34  ;;  %v1176_v39 = vmul.f32 %v8918_v6, %v5604_v27  ;;  %v1109_v61 = vmul.f32 %v8923_v57, %v5577_v23  ;;  %v8942_v17 = vld [vmem:[#allocation7_spill] sm:$0xff] }
 0x1dd   :  { %8928 = vst [vmem:[#allocation127_spill] sm:$0xff] %v6251_v33  ;;  %v6257_v51 = vpop.eup %4540  ;;  %v6261_v21 = vadd.f32 %v6251_v33, %v6144_v1  ;;  %4556 = vpow2.f32 %v2731_v35  ;;  %v4121_v16 = vpack.c.bf16 %v1112_v24, %v1110_v11  ;;  %v3042_v47 = vsub.f32 %v1110_v11, %v5594_v5 }
 0x1de   :  { %8929 = vst [vmem:[#allocation128_spill] sm:$0xff] %v6257_v51  ;;  %v6264_v53 = vpop.eup %4542  ;;  %v6268_v40 = vadd.f32 %v6257_v51, %v6150_v19  ;;  %4558 = vpow2.f32 %v2057_v63  ;;  %v3428_v6 = vsub.f32 %v1112_v24, %v5618_v45  ;;  %v4185_v34 = vpack.c.bf16 %v1176_v39, %v1174_v38 }
 0x1df   :  { %8930 = vst [vmem:[#allocation129_spill] sm:$0xff] %v6264_v53  ;;  %v6271_v18 = vpop.eup %4544  ;;  %4560 = vpow2.f32 %v2763_v54  ;;  %4122 = vmatprep.subr.bf16.mxu1 %v4121_v16  ;;  %v3119_v1 = vmul.f32 1.442695, %v3042_v47  ;;  %v3058_v35 = vsub.f32 %v1174_v38, %v5594_v5  ;;  %v3444_v33 = vsub.f32 %v1176_v39, %v5618_v45 }
 0x1e0   :  { %8931 = vst [vmem:[#allocation130_spill] sm:$0xff] %v6271_v18  ;;  %v3505_v11 = vmul.f32 1.442695, %v3428_v6  ;;  %4186 = vmatprep.subr.bf16.mxu0 %v4185_v34  ;;  %v1111_v53 = vmul.f32 %v8923_v57, %v5598_v58  ;;  %v3041_v19 = vsub.f32 %v1109_v61, %v5590_v12  ;;  %v1173_v63 = vmul.f32 %v8924_v29, %v5577_v23 }
 0x1e1   :  { %v6280_v24 = vpop.eup %4546  ;;  %4562 = vpow2.f32 %v3119_v1  ;;  %v3151_v54 = vmul.f32 1.442695, %v3058_v35  ;;  %v3537_v16 = vmul.f32 1.442695, %v3444_v33  ;;  %v1175_v38 = vmul.f32 %v8924_v29, %v5598_v58 }
 0x1e2   :  { %8932 = vst [vmem:[#allocation131_spill] sm:$0xff] %v6280_v24  ;;  %v6284_v47 = vpop.eup %4548  ;;  %v6288_v39 = vadd.f32 %v6280_v24, %v6175_v43  ;;  %4564 = vpow2.f32 %v3505_v11  ;;  %v4123_v57 = vpack.c.bf16 %v1111_v53, %v1109_v61  ;;  %v3117_v6 = vmul.f32 1.442695, %v3041_v19  ;;  %v8936_v61 = vld [vmem:[#allocation36_spill] sm:$0xff] }
 0x1e3   :  { %8933 = vst [vmem:[#allocation132_spill] sm:$0xff] %v6284_v47  ;;  %v6290_v34 = vpop.eup %4550  ;;  %v6294_v51 = vadd.f32 %v6284_v47, %v6184_v7  ;;  %4566 = vpow2.f32 %v3151_v54  ;;  %v3427_v33 = vsub.f32 %v1111_v53, %v5614_v55  ;;  %v4187_v1 = vpack.c.bf16 %v1175_v38, %v1173_v63  ;;  %v8937_v54 = vld [vmem:[#allocation11_spill] sm:$0xff] }
 0x1e4   :  { %8934 = vst [vmem:[#allocation133_spill] sm:$0xff] %v6290_v34  ;;  %v6297_v29 = vpop.eup %4552  ;;  %4568 = vpow2.f32 %v3537_v16  ;;  %4124 = vmatpush1.bf16.msra.mxu1 %v4123_v57  ;;  %v3057_v43 = vsub.f32 %v1173_v63, %v5590_v12  ;;  %v3443_v35 = vsub.f32 %v1175_v38, %v5614_v55  ;;  %v1114_v11 = vmul.f32 %v8936_v61, %v5508_v46  ;;  %v8939_v38 = vld [vmem:[#allocation37_spill] sm:$0xff] }
 0x1e5   :  { %8935 = vst [vmem:[#allocation134_spill] sm:$0xff] %v6297_v29  ;;  %4570 = vpow2.f32 %v3117_v6  ;;  %v3503_v19 = vmul.f32 1.442695, %v3427_v33  ;;  %4188 = vmatpush1.bf16.msra.mxu0 %v4187_v1  ;;  %v1116_v7 = vmul.f32 %v8936_v61, %v5558_v0  ;;  %v636_v53 = vcombine.high %v8937_v54, %v8937_v54 }
 0x1e6   :  { %v6307_v47 = vpop.eup %4554  ;;  %v3149_v16 = vmul.f32 1.442695, %v3057_v43  ;;  %v3535_v57 = vmul.f32 1.442695, %v3443_v35  ;;  %v1952_v63 = vsub.f32 %v1114_v11, %v5538_v60  ;;  %v1113_v24 = vmul.f32 %v8939_v38, %v5494_v44 }
 0x1e7   :  { %8938 = vst [vmem:[#allocation36_spill] sm:$0xff] %v6307_v47  ;;  %v6312_v18 = vpop.eup %4556  ;;  %v6316_v6 = vadd.f32 %v6307_v47, %v6199_v28  ;;  %4572 = vpow2.f32 %v3503_v19  ;;  %v4125_v33 = vpack.c.bf16 %v1116_v7, %v1114_v11  ;;  %v2658_v1 = vsub.f32 %v1116_v7, %v5575_v36 }
 0x1e8   :  { %8940 = vst [vmem:[#allocation11_spill] sm:$0xff] %v6312_v18  ;;  %v6319_v54 = vpop.eup %4558  ;;  %v6323_v43 = vadd.f32 %v6312_v18, %v6211_v9  ;;  %4574 = vpow2.f32 %v3149_v16  ;;  %v2031_v35 = vmul.f32 1.442695, %v1952_v63  ;;  %v864_v42 = vrot.slane %v636_v53, %v8942_v17  ;;  %v8944_v18 = vld [vmem:[#allocation6_spill] sm:$0xff] }
 0x1e9   :  { %8941 = vst [vmem:[#allocation37_spill] sm:$0xff] %v6319_v54  ;;  %v6326_v29 = vpop.eup %4560  ;;  %4576 = vpow2.f32 %v3535_v57  ;;  %4126 = vmatprep.subr.bf16.mxu1 %v4125_v33  ;;  %v2737_v28 = vmul.f32 1.442695, %v2658_v1  ;;  %v1115_v11 = vmul.f32 %v8939_v38, %v5540_v30  ;;  %v1951_v19 = vsub.f32 %v1113_v24, %v5524_v13 }
 0x1ea   :  { %8943 = vst [vmem:[#allocation135_spill] sm:$0xff] %v6326_v29  ;;  %4578 = vpow2.f32 %v2031_v35  ;;  %v1178_v7 = vmul.f32 %v864_v42, %v5508_v46  ;;  %v1180_v9 = vmul.f32 %v864_v42, %v5558_v0  ;;  %v6334_v16 = vrot.slane %v636_v53, %v8944_v18 }
 0x1eb   :  { %v6336_v63 = vpop.eup %4562  ;;  %4580 = vpow2.f32 %v2737_v28  ;;  %v4127_v47 = vpack.c.bf16 %v1115_v11, %v1113_v24  ;;  %v2029_v57 = vmul.f32 1.442695, %v1951_v19  ;;  %v2657_v33 = vsub.f32 %v1115_v11, %v5570_v4 }
 0x1ec   :  { %8945 = vst [vmem:[#allocation136_spill] sm:$0xff] %v6336_v63  ;;  %v6339_v1 = vpop.eup %4564  ;;  %v6343_v29 = vadd.f32 %v6336_v63, %v6227_v49  ;;  %v4189_v35 = vpack.c.bf16 %v1180_v9, %v1178_v7  ;;  %v1968_v54 = vsub.f32 %v1178_v7, %v5538_v60  ;;  %v2674_v34 = vsub.f32 %v1180_v9, %v5575_v36 }
 0x1ed   :  { %8946 = vst [vmem:[#allocation137_spill] sm:$0xff] %v6339_v1  ;;  %v6347_v53 = vpop.eup %4566  ;;  %v6351_v28 = vadd.f32 %v6339_v1, %v6239_v26  ;;  %4128 = vmatpush1.bf16.msra.mxu1 %v4127_v47  ;;  %4582 = vpow2.f32 %v2029_v57  ;;  %v2735_v24 = vmul.f32 1.442695, %v2657_v33  ;;  %v1177_v11 = vmul.f32 %v6334_v16, %v5494_v44 }
 0x1ee   :  { %8947 = vst [vmem:[#allocation138_spill] sm:$0xff] %v6347_v53  ;;  %v6355_v19 = vpop.eup %4568  ;;  %4190 = vmatprep.subr.bf16.mxu0 %v4189_v35  ;;  %v2063_v49 = vmul.f32 1.442695, %v1968_v54  ;;  %v2769_v63 = vmul.f32 1.442695, %v2674_v34  ;;  %v1179_v7 = vmul.f32 %v6334_v16, %v5540_v30  ;;  %v1118_v9 = vmul.f32 %v8936_v61, %v5583_v8 }
 0x1ef   :  { %8948 = vst [vmem:[#allocation139_spill] sm:$0xff] %v6355_v19  ;;  %v6361_v18 = vpop.eup %4570  ;;  %4584 = vpow2.f32 %v2735_v24  ;;  %v1967_v26 = vsub.f32 %v1177_v11, %v5524_v13  ;;  %v1120_v47 = vmul.f32 %v8936_v61, %v5604_v27  ;;  %v1182_v57 = vmul.f32 %v864_v42, %v5583_v8 }
 0x1f0   :  { %8949 = vst [vmem:[#allocation140_spill] sm:$0xff] %v6361_v18  ;;  %v6369_v54 = vadd.f32 %v6361_v18, %v6261_v21  ;;  %4586 = vpow2.f32 %v2063_v49  ;;  %v4191_v34 = vpack.c.bf16 %v1179_v7, %v1177_v11  ;;  %v2673_v33 = vsub.f32 %v1179_v7, %v5570_v4 }
 0x1f1   :  { %v6372_v35 = vpop.eup %4572  ;;  %4588 = vpow2.f32 %v2769_v63  ;;  %v2061_v1 = vmul.f32 1.442695, %v1967_v26  ;;  %v4129_v24 = vpack.c.bf16 %v1120_v47, %v1118_v9  ;;  %v3044_v19 = vsub.f32 %v1118_v9, %v5594_v5 }
 0x1f2   :  { %8950 = vst [vmem:[#allocation141_spill] sm:$0xff] %v6372_v35  ;;  %v6375_v53 = vpop.eup %4574  ;;  %v6379_v61 = vadd.f32 %v6372_v35, %v6268_v40  ;;  %4192 = vmatpush1.bf16.msra.mxu0 %v4191_v34  ;;  %v2767_v21 = vmul.f32 1.442695, %v2673_v33  ;;  %v3430_v49 = vsub.f32 %v1120_v47, %v5618_v45  ;;  %v1184_v11 = vmul.f32 %v864_v42, %v5604_v27 }
 0x1f3   :  { %8951 = vst [vmem:[#allocation142_spill] sm:$0xff] %v6375_v53  ;;  %v6383_v7 = vpop.eup %4576  ;;  %4590 = vpow2.f32 %v2061_v1  ;;  %4130 = vmatprep.subr.bf16.mxu1 %v4129_v24  ;;  %v3123_v63 = vmul.f32 1.442695, %v3044_v19  ;;  %v3060_v26 = vsub.f32 %v1182_v57, %v5594_v5  ;;  %v1117_v9 = vmul.f32 %v8939_v38, %v5577_v23 }
 0x1f4   :  { %8952 = vst [vmem:[#allocation143_spill] sm:$0xff] %v6383_v7  ;;  %v6388_v18 = vpop.eup %4578  ;;  %4592 = vpow2.f32 %v2767_v21  ;;  %v3509_v40 = vmul.f32 1.442695, %v3430_v49  ;;  %v4193_v34 = vpack.c.bf16 %v1184_v11, %v1182_v57  ;;  %v3446_v33 = vsub.f32 %v1184_v11, %v5618_v45 }
 0x1f5   :  { %v6391_v47 = vpop.eup %4580  ;;  %v2166_v42 = vadd.f32 %v6388_v18, %v6288_v39  ;;  %4594 = vpow2.f32 %v3123_v63  ;;  %v3155_v1 = vmul.f32 1.442695, %v3060_v26  ;;  %v1119_v19 = vmul.f32 %v8939_v38, %v5598_v58 }
 0x1f6   :  { %v2872_v24 = vadd.f32 %v6391_v47, %v6294_v51  ;;  %4596 = vpow2.f32 %v3509_v40  ;;  %4194 = vmatprep.subr.bf16.mxu0 %v4193_v34  ;;  %v3541_v21 = vmul.f32 1.442695, %v3446_v33  ;;  %v3043_v57 = vsub.f32 %v1117_v9, %v5590_v12 }
 0x1f7   :  { %v6400_v49 = vpop.eup %4582  ;;  %v2167_v11 = vadd.f32 %v5637_v52, %v2166_v42  ;;  %4598 = vpow2.f32 %v3155_v1  ;;  %v4131_v35 = vpack.c.bf16 %v1119_v19, %v1117_v9  ;;  %v3429_v39 = vsub.f32 %v1119_v19, %v5614_v55 }
 0x1f8   :  { %v2873_v63 = vadd.f32 %v5655_v50, %v2872_v24  ;;  %v2135_v38 = vadd.f32 %v6400_v49, %v6316_v6  ;;  %4600 = vpow2.f32 %v3541_v21  ;;  %v3121_v51 = vmul.f32 1.442695, %v3043_v57 }
 0x1f9   :  { %v6407_v26 = vpop.eup %4584  ;;  %v2168_v40 = vadd.f32 %v5731_v32, %v2167_v11  ;;  %4132 = vmatpush1.bf16.msra.mxu1 %v4131_v35  ;;  %v3507_v34 = vmul.f32 1.442695, %v3429_v39  ;;  %v1181_v33 = vmul.f32 %v6334_v16, %v5577_v23  ;;  %v1183_v9 = vmul.f32 %v6334_v16, %v5598_v58 }
 0x1fa   :  { %v6414_v42 = vpop.eup %4586  ;;  %v2874_v1 = vadd.f32 %v5738_v10, %v2873_v63  ;;  %v2136_v6 = vadd.f32 %v5662_v20, %v2135_v38  ;;  %v2841_v19 = vadd.f32 %v6407_v26, %v6323_v43  ;;  %4602 = vpow2.f32 %v3121_v51 }
 0x1fb   :  { %8953 = vst [vmem:[#allocation144_spill] sm:$0xff] %v6414_v42  ;;  %v6420_v24 = vpop.eup %4588  ;;  %v2169_v35 = vadd.f32 %v5837_v14, %v2168_v40  ;;  %4604 = vpow2.f32 %v3507_v34  ;;  %v4195_v21 = vpack.c.bf16 %v1183_v9, %v1181_v33  ;;  %v3059_v57 = vsub.f32 %v1181_v33, %v5590_v12  ;;  %v8956_v40 = vld [vmem:[#allocation9_spill] sm:$0xff]  ;;  %v81_v33 = vld [vmem:[%s8491_s2 + $0x10] sm:$0xff] }
 0x1fc   :  { %8954 = vst [vmem:[#allocation145_spill] sm:$0xff] %v6420_v24  ;;  %v2875_v16 = vadd.f32 %v5847_v59, %v2874_v1  ;;  %v2137_v11 = vadd.f32 %v5756_v22, %v2136_v6  ;;  %v2842_v39 = vadd.f32 %v5667_v15, %v2841_v19  ;;  %v3445_v63 = vsub.f32 %v1183_v9, %v5614_v55  ;;  %v8957_v1 = vld [vmem:[#allocation18_spill] sm:$0xff] }
 0x1fd   :  { %v6428_v38 = vpop.eup %4590  ;;  %v2170_v43 = vadd.f32 %v5955_v48, %v2169_v35  ;;  %4196 = vmatpush1.bf16.msra.mxu0 %v4195_v21  ;;  %v3153_v51 = vmul.f32 1.442695, %v3059_v57  ;;  %v6433_v34 = vrot.slane %v8956_v40, %v8942_v17  ;;  %v6440_v6 = vmul.f32 %v8957_v1, %v5494_v44  ;;  %v8959_v21 = vld [vmem:[#allocation63_spill] sm:$0xff]  ;;  %v90_v40 = vld [vmem:[%s8491_s2 + $0x58] sm:$0xff] }
 0x1fe   :  { %8955 = vst [vmem:[#allocation146_spill] sm:$0xff] %v6428_v38  ;;  %v6442_v19 = vpop.eup %4592  ;;  %v2876_v9 = vadd.f32 %v5963_v3, %v2875_v16  ;;  %v2138_v35 = vadd.f32 %v5873_v2, %v2137_v11  ;;  %v2843_v57 = vadd.f32 %v8959_v21, %v2842_v39  ;;  %v3539_v59 = vmul.f32 1.442695, %v3445_v63 }
 0x1ff   :  { %8958 = vst [vmem:[#allocation9_spill] sm:$0xff] %v6442_v19  ;;  %v6450_v10 = vpop.eup %4594  ;;  %v2171_v50 = vadd.f32 %v6067_v37, %v2170_v43  ;;  %4606 = vpow2.f32 %v3153_v51  ;;  %v1186_v15 = vmul.f32 %v6433_v34, %v5508_v46  ;;  %v1188_v16 = vmul.f32 %v6433_v34, %v5558_v0 }
 0x200   :  { %v6457_v3 = vpop.eup %4596  ;;  %v2877_v11 = vadd.f32 %v6073_v31, %v2876_v9  ;;  %v2844_v39 = vadd.f32 %v5880_v62, %v2843_v57  ;;  %v2139_v63 = vadd.f32 %v5983_v56, %v2138_v35  ;;  %v3258_v21 = vadd.f32 %v6450_v10, %v6343_v29  ;;  %1467 = vmatmul.mubr.f32.vlgmr.msra.gmra.mrb[0].mxu0 %v81_v33  ;;  %v89_v9 = vld [vmem:[%s8491_s2 + $0x50] sm:$0xff]  ;;  %v8962_v29 = vld [vmem:[#allocation110_spill] sm:$0xff] }
 0x201   :  { %v6464_v43 = vpop.eup %4598  ;;  %v2172_v51 = vadd.f32 %v6180_v25, %v2171_v50  ;;  %v3644_v37 = vadd.f32 %v6457_v3, %v6351_v28  ;;  %4608 = vpow2.f32 %v3539_v59  ;;  %v4197_v48 = vpack.c.bf16 %v1188_v16, %v1186_v15  ;;  %1472 = vmatprep.mubr.f32.mxu0 %v90_v40  ;;  %v8963_v31 = vld [vmem:[#allocation95_spill] sm:$0xff]  ;;  %v8964_v56 = vld [vmem:[#allocation50_spill] sm:$0xff]  ;;  %v98_v59 = vld [vmem:[%s8491_s2 + $0x98] sm:$0xff] }
 0x202   :  { %8960 = vst [vmem:[#allocation18_spill] sm:$0xff] %v6464_v43  ;;  %v6472_v57 = vpop.eup %4600  ;;  %v2878_v35 = vadd.f32 %v6186_v41, %v2877_v11  ;;  %v2140_v33 = vadd.f32 %v8962_v29, %v2139_v63  ;;  %v2845_v62 = vadd.f32 %v8963_v31, %v2844_v39  ;;  %v3259_v50 = vadd.f32 %v8964_v56, %v3258_v21  ;;  %v8965_v28 = vld [vmem:[#allocation133_spill] sm:$0xff]  ;;  %v8966_v25 = vld [vmem:[#allocation51_spill] sm:$0xff]  ;;  %v8967_v63 = vld [vmem:[#allocation134_spill] sm:$0xff] }
 0x203   :  { %8961 = vst [vmem:[#allocation147_spill] sm:$0xff] %v6472_v57  ;;  %v2173_v40 = vadd.f32 %v8965_v28, %v2172_v51  ;;  %v3645_v14 = vadd.f32 %v8966_v25, %v3644_v37  ;;  %4198 = vmatprep.subr.bf16.mxu0 %v4197_v48  ;;  %v1970_v2 = vsub.f32 %v1186_v15, %v5538_v60  ;;  %v8968_v39 = vld [vmem:[#allocation38_spill] sm:$0xff]  ;;  %v8969_v21 = vld [vmem:[#allocation111_spill] sm:$0xff] }
 0x204   :  { %v2676_v32 = vsub.f32 %v1188_v16, %v5575_v36  ;;  %v6485_v11 = vpop.eup %4602  ;;  %v2879_v41 = vadd.f32 %v8967_v63, %v2878_v35  ;;  %v2141_v31 = vadd.f32 %v8968_v39, %v2140_v33  ;;  %v2846_v56 = vadd.f32 %v8969_v21, %v2845_v62  ;;  %v8970_v29 = vld [vmem:[#allocation66_spill] sm:$0xff]  ;;  %1473 = vmatmul.mubr.f32.gmra.mrb[2].mxu0 %v89_v9  ;;  %v8971_v48 = vld [vmem:[#allocation67_spill] sm:$0xff]  ;;  %v8972_v9 = vld [vmem:[#allocation37_spill] sm:$0xff] }
 0x205   :  { %v3260_v22 = vadd.f32 %v8970_v29, %v3259_v50  ;;  %v6491_v52 = vpop.eup %4604  ;;  %v6494_v37 = vadd.f32 %v6414_v42, %v2173_v40  ;;  %v3646_v15 = vadd.f32 %v8971_v48, %v3645_v14  ;;  %v3227_v16 = vadd.f32 %v6485_v11, %v6369_v54  ;;  %1478 = vmatprep.mubr.f32.mxu0 %v98_v59  ;;  %v97_v35 = vld [vmem:[%s8491_s2 + $0x90] sm:$0xff]  ;;  %v8973_v50 = vld [vmem:[#allocation124_spill] sm:$0xff]  ;;  %v8974_v40 = vld [vmem:[#allocation82_spill] sm:$0xff] }
 0x206   :  { %v2067_v51 = vmul.f32 1.442695, %v1970_v2  ;;  %v6503_v62 = vadd.f32 %v6420_v24, %v2879_v41  ;;  %v2142_v33 = vadd.f32 %v8972_v9, %v2141_v31  ;;  %v2847_v25 = vadd.f32 %v8973_v50, %v2846_v56  ;;  %v106_v14 = vld [vmem:[%s8491_s2 + $0xd8] sm:$0xff]  ;;  %v8975_v54 = vld [vmem:[#allocation83_spill] sm:$0xff]  ;;  %v8976_v59 = vld [vmem:[#allocation54_spill] sm:$0xff] }
 0x207   :  { %v3261_v29 = vadd.f32 %v8974_v40, %v3260_v22  ;;  %v3647_v2 = vadd.f32 %v8975_v54, %v3646_v15  ;;  %v3228_v48 = vadd.f32 %v8976_v59, %v3227_v16  ;;  %v3613_v63 = vadd.f32 %v6491_v52, %v6379_v61  ;;  %v8977_v31 = vld [vmem:[#allocation135_spill] sm:$0xff]  ;;  %v8978_v56 = vld [vmem:[#allocation98_spill] sm:$0xff] }
 0x208   :  { %4610 = vpow2.f32 %v2067_v51  ;;  %v6516_v41 = vadd.f32 %v6428_v38, %v2142_v33  ;;  %v2848_v24 = vadd.f32 %v8977_v31, %v2847_v25  ;;  %v2773_v22 = vmul.f32 1.442695, %v2676_v32  ;;  %1479 = vmatmul.mubr.f32.gmra.mrb[4].mxu0 %v97_v35  ;;  %v8980_v21 = vld [vmem:[#allocation99_spill] sm:$0xff]  ;;  %v8981_v15 = vld [vmem:[#allocation70_spill] sm:$0xff]  ;;  %v8983_v32 = vld [vmem:[#allocation113_spill] sm:$0xff] }
 0x209   :  { %v3262_v50 = vadd.f32 %v8978_v56, %v3261_v29  ;;  %v6520_v40 = vpop.eup %4606  ;;  %v3648_v42 = vadd.f32 %v8980_v21, %v3647_v2  ;;  %v3229_v54 = vadd.f32 %v8981_v15, %v3228_v48  ;;  %v8982_v16 = vld [vmem:[#allocation55_spill] sm:$0xff]  ;;  %v1187_v61 = vmul.f32 %v8957_v1, %v5540_v30  ;;  %1484 = vmatprep.mubr.f32.mxu0 %v106_v14  ;;  %v8986_v2 = vld [vmem:[#allocation86_spill] sm:$0xff] }
 0x20a   :  { %8979 = vst [vmem:[#allocation148_spill] sm:$0xff] %v6520_v40  ;;  %v3614_v59 = vadd.f32 %v8982_v16, %v3613_v63  ;;  %v105_v25 = vld [vmem:[%s8491_s2 + $0xd0] sm:$0xff]  ;;  %v6531_v29 = vadd.f32 %v6442_v19, %v2848_v24  ;;  %4612 = vpow2.f32 %v2773_v22  ;;  %v1969_v35 = vsub.f32 %v6440_v6, %v5524_v13  ;;  %v8985_v63 = vld [vmem:[#allocation114_spill] sm:$0xff] }
 0x20b   :  { %v3263_v51 = vadd.f32 %v8983_v32, %v3262_v50  ;;  %v6536_v48 = vpop.eup %4608  ;;  %v3649_v33 = vadd.f32 %v8985_v63, %v3648_v42  ;;  %v3230_v21 = vadd.f32 %v8986_v2, %v3229_v54  ;;  %v8987_v14 = vld [vmem:[#allocation71_spill] sm:$0xff]  ;;  %v4199_v56 = vpack.c.bf16 %v1187_v61, %v6440_v6  ;;  %v84_v24 = vld [vmem:[%s8491_s2 + $0x28] sm:$0xff] }
 0x20c   :  { %8984 = vst [vmem:[#allocation149_spill] sm:$0xff] %v6536_v48  ;;  %v3615_v16 = vadd.f32 %v8987_v14, %v3614_v59  ;;  %v8988_v15 = vld [vmem:[#allocation39_spill] sm:$0xff]  ;;  %v2065_v22 = vmul.f32 1.442695, %v1969_v35  ;;  %v2675_v32 = vsub.f32 %v1187_v61, %v5570_v4  ;;  %v1190_v19 = vmul.f32 %v6433_v34, %v5583_v8  ;;  %1485 = vmatmul.mubr.f32.gmra.mrb[6].mxu0 %v105_v25  ;;  %v8989_v42 = vld [vmem:[#allocation126_spill] sm:$0xff]  ;;  %v8994_v25 = vld [vmem:[#allocation117_spill] sm:$0xff] }
 0x20d   :  { %v3264_v50 = vadd.f32 %v8988_v15, %v3263_v51  ;;  %v3650_v63 = vadd.f32 %v8989_v42, %v3649_v33  ;;  %v8990_v54 = vld [vmem:[#allocation87_spill] sm:$0xff]  ;;  %v8991_v59 = vld [vmem:[#allocation102_spill] sm:$0xff]  ;;  %4200 = vmatpush1.bf16.msra.mxu0 %v4199_v56  ;;  %v1192_v6 = vmul.f32 %v6433_v34, %v5604_v27  ;;  %1555 = vmatprep.mubr.f32.mxu0 %v84_v24 }
 0x20e   :  { %v3616_v2 = vadd.f32 %v8990_v54, %v3615_v16  ;;  %v3231_v14 = vadd.f32 %v8991_v59, %v3230_v21  ;;  %v8992_v31 = vld [vmem:[#allocation138_spill] sm:$0xff]  ;;  %4614 = vpow2.f32 %v2065_v22  ;;  %v2771_v51 = vmul.f32 1.442695, %v2675_v32  ;;  %v8993_v35 = vld [vmem:[#allocation139_spill] sm:$0xff] }
 0x20f   :  { %v3265_v38 = vadd.f32 %v8992_v31, %v3264_v50  ;;  %v3062_v61 = vsub.f32 %v1190_v19, %v5594_v5  ;;  %v3651_v15 = vadd.f32 %v8993_v35, %v3650_v63  ;;  %v8995_v33 = vld [vmem:[#allocation103_spill] sm:$0xff]  ;;  %v4201_v16 = vpack.c.bf16 %v1192_v6, %v1190_v19  ;;  %v8997_v50 = vld [vmem:[#allocation129_spill] sm:$0xff]  ;;  %v8998_v22 = vld [vmem:[#allocation118_spill] sm:$0xff] }
 0x210   :  { %v3232_v28 = vadd.f32 %v8994_v25, %v3231_v14  ;;  %v3617_v42 = vadd.f32 %v8995_v33, %v3616_v2  ;;  %4616 = vpow2.f32 %v2771_v51  ;;  %v3448_v34 = vsub.f32 %v1192_v6, %v5618_v45  ;;  %v8999_v6 = vld [vmem:[#allocation130_spill] sm:$0xff] }
 0x211   :  { %v3266_v21 = vadd.f32 %v6464_v43, %v3265_v38  ;;  %v3159_v56 = vmul.f32 1.442695, %v3062_v61  ;;  %v6564_v32 = vadd.f32 %v6472_v57, %v3651_v15  ;;  %4202 = vmatprep.subr.bf16.mxu0 %v4201_v16  ;;  %v1189_v2 = vmul.f32 %v8957_v1, %v5577_v23 }
 0x212   :  { %v6561_v54 = vpop.eup %4610  ;;  %v3233_v24 = vadd.f32 %v8997_v50, %v3232_v28  ;;  %v3618_v63 = vadd.f32 %v8998_v22, %v3617_v42  ;;  %v3545_v19 = vmul.f32 1.442695, %v3448_v34  ;;  %v1191_v14 = vmul.f32 %v8957_v1, %v5598_v58  ;;  %v9000_v42 = vld [vmem:[#allocation15_spill] sm:$0xff] }
 0x213   :  { %8996 = vst [vmem:[#allocation150_spill] sm:$0xff] %v6561_v54  ;;  %v6572_v38 = vadd.f32 %v6561_v54, %v6494_v37  ;;  %4618 = vpow2.f32 %v3159_v56  ;;  %v3061_v28 = vsub.f32 %v1189_v2, %v5590_v12  ;;  %v880_v61 = vrot.slane %v9000_v42, %v8942_v17  ;;  %v9002_v56 = vld [vmem:[#allocation21_spill] sm:$0xff] }
 0x214   :  { %v3234_v15 = vadd.f32 %v6375_v53, %v3233_v24  ;;  %v3619_v51 = vadd.f32 %v8999_v6, %v3618_v63  ;;  %v6581_v16 = vpop.eup %4612  ;;  %4620 = vpow2.f32 %v3545_v19  ;;  %v4203_v57 = vpack.c.bf16 %v1191_v14, %v1189_v2 }
 0x215   :  { %9001 = vst [vmem:[#allocation15_spill] sm:$0xff] %v6581_v16  ;;  %v3447_v37 = vsub.f32 %v1191_v14, %v5614_v55  ;;  %v1193_v34 = vmul.f32 %v9002_v56, %v5494_v44  ;;  %v6592_v63 = vadd.f32 %v6581_v16, %v6503_v62  ;;  %v3157_v54 = vmul.f32 1.442695, %v3061_v28 }
 0x216   :  { %v6587_v1 = vadd.f32 %v6520_v40, %v3234_v15  ;;  %v3620_v24 = vadd.f32 %v6383_v7, %v3619_v51  ;;  %4204 = vmatpush1.bf16.msra.mxu0 %v4203_v57  ;;  %v1194_v19 = vmul.f32 %v880_v61, %v5508_v46  ;;  %v1196_v2 = vmul.f32 %v880_v61, %v5558_v0 }
 0x217   :  { %v3543_v35 = vmul.f32 1.442695, %v3447_v37  ;;  %v1195_v14 = vmul.f32 %v9002_v56, %v5540_v30  ;;  %4622 = vpow2.f32 %v3157_v54  ;;  %v1971_v15 = vsub.f32 %v1193_v34, %v5524_v13 }
 0x218   :  { %v3621_v6 = vadd.f32 %v6536_v48, %v3620_v24  ;;  %v1198_v51 = vmul.f32 %v880_v61, %v5583_v8  ;;  %v6601_v7 = vpop.eup %4614  ;;  %v4205_v62 = vpack.c.bf16 %v1196_v2, %v1194_v19  ;;  %v1972_v57 = vsub.f32 %v1194_v19, %v5538_v60 }
 0x219   :  { %9003 = vst [vmem:[#allocation21_spill] sm:$0xff] %v6601_v7  ;;  %4624 = vpow2.f32 %v3543_v35  ;;  %v2678_v28 = vsub.f32 %v1196_v2, %v5575_v36  ;;  %v6607_v37 = vadd.f32 %v6601_v7, %v6516_v41  ;;  %v4207_v16 = vpack.c.bf16 %v1195_v14, %v1193_v34 }
 0x21a   :  { %v2069_v22 = vmul.f32 1.442695, %v1971_v15  ;;  %v2677_v54 = vsub.f32 %v1195_v14, %v5570_v4  ;;  %v6610_v24 = vpop.eup %4616  ;;  %4206 = vmatprep.subr.bf16.mxu0 %v4205_v62  ;;  %v2071_v48 = vmul.f32 1.442695, %v1972_v57  ;;  %v1200_v35 = vmul.f32 %v880_v61, %v5604_v27 }
 0x21b   :  { %9004 = vst [vmem:[#allocation151_spill] sm:$0xff] %v6610_v24  ;;  %v2777_v33 = vmul.f32 1.442695, %v2678_v28  ;;  %v3064_v43 = vsub.f32 %v1198_v51, %v5594_v5  ;;  %v6616_v19 = vadd.f32 %v6610_v24, %v6531_v29  ;;  %4208 = vmatpush1.bf16.msra.mxu0 %v4207_v16  ;;  %v1197_v34 = vmul.f32 %v9002_v56, %v5577_v23 }
 0x21c   :  { %4626 = vpow2.f32 %v2069_v22  ;;  %v2775_v41 = vmul.f32 1.442695, %v2677_v54  ;;  %v4209_v14 = vpack.c.bf16 %v1200_v35, %v1198_v51  ;;  %v3450_v62 = vsub.f32 %v1200_v35, %v5618_v45 }
 0x21d   :  { %v6620_v2 = vpop.eup %4618  ;;  %4628 = vpow2.f32 %v2071_v48  ;;  %v3163_v15 = vmul.f32 1.442695, %v3064_v43  ;;  %v1199_v29 = vmul.f32 %v9002_v56, %v5598_v58  ;;  %v3063_v22 = vsub.f32 %v1197_v34, %v5590_v12  ;;  %v9007_v48 = vld [vmem:[#allocation14_spill] sm:$0xff]  ;;  %v9008_v43 = vld [vmem:[#allocation23_spill] sm:$0xff] }
 0x21e   :  { %9005 = vst [vmem:[#allocation152_spill] sm:$0xff] %v6620_v2  ;;  %v6624_v61 = vadd.f32 %v6620_v2, %v3266_v21  ;;  %4630 = vpow2.f32 %v2777_v33  ;;  %v6629_v16 = vpop.eup %4620  ;;  %4210 = vmatprep.subr.bf16.mxu0 %v4209_v14  ;;  %v3549_v57 = vmul.f32 1.442695, %v3450_v62  ;;  %v888_v51 = vrot.slane %v9007_v48, %v8942_v17 }
 0x21f   :  { %9006 = vst [vmem:[#allocation153_spill] sm:$0xff] %v6629_v16  ;;  %4632 = vpow2.f32 %v2775_v41  ;;  %v1201_v28 = vmul.f32 %v9008_v43, %v5494_v44  ;;  %v3653_v21 = vadd.f32 %v6629_v16, %v6564_v32  ;;  %v4211_v33 = vpack.c.bf16 %v1199_v29, %v1197_v34 }
 0x220   :  { %4634 = vpow2.f32 %v3163_v15  ;;  %v3161_v54 = vmul.f32 1.442695, %v3063_v22  ;;  %v3449_v56 = vsub.f32 %v1199_v29, %v5614_v55  ;;  %v1202_v35 = vmul.f32 %v888_v51, %v5508_v46 }
 0x221   :  { %4636 = vpow2.f32 %v3549_v57  ;;  %v1204_v41 = vmul.f32 %v888_v51, %v5558_v0  ;;  %v6640_v14 = vpop.eup %4622  ;;  %4212 = vmatpush1.bf16.msra.mxu0 %v4211_v33  ;;  %v1203_v62 = vmul.f32 %v9008_v43, %v5540_v30  ;;  %v1973_v48 = vsub.f32 %v1201_v28, %v5524_v13 }
 0x222   :  { %9009 = vst [vmem:[#allocation14_spill] sm:$0xff] %v6640_v14  ;;  %4638 = vpow2.f32 %v3161_v54  ;;  %v1206_v32 = vmul.f32 %v888_v51, %v5583_v8  ;;  %v3236_v15 = vadd.f32 %v6640_v14, %v6587_v1  ;;  %v3547_v29 = vmul.f32 1.442695, %v3449_v56 }
 0x223   :  { %v6646_v34 = vpop.eup %4624  ;;  %v4213_v22 = vpack.c.bf16 %v1204_v41, %v1202_v35  ;;  %v1974_v57 = vsub.f32 %v1202_v35, %v5538_v60  ;;  %v2680_v33 = vsub.f32 %v1204_v41, %v5575_v36  ;;  %v4215_v54 = vpack.c.bf16 %v1203_v62, %v1201_v28 }
 0x224   :  { %9010 = vst [vmem:[#allocation23_spill] sm:$0xff] %v6646_v34  ;;  %v3622_v16 = vadd.f32 %v6646_v34, %v3621_v6  ;;  %v2073_v2 = vmul.f32 1.442695, %v1973_v48  ;;  %4640 = vpow2.f32 %v3547_v29  ;;  %v2679_v7 = vsub.f32 %v1203_v62, %v5570_v4 }
 0x225   :  { %4214 = vmatprep.subr.bf16.mxu0 %v4213_v22  ;;  %v2075_v24 = vmul.f32 1.442695, %v1974_v57  ;;  %v1208_v40 = vmul.f32 %v888_v51, %v5604_v27  ;;  %v2781_v1 = vmul.f32 1.442695, %v2680_v33  ;;  %v3066_v56 = vsub.f32 %v1206_v32, %v5594_v5 }
 0x226   :  { %v6655_v31 = vpop.eup %4626  ;;  %4216 = vmatpush1.bf16.msra.mxu0 %v4215_v54  ;;  %4642 = vpow2.f32 %v2073_v2  ;;  %v1205_v6 = vmul.f32 %v9008_v43, %v5577_v23  ;;  %v2779_v41 = vmul.f32 1.442695, %v2679_v7  ;;  %v1207_v7 = vmul.f32 %v9008_v43, %v5598_v58 }
 0x227   :  { %9011 = vst [vmem:[#allocation154_spill] sm:$0xff] %v6655_v31  ;;  %v6660_v35 = vpop.eup %4628  ;;  %v2145_v28 = vadd.f32 %v6655_v31, %v6607_v37  ;;  %4644 = vpow2.f32 %v2075_v24  ;;  %v4217_v62 = vpack.c.bf16 %v1208_v40, %v1206_v32  ;;  %v3167_v2 = vmul.f32 1.442695, %v3066_v56 }
 0x228   :  { %9012 = vst [vmem:[#allocation155_spill] sm:$0xff] %v6660_v35  ;;  %v6664_v48 = vpop.eup %4630  ;;  %v2176_v51 = vadd.f32 %v6660_v35, %v6572_v38  ;;  %4646 = vpow2.f32 %v2781_v1  ;;  %v3452_v29 = vsub.f32 %v1208_v40, %v5618_v45  ;;  %v3065_v37 = vsub.f32 %v1205_v6, %v5590_v12 }
 0x229   :  { %9013 = vst [vmem:[#allocation156_spill] sm:$0xff] %v6664_v48  ;;  %v6669_v22 = vpop.eup %4632  ;;  %v2882_v57 = vadd.f32 %v6664_v48, %v6592_v63  ;;  %4648 = vpow2.f32 %v2779_v41  ;;  %4218 = vmatprep.subr.bf16.mxu0 %v4217_v62  ;;  %v685_v40 = vcombine.high %v9000_v42, %v9000_v42  ;;  %v4219_v54 = vpack.c.bf16 %v1207_v7, %v1205_v6  ;;  %v9018_v62 = vld [vmem:[#allocation6_spill] sm:$0xff] }
 0x22a   :  { %9014 = vst [vmem:[#allocation157_spill] sm:$0xff] %v6669_v22  ;;  %v6676_v24 = vpop.eup %4634  ;;  %v2851_v38 = vadd.f32 %v6669_v22, %v6616_v19  ;;  %4650 = vpow2.f32 %v3167_v2  ;;  %v3553_v32 = vmul.f32 1.442695, %v3452_v29  ;;  %v3165_v1 = vmul.f32 1.442695, %v3065_v37 }
 0x22b   :  { %9015 = vst [vmem:[#allocation158_spill] sm:$0xff] %v6676_v24  ;;  %v6682_v33 = vpop.eup %4636  ;;  %v3268_v63 = vadd.f32 %v6676_v24, %v6624_v61  ;;  %v3451_v43 = vsub.f32 %v1207_v7, %v5614_v55  ;;  %v896_v19 = vrot.slane %v685_v40, %v8942_v17  ;;  %v892_v2 = vrot.slane %v685_v40, %v9018_v62  ;;  %v9019_v61 = vld [vmem:[#allocation10_spill] sm:$0xff] }
 0x22c   :  { %9016 = vst [vmem:[#allocation159_spill] sm:$0xff] %v6682_v33  ;;  %v6687_v56 = vpop.eup %4638  ;;  %v3654_v41 = vadd.f32 %v6682_v33, %v3653_v21  ;;  %4652 = vpow2.f32 %v3553_v32  ;;  %4220 = vmatpush1.bf16.msra.mxu0 %v4219_v54  ;;  %v6695_v6 = vrot.slane %v9019_v61, %v8942_v17 }
 0x22d   :  { %9017 = vst [vmem:[#allocation160_spill] sm:$0xff] %v6687_v56  ;;  %v3237_v42 = vadd.f32 %v6687_v56, %v3236_v15  ;;  %4654 = vpow2.f32 %v3165_v1  ;;  %v3551_v29 = vmul.f32 1.442695, %v3451_v43  ;;  %v1210_v7 = vmul.f32 %v896_v19, %v5508_v46 }
 0x22e   :  { %v1212_v37 = vmul.f32 %v896_v19, %v5558_v0  ;;  %v1209_v21 = vmul.f32 %v892_v2, %v5494_v44  ;;  %v1211_v32 = vmul.f32 %v892_v2, %v5540_v30  ;;  %v6701_v33 = vpop.eup %4640  ;;  %v1214_v15 = vmul.f32 %v896_v19, %v5583_v8 }
 0x22f   :  { %9020 = vst [vmem:[#allocation10_spill] sm:$0xff] %v6701_v33  ;;  %4656 = vpow2.f32 %v3551_v29  ;;  %v1216_v40 = vmul.f32 %v896_v19, %v5604_v27  ;;  %v1213_v54 = vmul.f32 %v892_v2, %v5577_v23  ;;  %v3623_v43 = vadd.f32 %v6701_v33, %v3622_v16 }
 0x230   :  { %v6706_v1 = vpop.eup %4642  ;;  %v4221_v61 = vpack.c.bf16 %v1212_v37, %v1210_v7  ;;  %v1976_v34 = vsub.f32 %v1210_v7, %v5538_v60  ;;  %v2682_v24 = vsub.f32 %v1212_v37, %v5575_v36  ;;  %v4223_v29 = vpack.c.bf16 %v1211_v32, %v1209_v21 }
 0x231   :  { %9021 = vst [vmem:[#allocation161_spill] sm:$0xff] %v6706_v1  ;;  %v6711_v56 = vpop.eup %4644  ;;  %v6714_v14 = vadd.f32 %v6706_v1, %v2145_v28  ;;  %v1975_v48 = vsub.f32 %v1209_v21, %v5524_v13  ;;  %v2681_v19 = vsub.f32 %v1211_v32, %v5570_v4  ;;  %v4225_v33 = vpack.c.bf16 %v1216_v40, %v1214_v15 }
 0x232   :  { %9022 = vst [vmem:[#allocation162_spill] sm:$0xff] %v6711_v56  ;;  %v6718_v22 = vpop.eup %4646  ;;  %v6721_v35 = vadd.f32 %v6711_v56, %v2176_v51  ;;  %4222 = vmatprep.subr.bf16.mxu0 %v4221_v61  ;;  %v2079_v16 = vmul.f32 1.442695, %v1976_v34  ;;  %v2785_v7 = vmul.f32 1.442695, %v2682_v24  ;;  %v3068_v21 = vsub.f32 %v1214_v15, %v5594_v5 }
 0x233   :  { %9023 = vst [vmem:[#allocation163_spill] sm:$0xff] %v6718_v22  ;;  %v6723_v37 = vpop.eup %4648  ;;  %v6726_v31 = vadd.f32 %v6718_v22, %v2882_v57  ;;  %4224 = vmatpush1.bf16.msra.mxu0 %v4223_v29  ;;  %v2077_v28 = vmul.f32 1.442695, %v1975_v48  ;;  %v2783_v1 = vmul.f32 1.442695, %v2681_v19  ;;  %v3454_v34 = vsub.f32 %v1216_v40, %v5618_v45 }
 0x234   :  { %9024 = vst [vmem:[#allocation164_spill] sm:$0xff] %v6723_v37  ;;  %v6729_v32 = vpop.eup %4650  ;;  %v6732_v53 = vadd.f32 %v6723_v37, %v2851_v38  ;;  %4658 = vpow2.f32 %v2079_v16  ;;  %4226 = vmatprep.subr.bf16.mxu0 %v4225_v33  ;;  %v1215_v51 = vmul.f32 %v892_v2, %v5598_v58  ;;  %v3171_v57 = vmul.f32 1.442695, %v3068_v21 }
 0x235   :  { %9025 = vst [vmem:[#allocation165_spill] sm:$0xff] %v6729_v32  ;;  %v6737_v24 = vadd.f32 %v6729_v32, %v3268_v63  ;;  %4660 = vpow2.f32 %v2785_v7  ;;  %v3067_v48 = vsub.f32 %v1213_v54, %v5590_v12  ;;  %v3557_v15 = vmul.f32 1.442695, %v3454_v34 }
 0x236   :  { %v6740_v61 = vpop.eup %4652  ;;  %4662 = vpow2.f32 %v2077_v28  ;;  %v4227_v29 = vpack.c.bf16 %v1215_v51, %v1213_v54  ;;  %v3453_v38 = vsub.f32 %v1215_v51, %v5614_v55  ;;  %v1218_v63 = vmul.f32 %v6695_v6, %v5508_v46 }
 0x237   :  { %9026 = vst [vmem:[#allocation166_spill] sm:$0xff] %v6740_v61  ;;  %v6743_v19 = vpop.eup %4654  ;;  %v6746_v33 = vadd.f32 %v6740_v61, %v3654_v41  ;;  %4664 = vpow2.f32 %v2783_v1  ;;  %v3169_v2 = vmul.f32 1.442695, %v3067_v48  ;;  %v1220_v54 = vmul.f32 %v6695_v6, %v5558_v0  ;;  %v9029_v1 = vld [vmem:[#allocation19_spill] sm:$0xff] }
 0x238   :  { %9027 = vst [vmem:[#allocation167_spill] sm:$0xff] %v6743_v19  ;;  %v6751_v40 = vadd.f32 %v6743_v19, %v3237_v42  ;;  %4666 = vpow2.f32 %v3171_v57  ;;  %4228 = vmatpush1.bf16.msra.mxu0 %v4227_v29  ;;  %v3555_v16 = vmul.f32 1.442695, %v3453_v38  ;;  %v1978_v41 = vsub.f32 %v1218_v63, %v5538_v60 }
 0x239   :  { %v6755_v7 = vpop.eup %4656  ;;  %4668 = vpow2.f32 %v3557_v15  ;;  %v1217_v28 = vmul.f32 %v9029_v1, %v5494_v44  ;;  %v1219_v21 = vmul.f32 %v9029_v1, %v5540_v30  ;;  %v4229_v34 = vpack.c.bf16 %v1220_v54, %v1218_v63 }
 0x23a   :  { %9028 = vst [vmem:[#allocation168_spill] sm:$0xff] %v6755_v7  ;;  %v3624_v42 = vadd.f32 %v6755_v7, %v3623_v43  ;;  %4670 = vpow2.f32 %v3169_v2  ;;  %v2684_v51 = vsub.f32 %v1220_v54, %v5575_v36  ;;  %v2083_v57 = vmul.f32 1.442695, %v1978_v41 }
 0x23b   :  { %4672 = vpow2.f32 %v3555_v16  ;;  %v4231_v48 = vpack.c.bf16 %v1219_v21, %v1217_v28  ;;  %v1977_v29 = vsub.f32 %v1217_v28, %v5524_v13  ;;  %4230 = vmatprep.subr.bf16.mxu0 %v4229_v34  ;;  %v2683_v38 = vsub.f32 %v1219_v21, %v5570_v4 }
 0x23c   :  { %v2789_v15 = vmul.f32 1.442695, %v2684_v51  ;;  %v1222_v61 = vmul.f32 %v6695_v6, %v5583_v8  ;;  %v1224_v32 = vmul.f32 %v6695_v6, %v5604_v27  ;;  %4674 = vpow2.f32 %v2083_v57 }
 0x23d   :  { %4232 = vmatpush1.bf16.msra.mxu0 %v4231_v48  ;;  %v2081_v43 = vmul.f32 1.442695, %v1977_v29  ;;  %v1221_v2 = vmul.f32 %v9029_v1, %v5577_v23  ;;  %v1223_v63 = vmul.f32 %v9029_v1, %v5598_v58  ;;  %v2787_v54 = vmul.f32 1.442695, %v2683_v38  ;;  %v9034_v38 = vld [vmem:[#allocation17_spill] sm:$0xff] }
 0x23e   :  { %v6774_v16 = vpop.eup %4658  ;;  %4676 = vpow2.f32 %v2789_v15  ;;  %v4233_v41 = vpack.c.bf16 %v1224_v32, %v1222_v61  ;;  %v3070_v28 = vsub.f32 %v1222_v61, %v5594_v5  ;;  %v3456_v34 = vsub.f32 %v1224_v32, %v5618_v45 }
 0x23f   :  { %9030 = vst [vmem:[#allocation19_spill] sm:$0xff] %v6774_v16  ;;  %v6777_v21 = vpop.eup %4660  ;;  %v2178_v6 = vadd.f32 %v6774_v16, %v6721_v35  ;;  %4678 = vpow2.f32 %v2081_v43  ;;  %v4235_v51 = vpack.c.bf16 %v1223_v63, %v1221_v2  ;;  %v3069_v29 = vsub.f32 %v1221_v2, %v5590_v12  ;;  %v9036_v2 = vld [vmem:[#allocation24_spill] sm:$0xff] }
 0x240   :  { %9031 = vst [vmem:[#allocation169_spill] sm:$0xff] %v6777_v21  ;;  %v6782_v57 = vpop.eup %4662  ;;  %v2884_v1 = vadd.f32 %v6777_v21, %v6726_v31  ;;  %4680 = vpow2.f32 %v2787_v54  ;;  %4234 = vmatprep.subr.bf16.mxu0 %v4233_v41  ;;  %v3175_v48 = vmul.f32 1.442695, %v3070_v28  ;;  %v3561_v35 = vmul.f32 1.442695, %v3456_v34 }
 0x241   :  { %9032 = vst [vmem:[#allocation170_spill] sm:$0xff] %v6782_v57  ;;  %v6787_v61 = vpop.eup %4664  ;;  %v2147_v15 = vadd.f32 %v6782_v57, %v6714_v14  ;;  %4236 = vmatpush1.bf16.msra.mxu0 %v4235_v51  ;;  %v3455_v32 = vsub.f32 %v1223_v63, %v5614_v55  ;;  %v912_v43 = vrot.slane %v9034_v38, %v8942_v17  ;;  %v3173_v54 = vmul.f32 1.442695, %v3069_v29 }
 0x242   :  { %9033 = vst [vmem:[#allocation171_spill] sm:$0xff] %v6787_v61  ;;  %v6794_v7 = vpop.eup %4666  ;;  %v2853_v31 = vadd.f32 %v6787_v61, %v6732_v53  ;;  %4682 = vpow2.f32 %v3175_v48  ;;  %v1225_v41 = vmul.f32 %v9036_v2, %v5494_v44  ;;  %v1227_v48 = vmul.f32 %v9036_v2, %v5540_v30 }
 0x243   :  { %9035 = vst [vmem:[#allocation17_spill] sm:$0xff] %v6794_v7  ;;  %v6800_v28 = vpop.eup %4668  ;;  %v3270_v14 = vadd.f32 %v6794_v7, %v6737_v24  ;;  %4684 = vpow2.f32 %v3561_v35  ;;  %v3559_v63 = vmul.f32 1.442695, %v3455_v32  ;;  %v1226_v34 = vmul.f32 %v912_v43, %v5508_v46 }
 0x244   :  { %9037 = vst [vmem:[#allocation24_spill] sm:$0xff] %v6800_v28  ;;  %v6805_v51 = vpop.eup %4670  ;;  %v3656_v19 = vadd.f32 %v6800_v28, %v6746_v33  ;;  %4686 = vpow2.f32 %v3173_v54  ;;  %v1228_v53 = vmul.f32 %v912_v43, %v5558_v0  ;;  %v1979_v32 = vsub.f32 %v1225_v41, %v5524_v13 }
 0x245   :  { %9038 = vst [vmem:[#allocation172_spill] sm:$0xff] %v6805_v51  ;;  %v6812_v29 = vpop.eup %4672  ;;  %v3239_v24 = vadd.f32 %v6805_v51, %v6751_v40  ;;  %4688 = vpow2.f32 %v3559_v63  ;;  %v1980_v35 = vsub.f32 %v1226_v34, %v5538_v60  ;;  %v4239_v54 = vpack.c.bf16 %v1227_v48, %v1225_v41 }
 0x246   :  { %9039 = vst [vmem:[#allocation173_spill] sm:$0xff] %v6812_v29  ;;  %v3625_v7 = vadd.f32 %v6812_v29, %v3624_v42  ;;  %v4237_v21 = vpack.c.bf16 %v1228_v53, %v1226_v34  ;;  %v2686_v33 = vsub.f32 %v1228_v53, %v5575_v36  ;;  %v6820_v28 = vpop.eup %4674  ;;  %v2085_v22 = vmul.f32 1.442695, %v1979_v32 }
 0x247   :  { %9040 = vst [vmem:[#allocation174_spill] sm:$0xff] %v6820_v28  ;;  %v2087_v61 = vmul.f32 1.442695, %v1980_v35  ;;  %v2685_v37 = vsub.f32 %v1227_v48, %v5570_v4  ;;  %v1230_v16 = vmul.f32 %v912_v43, %v5583_v8  ;;  %v6827_v63 = vadd.f32 %v6820_v28, %v2178_v6 }
 0x248   :  { %v6824_v40 = vpop.eup %4676  ;;  %4238 = vmatprep.subr.bf16.mxu0 %v4237_v21  ;;  %v2793_v51 = vmul.f32 1.442695, %v2686_v33  ;;  %v1232_v42 = vmul.f32 %v912_v43, %v5604_v27  ;;  %v1229_v41 = vmul.f32 %v9036_v2, %v5577_v23 }
 0x249   :  { %9041 = vst [vmem:[#allocation175_spill] sm:$0xff] %v6824_v40  ;;  %v6832_v34 = vpop.eup %4678  ;;  %v6835_v53 = vadd.f32 %v6824_v40, %v2884_v1  ;;  %4690 = vpow2.f32 %v2087_v61  ;;  %4240 = vmatpush1.bf16.msra.mxu0 %v4239_v54  ;;  %v2791_v48 = vmul.f32 1.442695, %v2685_v37  ;;  %v3072_v35 = vsub.f32 %v1230_v16, %v5594_v5 }
 0x24a   :  { %9042 = vst [vmem:[#allocation176_spill] sm:$0xff] %v6832_v34  ;;  %v6838_v32 = vpop.eup %4680  ;;  %v6841_v21 = vadd.f32 %v6832_v34, %v2147_v15  ;;  %4692 = vpow2.f32 %v2793_v51  ;;  %v4241_v6 = vpack.c.bf16 %v1232_v42, %v1230_v16  ;;  %v3458_v43 = vsub.f32 %v1232_v42, %v5618_v45  ;;  %v9045_v51 = vld [vmem:[#allocation16_spill] sm:$0xff] }
 0x24b   :  { %9043 = vst [vmem:[#allocation177_spill] sm:$0xff] %v6838_v32  ;;  %v6845_v33 = vadd.f32 %v6838_v32, %v2853_v31  ;;  %4694 = vpow2.f32 %v2085_v22  ;;  %v3179_v1 = vmul.f32 1.442695, %v3072_v35  ;;  %v1231_v61 = vmul.f32 %v9036_v2, %v5598_v58 }
 0x24c   :  { %v6849_v37 = vpop.eup %4682  ;;  %4696 = vpow2.f32 %v2791_v48  ;;  %4242 = vmatprep.subr.bf16.mxu0 %v4241_v6  ;;  %v3565_v54 = vmul.f32 1.442695, %v3458_v43  ;;  %v3071_v15 = vsub.f32 %v1229_v41, %v5590_v12  ;;  %v920_v16 = vrot.slane %v9045_v51, %v8942_v17 }
 0x24d   :  { %9044 = vst [vmem:[#allocation178_spill] sm:$0xff] %v6849_v37  ;;  %v6854_v29 = vpop.eup %4684  ;;  %v6857_v31 = vadd.f32 %v6849_v37, %v3270_v14  ;;  %4698 = vpow2.f32 %v3179_v1  ;;  %v4243_v22 = vpack.c.bf16 %v1231_v61, %v1229_v41  ;;  %v3457_v42 = vsub.f32 %v1231_v61, %v5614_v55  ;;  %v9049_v1 = vld [vmem:[#allocation27_spill] sm:$0xff] }
 0x24e   :  { %9046 = vst [vmem:[#allocation16_spill] sm:$0xff] %v6854_v29  ;;  %v6860_v2 = vpop.eup %4686  ;;  %v6863_v48 = vadd.f32 %v6854_v29, %v3656_v19  ;;  %4700 = vpow2.f32 %v3565_v54  ;;  %v3177_v35 = vmul.f32 1.442695, %v3071_v15  ;;  %v1234_v6 = vmul.f32 %v920_v16, %v5508_v46 }
 0x24f   :  { %9047 = vst [vmem:[#allocation179_spill] sm:$0xff] %v6860_v2  ;;  %v6866_v43 = vpop.eup %4688  ;;  %v6869_v51 = vadd.f32 %v6860_v2, %v3239_v24  ;;  %4244 = vmatpush1.bf16.msra.mxu0 %v4243_v22  ;;  %v3563_v14 = vmul.f32 1.442695, %v3457_v42  ;;  %v1236_v41 = vmul.f32 %v920_v16, %v5558_v0  ;;  %v1233_v61 = vmul.f32 %v9049_v1, %v5494_v44  ;;  %v80_v42 = vld [vmem:[%s8491_s2 + $0x8] sm:$0xff] }
 0x250   :  { %9048 = vst [vmem:[#allocation180_spill] sm:$0xff] %v6866_v43  ;;  %v6875_v37 = vadd.f32 %v6866_v43, %v3625_v7  ;;  %4702 = vpow2.f32 %v3177_v35  ;;  %v1982_v19 = vsub.f32 %v1234_v6, %v5538_v60  ;;  %v1235_v54 = vmul.f32 %v9049_v1, %v5540_v30  ;;  %v79_v7 = vld [vmem:[%s8491_s2] sm:$0xff]  ;;  %1377 = vmatprep.mubr.f32.mxu1 %v80_v42 }
 0x251   :  { %4704 = vpow2.f32 %v3563_v14  ;;  %v4245_v15 = vpack.c.bf16 %v1236_v41, %v1234_v6  ;;  %v2688_v24 = vsub.f32 %v1236_v41, %v5575_v36  ;;  %v1981_v22 = vsub.f32 %v1233_v61, %v5524_v13  ;;  %v88_v6 = vld [vmem:[%s8491_s2 + $0x48] sm:$0xff]  ;;  %1378 = vmatmul.mubr.f32.vlgmr.msra.gmra.mrb[16].mxu1 %v79_v7 }
 0x252   :  { %v2091_v35 = vmul.f32 1.442695, %v1982_v19  ;;  %v4247_v29 = vpack.c.bf16 %v1235_v54, %v1233_v61  ;;  %v2687_v43 = vsub.f32 %v1235_v54, %v5570_v4  ;;  %v1238_v2 = vmul.f32 %v920_v16, %v5583_v8  ;;  %1383 = vmatprep.mubr.f32.mxu1 %v88_v6 }
 0x253   :  { %v6893_v14 = vpop.eup %4690  ;;  %4246 = vmatprep.subr.bf16.mxu0 %v4245_v15  ;;  %v2797_v41 = vmul.f32 1.442695, %v2688_v24  ;;  %v2089_v40 = vmul.f32 1.442695, %v1981_v22  ;;  %v1240_v32 = vmul.f32 %v920_v16, %v5604_v27  ;;  %v1237_v19 = vmul.f32 %v9049_v1, %v5577_v23  ;;  %v87_v16 = vld [vmem:[%s8491_s2 + $0x40] sm:$0xff] }
 0x254   :  { %9050 = vst [vmem:[#allocation27_spill] sm:$0xff] %v6893_v14  ;;  %v6898_v61 = vpop.eup %4692  ;;  %v6902_v54 = vadd.f32 %v6893_v14, %v6827_v63  ;;  %4706 = vpow2.f32 %v2091_v35  ;;  %4248 = vmatpush1.bf16.msra.mxu0 %v4247_v29  ;;  %v2795_v42 = vmul.f32 1.442695, %v2687_v43  ;;  %v3074_v28 = vsub.f32 %v1238_v2, %v5594_v5  ;;  %v96_v29 = vld [vmem:[%s8491_s2 + $0x88] sm:$0xff] }
 0x255   :  { %9051 = vst [vmem:[#allocation181_spill] sm:$0xff] %v6898_v61  ;;  %v6908_v15 = vpop.eup %4694  ;;  %v6912_v24 = vadd.f32 %v6898_v61, %v6835_v53  ;;  %4708 = vpow2.f32 %v2797_v41  ;;  %v4249_v22 = vpack.c.bf16 %v1240_v32, %v1238_v2  ;;  %v3460_v63 = vsub.f32 %v1240_v32, %v5618_v45  ;;  %1384 = vmatmul.mubr.f32.gmra.mrb[18].mxu1 %v87_v16 }
 0x256   :  { %9052 = vst [vmem:[#allocation182_spill] sm:$0xff] %v6908_v15  ;;  %v6918_v43 = vpop.eup %4696  ;;  %v2149_v7 = vadd.f32 %v6908_v15, %v6841_v21  ;;  %4710 = vpow2.f32 %v2089_v40  ;;  %v3183_v35 = vmul.f32 1.442695, %v3074_v28  ;;  %v1239_v6 = vmul.f32 %v9049_v1, %v5598_v58  ;;  %1389 = vmatprep.mubr.f32.mxu1 %v96_v29 }
 0x257   :  { %9053 = vst [vmem:[#allocation183_spill] sm:$0xff] %v6918_v43  ;;  %v6924_v53 = vpop.eup %4698  ;;  %v6928_v2 = vadd.f32 %v6918_v43, %v6845_v33  ;;  %4712 = vpow2.f32 %v2795_v42  ;;  %4250 = vmatprep.subr.bf16.mxu0 %v4249_v22  ;;  %v3569_v32 = vmul.f32 1.442695, %v3460_v63  ;;  %v3073_v41 = vsub.f32 %v1237_v19, %v5590_v12  ;;  %v95_v33 = vld [vmem:[%s8491_s2 + $0x80] sm:$0xff]  ;;  %v9057_v63 = vld [vmem:[#allocation12_spill] sm:$0xff] }
 0x258   :  { %9054 = vst [vmem:[#allocation184_spill] sm:$0xff] %v6924_v53  ;;  %v6931_v61 = vpop.eup %4700  ;;  %v3272_v28 = vadd.f32 %v6924_v53, %v6857_v31  ;;  %4714 = vpow2.f32 %v3183_v35  ;;  %v4251_v40 = vpack.c.bf16 %v1239_v6, %v1237_v19  ;;  %v3459_v21 = vsub.f32 %v1239_v6, %v5614_v55  ;;  %v104_v31 = vld [vmem:[%s8491_s2 + $0xc8] sm:$0xff]  ;;  %v9058_v35 = vld [vmem:[#allocation28_spill] sm:$0xff] }
 0x259   :  { %9055 = vst [vmem:[#allocation185_spill] sm:$0xff] %v6931_v61  ;;  %v3658_v1 = vadd.f32 %v6931_v61, %v6863_v48  ;;  %4716 = vpow2.f32 %v3569_v32  ;;  %v3181_v42 = vmul.f32 1.442695, %v3073_v41  ;;  %v686_v16 = vcombine.high %v9034_v38, %v9034_v38  ;;  %1390 = vmatmul.mubr.f32.gmra.mrb[20].mxu1 %v95_v33 }
 0x25a   :  { %v6946_v19 = vpop.eup %4702  ;;  %4252 = vmatpush1.bf16.msra.mxu0 %v4251_v40  ;;  %v3567_v22 = vmul.f32 1.442695, %v3459_v21  ;;  %v6950_v29 = vrot.slane %v9057_v63, %v8942_v17  ;;  %v6954_v48 = vmul.f32 %v9058_v35, %v5494_v44  ;;  %v6958_v6 = vmul.f32 %v9058_v35, %v5540_v30  ;;  %1395 = vmatprep.mubr.f32.mxu1 %v104_v31 }
 0x25b   :  { %9056 = vst [vmem:[#allocation186_spill] sm:$0xff] %v6946_v19  ;;  %v6960_v38 = vpop.eup %4704  ;;  %v3241_v32 = vadd.f32 %v6946_v19, %v6869_v51  ;;  %4718 = vpow2.f32 %v3181_v42  ;;  %v928_v41 = vrot.slane %v686_v16, %v8942_v17  ;;  %v924_v40 = vrot.slane %v686_v16, %v9018_v62  ;;  %v103_v51 = vld [vmem:[%s8491_s2 + $0xc0] sm:$0xff] }
 0x25c   :  { %9059 = vst [vmem:[#allocation12_spill] sm:$0xff] %v6960_v38  ;;  %v3627_v21 = vadd.f32 %v6960_v38, %v6875_v37  ;;  %4720 = vpow2.f32 %v3567_v22  ;;  %v6970_v63 = vmul.f32 %v6950_v29, %v5508_v46  ;;  %v6974_v61 = vmul.f32 %v6950_v29, %v5558_v0 }
 0x25d   :  { %v1242_v42 = vmul.f32 %v928_v41, %v5508_v46  ;;  %v1244_v33 = vmul.f32 %v928_v41, %v5558_v0  ;;  %v1241_v37 = vmul.f32 %v924_v40, %v5494_v44  ;;  %v1243_v16 = vmul.f32 %v924_v40, %v5540_v30  ;;  %1396 = vmatmul.mubr.f32.gmra.mrb[22].mxu1 %v103_v51 }
 0x25e   :  { %v6983_v22 = vpop.eup %4706  ;;  %v1246_v38 = vmul.f32 %v928_v41, %v5583_v8  ;;  %v1248_v53 = vmul.f32 %v928_v41, %v5604_v27  ;;  %v1245_v31 = vmul.f32 %v924_v40, %v5577_v23  ;;  %v1247_v19 = vmul.f32 %v924_v40, %v5598_v58 }
 0x25f   :  { %9060 = vst [vmem:[#allocation28_spill] sm:$0xff] %v6983_v22  ;;  %v6989_v43 = vpop.eup %4708  ;;  %v6993_v14 = vadd.f32 %v6983_v22, %v6902_v54  ;;  %v4253_v15 = vpack.c.bf16 %v1244_v33, %v1242_v42  ;;  %v1984_v34 = vsub.f32 %v1242_v42, %v5538_v60  ;;  %v2690_v57 = vsub.f32 %v1244_v33, %v5575_v36 }
 0x260   :  { %9061 = vst [vmem:[#allocation187_spill] sm:$0xff] %v6989_v43  ;;  %v6997_v56 = vpop.eup %4710  ;;  %v7001_v41 = vadd.f32 %v6989_v43, %v6912_v24  ;;  %v4255_v50 = vpack.c.bf16 %v1243_v16, %v1241_v37  ;;  %v1983_v40 = vsub.f32 %v1241_v37, %v5524_v13  ;;  %v2689_v25 = vsub.f32 %v1243_v16, %v5570_v4 }
 0x261   :  { %9062 = vst [vmem:[#allocation188_spill] sm:$0xff] %v6997_v56  ;;  %v7005_v59 = vpop.eup %4712  ;;  %v7008_v54 = vadd.f32 %v6997_v56, %v2149_v7  ;;  %4254 = vmatprep.subr.bf16.mxu0 %v4253_v15  ;;  %v2095_v42 = vmul.f32 1.442695, %v1984_v34  ;;  %v2801_v33 = vmul.f32 1.442695, %v2690_v57  ;;  %v4257_v51 = vpack.c.bf16 %v1248_v53, %v1246_v38 }
 0x262   :  { %9063 = vst [vmem:[#allocation189_spill] sm:$0xff] %v7005_v59  ;;  %v7010_v22 = vpop.eup %4714  ;;  %v7014_v24 = vadd.f32 %v7005_v59, %v6928_v2  ;;  %4256 = vmatpush1.bf16.msra.mxu0 %v4255_v50  ;;  %v2093_v43 = vmul.f32 1.442695, %v1983_v40  ;;  %v2799_v37 = vmul.f32 1.442695, %v2689_v25  ;;  %v3076_v16 = vsub.f32 %v1246_v38, %v5594_v5 }
 0x263   :  { %9064 = vst [vmem:[#allocation190_spill] sm:$0xff] %v7010_v22  ;;  %v7017_v9 = vpop.eup %4716  ;;  %v7020_v7 = vadd.f32 %v7010_v22, %v3272_v28  ;;  %4722 = vpow2.f32 %v2095_v42  ;;  %4258 = vmatprep.subr.bf16.mxu0 %v4257_v51  ;;  %v3462_v57 = vsub.f32 %v1248_v53, %v5618_v45  ;;  %v4259_v34 = vpack.c.bf16 %v1247_v19, %v1245_v31  ;;  %v92_v51 = vld [vmem:[%s8491_s2 + $0x68] sm:$0xff] }
 0x264   :  { %9065 = vst [vmem:[#allocation191_spill] sm:$0xff] %v7017_v9  ;;  %v7024_v15 = vadd.f32 %v7017_v9, %v3658_v1  ;;  %4724 = vpow2.f32 %v2801_v33  ;;  %v3187_v2 = vmul.f32 1.442695, %v3076_v16  ;;  %v3075_v50 = vsub.f32 %v1245_v31, %v5590_v12 }
 0x265   :  { %v7027_v25 = vpop.eup %4718  ;;  %4726 = vpow2.f32 %v2093_v43  ;;  %v3573_v38 = vmul.f32 1.442695, %v3462_v57  ;;  %v3461_v40 = vsub.f32 %v1247_v19, %v5614_v55  ;;  %v4261_v28 = vpack.c.bf16 %v6974_v61, %v6970_v63  ;;  %v83_v43 = vld [vmem:[%s8491_s2 + $0x20] sm:$0xff] }
 0x266   :  { %9066 = vst [vmem:[#allocation192_spill] sm:$0xff] %v7027_v25  ;;  %v7032_v42 = vpop.eup %4720  ;;  %v7035_v53 = vadd.f32 %v7027_v25, %v3241_v32  ;;  %4728 = vpow2.f32 %v2799_v37  ;;  %4260 = vmatpush1.bf16.msra.mxu0 %v4259_v34  ;;  %v3185_v1 = vmul.f32 1.442695, %v3075_v50  ;;  %v1986_v31 = vsub.f32 %v6970_v63, %v5538_v60 }
 0x267   :  { %9067 = vst [vmem:[#allocation193_spill] sm:$0xff] %v7032_v42  ;;  %v7043_v19 = vadd.f32 %v7032_v42, %v3627_v21  ;;  %4730 = vpow2.f32 %v3187_v2  ;;  %v3571_v33 = vmul.f32 1.442695, %v3461_v40  ;;  %4262 = vmatprep.subr.bf16.mxu0 %v4261_v28  ;;  %v2692_v32 = vsub.f32 %v6974_v61, %v5575_v36  ;;  %v100_v28 = vld [vmem:[%s8491_s2 + $0xa8] sm:$0xff] }
 0x268   :  { %4732 = vpow2.f32 %v3573_v38  ;;  %v2099_v37 = vmul.f32 1.442695, %v1986_v31  ;;  %v4263_v63 = vpack.c.bf16 %v6958_v6, %v6954_v48  ;;  %v1985_v16 = vsub.f32 %v6954_v48, %v5524_v13  ;;  %v91_v48 = vld [vmem:[%s8491_s2 + $0x60] sm:$0xff] }
 0x269   :  { %4734 = vpow2.f32 %v3185_v1  ;;  %v2805_v21 = vmul.f32 1.442695, %v2692_v32  ;;  %1556 = vmatmul.mubr.f32.vlgmr.msra.gmra.mrb[0].mxu0 %v83_v43  ;;  %v2691_v57 = vsub.f32 %v6958_v6, %v5570_v4  ;;  %v1254_v61 = vmul.f32 %v6950_v29, %v5583_v8 }
 0x26a   :  { %4736 = vpow2.f32 %v3571_v33  ;;  %4264 = vmatpush1.bf16.msra.mxu0 %v4263_v63  ;;  %v2097_v34 = vmul.f32 1.442695, %v1985_v16  ;;  %v1256_v2 = vmul.f32 %v6950_v29, %v5604_v27  ;;  %v1253_v50 = vmul.f32 %v9058_v35, %v5577_v23  ;;  %1561 = vmatprep.mubr.f32.mxu0 %v92_v51 }
 0x26b   :  { %4738 = vpow2.f32 %v2099_v37  ;;  %v2803_v38 = vmul.f32 1.442695, %v2691_v57  ;;  %v3078_v6 = vsub.f32 %v1254_v61, %v5594_v5  ;;  %v1255_v40 = vmul.f32 %v9058_v35, %v5598_v58 }
 0x26c   :  { %4740 = vpow2.f32 %v2805_v21  ;;  %v4265_v29 = vpack.c.bf16 %v1256_v2, %v1254_v61  ;;  %v3464_v1 = vsub.f32 %v1256_v2, %v5618_v45  ;;  %v3077_v31 = vsub.f32 %v1253_v50, %v5590_v12  ;;  %v99_v21 = vld [vmem:[%s8491_s2 + $0xa0] sm:$0xff] }
 0x26d   :  { %v7073_v43 = vpop.eup %4722  ;;  %4742 = vpow2.f32 %v2097_v34  ;;  %v3191_v33 = vmul.f32 1.442695, %v3078_v6  ;;  %v4267_v32 = vpack.c.bf16 %v1255_v40, %v1253_v50  ;;  %v3463_v51 = vsub.f32 %v1255_v40, %v5614_v55  ;;  %1562 = vmatmul.mubr.f32.gmra.mrb[2].mxu0 %v91_v48  ;;  %v9071_v2 = vld [vmem:[#allocation25_spill] sm:$0xff]  ;;  %v108_v50 = vld [vmem:[%s8491_s2 + $0xe8] sm:$0xff] }
 0x26e   :  { %9068 = vst [vmem:[#allocation194_spill] sm:$0xff] %v7073_v43  ;;  %v7076_v37 = vpop.eup %4724  ;;  %v2182_v35 = vadd.f32 %v7073_v43, %v6993_v14  ;;  %4744 = vpow2.f32 %v2803_v38  ;;  %4266 = vmatprep.subr.bf16.mxu0 %v4265_v29  ;;  %v3577_v63 = vmul.f32 1.442695, %v3464_v1  ;;  %v3189_v16 = vmul.f32 1.442695, %v3077_v31  ;;  %1567 = vmatprep.mubr.f32.mxu0 %v100_v28  ;;  %v9073_v6 = vld [vmem:[#allocation29_spill] sm:$0xff] }
 0x26f   :  { %9069 = vst [vmem:[#allocation195_spill] sm:$0xff] %v7076_v37  ;;  %v7083_v57 = vpop.eup %4726  ;;  %v2888_v61 = vadd.f32 %v7076_v37, %v7001_v41  ;;  %4746 = vpow2.f32 %v3191_v33  ;;  %4268 = vmatpush1.bf16.msra.mxu0 %v4267_v32  ;;  %v3575_v34 = vmul.f32 1.442695, %v3463_v51  ;;  %v944_v14 = vrot.slane %v9071_v2, %v8942_v17 }
 0x270   :  { %9070 = vst [vmem:[#allocation196_spill] sm:$0xff] %v7083_v57  ;;  %v7092_v48 = vpop.eup %4728  ;;  %v2151_v38 = vadd.f32 %v7083_v57, %v7008_v54  ;;  %4748 = vpow2.f32 %v3577_v63  ;;  %v1257_v40 = vmul.f32 %v9073_v6, %v5494_v44  ;;  %v1259_v41 = vmul.f32 %v9073_v6, %v5540_v30 }
 0x271   :  { %9072 = vst [vmem:[#allocation25_spill] sm:$0xff] %v7092_v48  ;;  %v7100_v28 = vpop.eup %4730  ;;  %v2857_v29 = vadd.f32 %v7092_v48, %v7014_v24  ;;  %4750 = vpow2.f32 %v3189_v16  ;;  %v1258_v1 = vmul.f32 %v944_v14, %v5508_v46  ;;  %v1260_v31 = vmul.f32 %v944_v14, %v5558_v0  ;;  %1568 = vmatmul.mubr.f32.gmra.mrb[4].mxu0 %v99_v21  ;;  %v107_v24 = vld [vmem:[%s8491_s2 + $0xe0] sm:$0xff] }
 0x272   :  { %9074 = vst [vmem:[#allocation29_spill] sm:$0xff] %v7100_v28  ;;  %v7106_v33 = vpop.eup %4732  ;;  %v3274_v54 = vadd.f32 %v7100_v28, %v7020_v7  ;;  %4752 = vpow2.f32 %v3575_v34  ;;  %v4271_v32 = vpack.c.bf16 %v1259_v41, %v1257_v40  ;;  %v1987_v51 = vsub.f32 %v1257_v40, %v5524_v13  ;;  %1573 = vmatprep.mubr.f32.mxu0 %v108_v50  ;;  %v86_v7 = vld [vmem:[%s8491_s2 + $0x38] sm:$0xff] }
 0x273   :  { %9075 = vst [vmem:[#allocation197_spill] sm:$0xff] %v7106_v33  ;;  %v7114_v63 = vpop.eup %4734  ;;  %v3660_v16 = vadd.f32 %v7106_v33, %v7024_v15  ;;  %v4269_v21 = vpack.c.bf16 %v1260_v31, %v1258_v1  ;;  %v1988_v9 = vsub.f32 %v1258_v1, %v5538_v60  ;;  %v2694_v42 = vsub.f32 %v1260_v31, %v5575_v36 }
 0x274   :  { %9076 = vst [vmem:[#allocation198_spill] sm:$0xff] %v7114_v63  ;;  %v7123_v34 = vpop.eup %4736  ;;  %v3243_v50 = vadd.f32 %v7114_v63, %v7035_v53  ;;  %v2101_v40 = vmul.f32 1.442695, %v1987_v51  ;;  %v2693_v28 = vsub.f32 %v1259_v41, %v5570_v4  ;;  %v1262_v22 = vmul.f32 %v944_v14, %v5583_v8 }
 0x275   :  { %9077 = vst [vmem:[#allocation199_spill] sm:$0xff] %v7123_v34  ;;  %v7129_v15 = vpop.eup %4738  ;;  %v3629_v1 = vadd.f32 %v7123_v34, %v7043_v19  ;;  %4270 = vmatprep.subr.bf16.mxu0 %v4269_v21  ;;  %v2103_v31 = vmul.f32 1.442695, %v1988_v9  ;;  %v2809_v33 = vmul.f32 1.442695, %v2694_v42  ;;  %v1264_v25 = vmul.f32 %v944_v14, %v5604_v27  ;;  %1574 = vmatmul.mubr.f32.gmra.mrb[6].mxu0 %v107_v24 }
 0x276   :  { %9078 = vst [vmem:[#allocation200_spill] sm:$0xff] %v7129_v15  ;;  %v7134_v37 = vpop.eup %4740  ;;  %v7137_v53 = vadd.f32 %v7129_v15, %v2182_v35  ;;  %4272 = vmatpush1.bf16.msra.mxu0 %v4271_v32  ;;  %4754 = vpow2.f32 %v2101_v40  ;;  %v2807_v41 = vmul.f32 1.442695, %v2693_v28  ;;  %v3080_v51 = vsub.f32 %v1262_v22, %v5594_v5  ;;  %1644 = vmatprep.mubr.f32.mxu0 %v86_v7 }
 0x277   :  { %9079 = vst [vmem:[#allocation201_spill] sm:$0xff] %v7134_v37  ;;  %v7140_v63 = vpop.eup %4742  ;;  %v2889_v19 = vadd.f32 %v7134_v37, %v2888_v61  ;;  %4756 = vpow2.f32 %v2103_v31  ;;  %v4273_v9 = vpack.c.bf16 %v1264_v25, %v1262_v22  ;;  %v3466_v42 = vsub.f32 %v1264_v25, %v5618_v45 }
 0x278   :  { %9080 = vst [vmem:[#allocation202_spill] sm:$0xff] %v7140_v63  ;;  %v7144_v14 = vpop.eup %4744  ;;  %v2152_v24 = vadd.f32 %v7140_v63, %v2151_v38  ;;  %4758 = vpow2.f32 %v2809_v33  ;;  %v3195_v35 = vmul.f32 1.442695, %v3080_v51  ;;  %v1261_v28 = vmul.f32 %v9073_v6, %v5577_v23  ;;  %v9084_v33 = vld [vmem:[#allocation20_spill] sm:$0xff] }
 0x279   :  { %9081 = vst [vmem:[#allocation203_spill] sm:$0xff] %v7144_v14  ;;  %v7149_v32 = vpop.eup %4746  ;;  %v2858_v21 = vadd.f32 %v7144_v14, %v2857_v29  ;;  %4760 = vpow2.f32 %v2807_v41  ;;  %4274 = vmatprep.subr.bf16.mxu0 %v4273_v9  ;;  %v3581_v61 = vmul.f32 1.442695, %v3466_v42  ;;  %v1263_v22 = vmul.f32 %v9073_v6, %v5598_v58 }
 0x27a   :  { %9082 = vst [vmem:[#allocation204_spill] sm:$0xff] %v7149_v32  ;;  %v7154_v25 = vpop.eup %4748  ;;  %v3275_v7 = vadd.f32 %v7149_v32, %v3274_v54  ;;  %4762 = vpow2.f32 %v3195_v35  ;;  %v3079_v38 = vsub.f32 %v1261_v28, %v5590_v12  ;;  %v952_v40 = vrot.slane %v9084_v33, %v8942_v17 }
 0x27b   :  { %9083 = vst [vmem:[#allocation205_spill] sm:$0xff] %v7154_v25  ;;  %v7160_v31 = vpop.eup %4750  ;;  %v3661_v29 = vadd.f32 %v7154_v25, %v3660_v16  ;;  %4764 = vpow2.f32 %v3581_v61  ;;  %v4275_v41 = vpack.c.bf16 %v1263_v22, %v1261_v28  ;;  %v3465_v51 = vsub.f32 %v1263_v22, %v5614_v55  ;;  %v9087_v16 = vld [vmem:[#allocation30_spill] sm:$0xff] }
 0x27c   :  { %9085 = vst [vmem:[#allocation20_spill] sm:$0xff] %v7160_v31  ;;  %v7164_v9 = vpop.eup %4752  ;;  %v7167_v6 = vadd.f32 %v7160_v31, %v3243_v50  ;;  %v3193_v54 = vmul.f32 1.442695, %v3079_v38  ;;  %v1266_v42 = vmul.f32 %v952_v40, %v5508_v46  ;;  %v1268_v35 = vmul.f32 %v952_v40, %v5558_v0 }
 0x27d   :  { %9086 = vst [vmem:[#allocation206_spill] sm:$0xff] %v7164_v9  ;;  %v7172_v33 = vadd.f32 %v7164_v9, %v3629_v1  ;;  %4276 = vmatpush1.bf16.msra.mxu0 %v4275_v41  ;;  %v3579_v32 = vmul.f32 1.442695, %v3465_v51  ;;  %v1265_v28 = vmul.f32 %v9087_v16, %v5494_v44  ;;  %v1267_v61 = vmul.f32 %v9087_v16, %v5540_v30 }
 0x27e   :  { %4766 = vpow2.f32 %v3193_v54  ;;  %v4277_v22 = vpack.c.bf16 %v1268_v35, %v1266_v42  ;;  %v1990_v50 = vsub.f32 %v1266_v42, %v5538_v60  ;;  %v2696_v38 = vsub.f32 %v1268_v35, %v5575_v36 }
 0x27f   :  { %4768 = vpow2.f32 %v3579_v32  ;;  %v4279_v25 = vpack.c.bf16 %v1267_v61, %v1265_v28  ;;  %v1989_v31 = vsub.f32 %v1265_v28, %v5524_v13  ;;  %v2695_v1 = vsub.f32 %v1267_v61, %v5570_v4 }
 0x280   :  { %v7182_v41 = vpop.eup %4754  ;;  %4278 = vmatprep.subr.bf16.mxu0 %v4277_v22  ;;  %v2107_v51 = vmul.f32 1.442695, %v1990_v50  ;;  %v2813_v9 = vmul.f32 1.442695, %v2696_v38  ;;  %v1270_v37 = vmul.f32 %v952_v40, %v5583_v8  ;;  %v1272_v54 = vmul.f32 %v952_v40, %v5604_v27 }
 0x281   :  { %9088 = vst [vmem:[#allocation30_spill] sm:$0xff] %v7182_v41  ;;  %v7186_v14 = vpop.eup %4756  ;;  %v7189_v42 = vadd.f32 %v7182_v41, %v2152_v24  ;;  %4280 = vmatpush1.bf16.msra.mxu0 %v4279_v25  ;;  %v2105_v32 = vmul.f32 1.442695, %v1989_v31  ;;  %v2811_v35 = vmul.f32 1.442695, %v2695_v1  ;;  %v1269_v28 = vmul.f32 %v9087_v16, %v5577_v23 }
 0x282   :  { %9089 = vst [vmem:[#allocation207_spill] sm:$0xff] %v7186_v14  ;;  %v7193_v61 = vpop.eup %4758  ;;  %v2184_v22 = vadd.f32 %v7186_v14, %v7137_v53  ;;  %4770 = vpow2.f32 %v2107_v51  ;;  %v4281_v50 = vpack.c.bf16 %v1272_v54, %v1270_v37  ;;  %v3082_v40 = vsub.f32 %v1270_v37, %v5594_v5 }
 0x283   :  { %9090 = vst [vmem:[#allocation208_spill] sm:$0xff] %v7193_v61  ;;  %v7198_v38 = vpop.eup %4760  ;;  %v2890_v24 = vadd.f32 %v7193_v61, %v2889_v19  ;;  %4772 = vpow2.f32 %v2813_v9  ;;  %v3468_v25 = vsub.f32 %v1272_v54, %v5618_v45  ;;  %v1271_v31 = vmul.f32 %v9087_v16, %v5598_v58 }
 0x284   :  { %9091 = vst [vmem:[#allocation209_spill] sm:$0xff] %v7198_v38  ;;  %v7204_v1 = vpop.eup %4762  ;;  %v2859_v41 = vadd.f32 %v7198_v38, %v2858_v21  ;;  %4774 = vpow2.f32 %v2105_v32  ;;  %4282 = vmatprep.subr.bf16.mxu0 %v4281_v50  ;;  %v3199_v53 = vmul.f32 1.442695, %v3082_v40  ;;  %v3081_v51 = vsub.f32 %v1269_v28, %v5590_v12  ;;  %v9094_v32 = vld [vmem:[#allocation13_spill] sm:$0xff] }
 0x285   :  { %9092 = vst [vmem:[#allocation210_spill] sm:$0xff] %v7204_v1  ;;  %v7208_v37 = vpop.eup %4764  ;;  %v3276_v14 = vadd.f32 %v7204_v1, %v3275_v7  ;;  %4776 = vpow2.f32 %v2811_v35  ;;  %v3585_v19 = vmul.f32 1.442695, %v3468_v25  ;;  %v4283_v9 = vpack.c.bf16 %v1271_v31, %v1269_v28  ;;  %v9095_v7 = vld [vmem:[#allocation31_spill] sm:$0xff] }
 0x286   :  { %9093 = vst [vmem:[#allocation211_spill] sm:$0xff] %v7208_v37  ;;  %v3662_v54 = vadd.f32 %v7208_v37, %v3661_v29  ;;  %4778 = vpow2.f32 %v3199_v53  ;;  %v3197_v16 = vmul.f32 1.442695, %v3081_v51  ;;  %v3467_v61 = vsub.f32 %v1271_v31, %v5614_v55 }
 0x287   :  { %4780 = vpow2.f32 %v3585_v19  ;;  %4284 = vmatpush1.bf16.msra.mxu0 %v4283_v9  ;;  %v735_v21 = vcombine.high %v9071_v2, %v9071_v2  ;;  %v7217_v50 = vrot.slane %v9094_v32, %v8942_v17  ;;  %v7221_v35 = vmul.f32 %v9095_v7, %v5494_v44 }
 0x288   :  { %v7223_v28 = vpop.eup %4766  ;;  %4782 = vpow2.f32 %v3197_v16  ;;  %v3583_v29 = vmul.f32 1.442695, %v3467_v61  ;;  %v7227_v40 = vmul.f32 %v9095_v7, %v5540_v30  ;;  %v7231_v25 = vmul.f32 %v9095_v7, %v5577_v23 }
 0x289   :  { %9096 = vst [vmem:[#allocation13_spill] sm:$0xff] %v7223_v28  ;;  %v7233_v2 = vpop.eup %4768  ;;  %v3245_v31 = vadd.f32 %v7223_v28, %v7167_v6  ;;  %v960_v53 = vrot.slane %v735_v21, %v8942_v17  ;;  %v956_v51 = vrot.slane %v735_v21, %v9018_v62  ;;  %v7241_v61 = vmul.f32 %v7217_v50, %v5508_v46 }
 0x28a   :  { %9097 = vst [vmem:[#allocation31_spill] sm:$0xff] %v7233_v2  ;;  %v3631_v19 = vadd.f32 %v7233_v2, %v7172_v33  ;;  %4784 = vpow2.f32 %v3583_v29  ;;  %v7247_v9 = vmul.f32 %v7217_v50, %v5558_v0 }
 0x28b   :  { %v1274_v6 = vmul.f32 %v960_v53, %v5508_v46  ;;  %v1276_v32 = vmul.f32 %v960_v53, %v5558_v0  ;;  %v1273_v21 = vmul.f32 %v956_v51, %v5494_v44  ;;  %v1275_v37 = vmul.f32 %v956_v51, %v5540_v30 }
 0x28c   :  { %v7255_v1 = vpop.eup %4770  ;;  %v1278_v33 = vmul.f32 %v960_v53, %v5583_v8  ;;  %v1280_v29 = vmul.f32 %v960_v53, %v5604_v27  ;;  %v1277_v2 = vmul.f32 %v956_v51, %v5577_v23  ;;  %v1279_v28 = vmul.f32 %v956_v51, %v5598_v58 }
 0x28d   :  { %9098 = vst [vmem:[#allocation212_spill] sm:$0xff] %v7255_v1  ;;  %v7261_v38 = vpop.eup %4772  ;;  %v7264_v16 = vadd.f32 %v7255_v1, %v2184_v22  ;;  %v4285_v15 = vpack.c.bf16 %v1276_v32, %v1274_v6  ;;  %v1992_v63 = vsub.f32 %v1274_v6, %v5538_v60  ;;  %v2698_v34 = vsub.f32 %v1276_v32, %v5575_v36 }
 0x28e   :  { %9099 = vst [vmem:[#allocation213_spill] sm:$0xff] %v7261_v38  ;;  %v7268_v48 = vpop.eup %4774  ;;  %v7271_v59 = vadd.f32 %v7261_v38, %v2890_v24  ;;  %v4287_v53 = vpack.c.bf16 %v1275_v37, %v1273_v21  ;;  %v1991_v43 = vsub.f32 %v1273_v21, %v5524_v13  ;;  %v2697_v51 = vsub.f32 %v1275_v37, %v5570_v4 }
 0x28f   :  { %9100 = vst [vmem:[#allocation214_spill] sm:$0xff] %v7268_v48  ;;  %v7275_v57 = vpop.eup %4776  ;;  %v7279_v22 = vadd.f32 %v7268_v48, %v7189_v42  ;;  %4286 = vmatprep.subr.bf16.mxu0 %v4285_v15  ;;  %v2111_v6 = vmul.f32 1.442695, %v1992_v63  ;;  %v2817_v1 = vmul.f32 1.442695, %v2698_v34  ;;  %v4289_v32 = vpack.c.bf16 %v1280_v29, %v1278_v33 }
 0x290   :  { %9101 = vst [vmem:[#allocation215_spill] sm:$0xff] %v7275_v57  ;;  %v7281_v56 = vpop.eup %4778  ;;  %v7284_v24 = vadd.f32 %v7275_v57, %v2859_v41  ;;  %4288 = vmatpush1.bf16.msra.mxu0 %v4287_v53  ;;  %v2109_v38 = vmul.f32 1.442695, %v1991_v43  ;;  %v2815_v21 = vmul.f32 1.442695, %v2697_v51  ;;  %v3084_v37 = vsub.f32 %v1278_v33, %v5594_v5  ;;  %v9174_v57 = vld [vmem:[#allocation108_spill] sm:$0xff] }
 0x291   :  { %9102 = vst [vmem:[#allocation216_spill] sm:$0xff] %v7281_v56  ;;  %v7287_v39 = vpop.eup %4780  ;;  %v7290_v20 = vadd.f32 %v7281_v56, %v3276_v14  ;;  %4786 = vpow2.f32 %v2111_v6  ;;  %4290 = vmatprep.subr.bf16.mxu0 %v4289_v32  ;;  %v3470_v63 = vsub.f32 %v1280_v29, %v5618_v45  ;;  %v4291_v34 = vpack.c.bf16 %v1279_v28, %v1277_v2 }
 0x292   :  { %9103 = vst [vmem:[#allocation217_spill] sm:$0xff] %v7287_v39  ;;  %v7293_v15 = vpop.eup %4782  ;;  %v7296_v41 = vadd.f32 %v7287_v39, %v3662_v54  ;;  %4788 = vpow2.f32 %v2817_v1  ;;  %v3203_v43 = vmul.f32 1.442695, %v3084_v37  ;;  %v3083_v42 = vsub.f32 %v1277_v2, %v5590_v12 }
 0x293   :  { %9104 = vst [vmem:[#allocation218_spill] sm:$0xff] %v7293_v15  ;;  %v7300_v33 = vadd.f32 %v7293_v15, %v3245_v31  ;;  %4790 = vpow2.f32 %v2109_v38  ;;  %v3589_v14 = vmul.f32 1.442695, %v3470_v63  ;;  %v3469_v53 = vsub.f32 %v1279_v28, %v5614_v55 }
 0x294   :  { %v7303_v51 = vpop.eup %4784  ;;  %4792 = vpow2.f32 %v2815_v21  ;;  %4292 = vmatpush1.bf16.msra.mxu0 %v4291_v34  ;;  %v3201_v29 = vmul.f32 1.442695, %v3083_v42  ;;  %v4293_v54 = vpack.c.bf16 %v7247_v9, %v7241_v61  ;;  %v1994_v1 = vsub.f32 %v7241_v61, %v5538_v60 }
 0x295   :  { %9105 = vst [vmem:[#allocation219_spill] sm:$0xff] %v7303_v51  ;;  %v7310_v2 = vadd.f32 %v7303_v51, %v3631_v19  ;;  %4794 = vpow2.f32 %v3203_v43  ;;  %v3587_v31 = vmul.f32 1.442695, %v3469_v53  ;;  %v2700_v38 = vsub.f32 %v7247_v9, %v5575_v36 }
 0x296   :  { %4796 = vpow2.f32 %v3589_v14  ;;  %4294 = vmatprep.subr.bf16.mxu0 %v4293_v54  ;;  %v2115_v28 = vmul.f32 1.442695, %v1994_v1  ;;  %v1993_v6 = vsub.f32 %v7221_v35, %v5524_v13  ;;  %v2699_v32 = vsub.f32 %v7227_v40, %v5570_v4  ;;  %v9108_v54 = vld [vmem:[#allocation26_spill] sm:$0xff] }
 0x297   :  { %4798 = vpow2.f32 %v3201_v29  ;;  %v2821_v21 = vmul.f32 1.442695, %v2700_v38  ;;  %v1286_v61 = vmul.f32 %v7217_v50, %v5583_v8  ;;  %v1288_v19 = vmul.f32 %v7217_v50, %v5604_v27 }
 0x298   :  { %4800 = vpow2.f32 %v3587_v31  ;;  %v9106_v9 = vpack.c.bf16 %v7227_v40, %v7221_v35  ;;  %v2113_v37 = vmul.f32 1.442695, %v1993_v6  ;;  %v2819_v63 = vmul.f32 1.442695, %v2699_v32 }
 0x299   :  { %v1287_v34 = vmul.f32 %v9095_v7, %v5598_v58  ;;  %4802 = vpow2.f32 %v2115_v28  ;;  %v4297_v43 = vpack.c.bf16 %v1288_v19, %v1286_v61  ;;  %v3086_v42 = vsub.f32 %v1286_v61, %v5594_v5 }
 0x29a   :  { %4296 = vmatpush1.bf16.msra.mxu0 %v9106_v9  ;;  %v3472_v14 = vsub.f32 %v1288_v19, %v5618_v45  ;;  %4804 = vpow2.f32 %v2821_v21  ;;  %v3085_v50 = vsub.f32 %v7231_v25, %v5590_v12  ;;  %v976_v1 = vrot.slane %v9108_v54, %v8942_v17 }
 0x29b   :  { %v4299_v53 = vpack.c.bf16 %v1287_v34, %v7231_v25  ;;  %v3471_v35 = vsub.f32 %v1287_v34, %v5614_v55  ;;  %v7333_v40 = vpop.eup %4786  ;;  %4806 = vpow2.f32 %v2113_v37  ;;  %4298 = vmatprep.subr.bf16.mxu0 %v4297_v43  ;;  %v3207_v29 = vmul.f32 1.442695, %v3086_v42 }
 0x29c   :  { %9107 = vst [vmem:[#allocation220_spill] sm:$0xff] %v7333_v40  ;;  %v3593_v7 = vmul.f32 1.442695, %v3472_v14  ;;  %v7337_v31 = vpop.eup %4788  ;;  %v2186_v38 = vadd.f32 %v7333_v40, %v7264_v16  ;;  %4808 = vpow2.f32 %v2819_v63  ;;  %v3205_v28 = vmul.f32 1.442695, %v3085_v50  ;;  %v9112_v16 = vld [vmem:[#allocation32_spill] sm:$0xff] }
 0x29d   :  { %9109 = vst [vmem:[#allocation26_spill] sm:$0xff] %v7337_v31  ;;  %v3591_v25 = vmul.f32 1.442695, %v3471_v35  ;;  %v7341_v6 = vpop.eup %4790  ;;  %v2892_v32 = vadd.f32 %v7337_v31, %v7271_v59  ;;  %4810 = vpow2.f32 %v3207_v29  ;;  %v1290_v21 = vmul.f32 %v976_v1, %v5508_v46 }
 0x29e   :  { %4300 = vmatpush1.bf16.msra.mxu0 %v4299_v53  ;;  %9110 = vst [vmem:[#allocation221_spill] sm:$0xff] %v7341_v6  ;;  %v1292_v61 = vmul.f32 %v976_v1, %v5558_v0  ;;  %v7347_v19 = vpop.eup %4792  ;;  %v2155_v9 = vadd.f32 %v7341_v6, %v7279_v22  ;;  %4812 = vpow2.f32 %v3593_v7  ;;  %v1289_v37 = vmul.f32 %v9112_v16, %v5494_v44 }
 0x29f   :  { %9111 = vst [vmem:[#allocation222_spill] sm:$0xff] %v7347_v19  ;;  %v1291_v63 = vmul.f32 %v9112_v16, %v5540_v30  ;;  %v7355_v34 = vpop.eup %4794  ;;  %v2861_v59 = vadd.f32 %v7347_v19, %v7284_v24  ;;  %4814 = vpow2.f32 %v3205_v28  ;;  %v1996_v42 = vsub.f32 %v1290_v21, %v5538_v60 }
 0x2a0   :  { %9113 = vst [vmem:[#allocation32_spill] sm:$0xff] %v7355_v34  ;;  %v4301_v43 = vpack.c.bf16 %v1292_v61, %v1290_v21  ;;  %v7360_v14 = vpop.eup %4796  ;;  %v3278_v22 = vadd.f32 %v7355_v34, %v7290_v20  ;;  %4816 = vpow2.f32 %v3591_v25  ;;  %v2702_v53 = vsub.f32 %v1292_v61, %v5575_v36 }
 0x2a1   :  { %9114 = vst [vmem:[#allocation223_spill] sm:$0xff] %v7360_v14  ;;  %v4303_v50 = vpack.c.bf16 %v1291_v63, %v1289_v37  ;;  %v7365_v35 = vpop.eup %4798  ;;  %v3664_v29 = vadd.f32 %v7360_v14, %v7296_v41  ;;  %v2119_v24 = vmul.f32 1.442695, %v1996_v42  ;;  %v1995_v7 = vsub.f32 %v1289_v37, %v5524_v13 }
 0x2a2   :  { %9115 = vst [vmem:[#allocation224_spill] sm:$0xff] %v7365_v35  ;;  %4302 = vmatprep.subr.bf16.mxu0 %v4301_v43  ;;  %v2701_v28 = vsub.f32 %v1291_v63, %v5570_v4  ;;  %v7371_v21 = vpop.eup %4800  ;;  %v3247_v20 = vadd.f32 %v7365_v35, %v7300_v33  ;;  %v2825_v25 = vmul.f32 1.442695, %v2702_v53  ;;  %v1294_v61 = vmul.f32 %v976_v1, %v5583_v8 }
 0x2a3   :  { %9116 = vst [vmem:[#allocation225_spill] sm:$0xff] %v7371_v21  ;;  %4304 = vmatpush1.bf16.msra.mxu0 %v4303_v50  ;;  %v1296_v39 = vmul.f32 %v976_v1, %v5604_v27  ;;  %v7377_v51 = vpop.eup %4802  ;;  %v3633_v41 = vadd.f32 %v7371_v21, %v7310_v2  ;;  %4818 = vpow2.f32 %v2119_v24  ;;  %v2117_v37 = vmul.f32 1.442695, %v1995_v7 }
 0x2a4   :  { %9117 = vst [vmem:[#allocation226_spill] sm:$0xff] %v7377_v51  ;;  %v2823_v43 = vmul.f32 1.442695, %v2701_v28  ;;  %v7381_v63 = vpop.eup %4804  ;;  %v2187_v42 = vadd.f32 %v7377_v51, %v2186_v38  ;;  %4820 = vpow2.f32 %v2825_v25  ;;  %v3088_v53 = vsub.f32 %v1294_v61, %v5594_v5 }
 0x2a5   :  { %9118 = vst [vmem:[#allocation227_spill] sm:$0xff] %v7381_v63  ;;  %v4305_v33 = vpack.c.bf16 %v1296_v39, %v1294_v61  ;;  %v7385_v50 = vpop.eup %4806  ;;  %v2893_v1 = vadd.f32 %v7381_v63, %v2892_v32  ;;  %4822 = vpow2.f32 %v2117_v37  ;;  %v3474_v14 = vsub.f32 %v1296_v39, %v5618_v45  ;;  %v9122_v37 = vld [vmem:[#allocation22_spill] sm:$0xff] }
 0x2a6   :  { %9119 = vst [vmem:[#allocation228_spill] sm:$0xff] %v7385_v50  ;;  %v1293_v2 = vmul.f32 %v9112_v16, %v5577_v23  ;;  %v7391_v24 = vpop.eup %4808  ;;  %v2156_v7 = vadd.f32 %v7385_v50, %v2155_v9  ;;  %4824 = vpow2.f32 %v2823_v43  ;;  %v3211_v38 = vmul.f32 1.442695, %v3088_v53 }
 0x2a7   :  { %9120 = vst [vmem:[#allocation229_spill] sm:$0xff] %v7391_v24  ;;  %4306 = vmatprep.subr.bf16.mxu0 %v4305_v33  ;;  %v1295_v28 = vmul.f32 %v9112_v16, %v5598_v58  ;;  %v7396_v25 = vpop.eup %4810  ;;  %v2862_v32 = vadd.f32 %v7391_v24, %v2861_v59  ;;  %v3597_v61 = vmul.f32 1.442695, %v3474_v14  ;;  %v984_v21 = vrot.slane %v9122_v37, %v8942_v17 }
 0x2a8   :  { %9121 = vst [vmem:[#allocation230_spill] sm:$0xff] %v7396_v25  ;;  %v3087_v39 = vsub.f32 %v1293_v2, %v5590_v12  ;;  %v7402_v34 = vpop.eup %4812  ;;  %v3279_v9 = vadd.f32 %v7396_v25, %v3278_v22  ;;  %4826 = vpow2.f32 %v3211_v38 }
 0x2a9   :  { %9123 = vst [vmem:[#allocation22_spill] sm:$0xff] %v7402_v34  ;;  %v4307_v43 = vpack.c.bf16 %v1295_v28, %v1293_v2  ;;  %v3473_v33 = vsub.f32 %v1295_v28, %v5614_v55  ;;  %v7406_v53 = vpop.eup %4814  ;;  %v3665_v16 = vadd.f32 %v7402_v34, %v3664_v29  ;;  %4828 = vpow2.f32 %v3597_v61  ;;  %v9126_v2 = vld [vmem:[#allocation33_spill] sm:$0xff] }
 0x2aa   :  { %9124 = vst [vmem:[#allocation231_spill] sm:$0xff] %v7406_v53  ;;  %v3209_v59 = vmul.f32 1.442695, %v3087_v39  ;;  %v1298_v14 = vmul.f32 %v984_v21, %v5508_v46  ;;  %v7410_v35 = vpop.eup %4816  ;;  %v3248_v37 = vadd.f32 %v7406_v53, %v3247_v20  ;;  %v1300_v22 = vmul.f32 %v984_v21, %v5558_v0 }
 0x2ab   :  { %9125 = vst [vmem:[#allocation232_spill] sm:$0xff] %v7410_v35  ;;  %4308 = vmatpush1.bf16.msra.mxu0 %v4307_v43  ;;  %v3595_v56 = vmul.f32 1.442695, %v3473_v33  ;;  %v1297_v38 = vmul.f32 %v9126_v2, %v5494_v44  ;;  %v3634_v28 = vadd.f32 %v7410_v35, %v3633_v41  ;;  %v1299_v61 = vmul.f32 %v9126_v2, %v5540_v30 }
 0x2ac   :  { %4830 = vpow2.f32 %v3209_v59  ;;  %v1998_v29 = vsub.f32 %v1298_v14, %v5538_v60  ;;  %v4309_v39 = vpack.c.bf16 %v1300_v22, %v1298_v14  ;;  %v2704_v34 = vsub.f32 %v1300_v22, %v5575_v36 }
 0x2ad   :  { %4832 = vpow2.f32 %v3595_v56  ;;  %v1997_v20 = vsub.f32 %v1297_v38, %v5524_v13  ;;  %v7422_v43 = vpop.eup %4818  ;;  %v4311_v25 = vpack.c.bf16 %v1299_v61, %v1297_v38  ;;  %v2703_v53 = vsub.f32 %v1299_v61, %v5570_v4 }
 0x2ae   :  { %9127 = vst [vmem:[#allocation33_spill] sm:$0xff] %v7422_v43  ;;  %v2123_v33 = vmul.f32 1.442695, %v1998_v29  ;;  %v1302_v41 = vmul.f32 %v984_v21, %v5583_v8  ;;  %v7426_v59 = vpop.eup %4820  ;;  %v2188_v35 = vadd.f32 %v7422_v43, %v2187_v42  ;;  %4310 = vmatprep.subr.bf16.mxu0 %v4309_v39  ;;  %v2829_v15 = vmul.f32 1.442695, %v2704_v34 }
 0x2af   :  { %9128 = vst [vmem:[#allocation233_spill] sm:$0xff] %v7426_v59  ;;  %v2121_v56 = vmul.f32 1.442695, %v1997_v20  ;;  %v1304_v14 = vmul.f32 %v984_v21, %v5604_v27  ;;  %v7430_v22 = vpop.eup %4822  ;;  %v2894_v63 = vadd.f32 %v7426_v59, %v2893_v1  ;;  %4312 = vmatpush1.bf16.msra.mxu0 %v4311_v25  ;;  %v2827_v38 = vmul.f32 1.442695, %v2703_v53 }
 0x2b0   :  { %9129 = vst [vmem:[#allocation234_spill] sm:$0xff] %v7430_v22  ;;  %4834 = vpow2.f32 %v2123_v33  ;;  %v3090_v29 = vsub.f32 %v1302_v41, %v5594_v5  ;;  %v7434_v61 = vpop.eup %4824  ;;  %v2157_v24 = vadd.f32 %v7430_v22, %v2156_v7  ;;  %v1301_v1 = vmul.f32 %v9126_v2, %v5577_v23 }
 0x2b1   :  { %9130 = vst [vmem:[#allocation235_spill] sm:$0xff] %v7434_v61  ;;  %4836 = vpow2.f32 %v2829_v15  ;;  %v4313_v42 = vpack.c.bf16 %v1304_v14, %v1302_v41  ;;  %v3476_v34 = vsub.f32 %v1304_v14, %v5618_v45  ;;  %v2863_v39 = vadd.f32 %v7434_v61, %v2862_v32 }
 0x2b2   :  { %4838 = vpow2.f32 %v2121_v56  ;;  %v3215_v21 = vmul.f32 1.442695, %v3090_v29  ;;  %v7441_v20 = vpop.eup %4826  ;;  %v1303_v53 = vmul.f32 %v9126_v2, %v5598_v58  ;;  %v736_v15 = vcombine.high %v9108_v54, %v9108_v54 }
 0x2b3   :  { %9131 = vst [vmem:[#allocation236_spill] sm:$0xff] %v7441_v20  ;;  %4840 = vpow2.f32 %v2827_v38  ;;  %4314 = vmatprep.subr.bf16.mxu0 %v4313_v42  ;;  %v3601_v25 = vmul.f32 1.442695, %v3476_v34  ;;  %v7447_v7 = vpop.eup %4828  ;;  %v3280_v32 = vadd.f32 %v7441_v20, %v3279_v9  ;;  %v3089_v33 = vsub.f32 %v1301_v1, %v5590_v12 }
 0x2b4   :  { %9132 = vst [vmem:[#allocation237_spill] sm:$0xff] %v7447_v7  ;;  %4842 = vpow2.f32 %v3215_v21  ;;  %v3666_v41 = vadd.f32 %v7447_v7, %v3665_v16  ;;  %v4315_v56 = vpack.c.bf16 %v1303_v53, %v1301_v1  ;;  %v3475_v14 = vsub.f32 %v1303_v53, %v5614_v55 }
 0x2b5   :  { %4844 = vpow2.f32 %v3601_v25  ;;  %v3213_v29 = vmul.f32 1.442695, %v3089_v33  ;;  %v992_v2 = vrot.slane %v736_v15, %v8942_v17  ;;  %v988_v54 = vrot.slane %v736_v15, %v9018_v62 }
 0x2b6   :  { %v7453_v38 = vpop.eup %4830  ;;  %4316 = vmatpush1.bf16.msra.mxu0 %v4315_v56  ;;  %v3599_v34 = vmul.f32 1.442695, %v3475_v14 }
 0x2b7   :  { %9133 = vst [vmem:[#allocation238_spill] sm:$0xff] %v7453_v38  ;;  %v7457_v42 = vpop.eup %4832  ;;  %v3249_v9 = vadd.f32 %v7453_v38, %v3248_v37  ;;  %4846 = vpow2.f32 %v3213_v29  ;;  %v1306_v16 = vmul.f32 %v992_v2, %v5508_v46  ;;  %v1308_v1 = vmul.f32 %v992_v2, %v5558_v0 }
 0x2b8   :  { %9134 = vst [vmem:[#allocation239_spill] sm:$0xff] %v7457_v42  ;;  %v3635_v21 = vadd.f32 %v7457_v42, %v3634_v28  ;;  %4848 = vpow2.f32 %v3599_v34  ;;  %v1305_v25 = vmul.f32 %v988_v54, %v5494_v44  ;;  %v1307_v53 = vmul.f32 %v988_v54, %v5540_v30 }
 0x2b9   :  { %v1310_v15 = vmul.f32 %v992_v2, %v5583_v8  ;;  %v4317_v7 = vpack.c.bf16 %v1308_v1, %v1306_v16  ;;  %v2000_v37 = vsub.f32 %v1306_v16, %v5538_v60  ;;  %v2706_v56 = vsub.f32 %v1308_v1, %v5575_v36 }
 0x2ba   :  { %v7466_v33 = vpop.eup %4834  ;;  %v1312_v28 = vmul.f32 %v992_v2, %v5604_v27  ;;  %v4319_v0 = vpack.c.bf16 %v1307_v53, %v1305_v25  ;;  %v1999_v44 = vsub.f32 %v1305_v25, %v5524_v13  ;;  %v2705_v30 = vsub.f32 %v1307_v53, %v5570_v4 }
 0x2bb   :  { %9135 = vst [vmem:[#allocation240_spill] sm:$0xff] %v7466_v33  ;;  %v7471_v14 = vpop.eup %4836  ;;  %v2189_v46 = vadd.f32 %v7466_v33, %v2188_v35  ;;  %4318 = vmatprep.subr.bf16.mxu0 %v4317_v7  ;;  %v2127_v34 = vmul.f32 1.442695, %v2000_v37  ;;  %v2833_v60 = vmul.f32 1.442695, %v2706_v56  ;;  %v3092_v1 = vsub.f32 %v1310_v15, %v5594_v5  ;;  %v9177_v33 = vld [vmem:[#allocation119_spill] sm:$0xff] }
 0x2bc   :  { %9136 = vst [vmem:[#allocation241_spill] sm:$0xff] %v7471_v14  ;;  %v7476_v29 = vpop.eup %4838  ;;  %v2895_v8 = vadd.f32 %v7471_v14, %v2894_v63  ;;  %v4321_v16 = vpack.c.bf16 %v1312_v28, %v1310_v15  ;;  %4320 = vmatpush1.bf16.msra.mxu0 %v4319_v0  ;;  %v2125_v2 = vmul.f32 1.442695, %v1999_v44  ;;  %v2831_v35 = vmul.f32 1.442695, %v2705_v30  ;;  %v102_v44 = vld [vmem:[%s8491_s2 + $0xb8] sm:$0xff] }
 0x2bd   :  { %9137 = vst [vmem:[#allocation242_spill] sm:$0xff] %v7476_v29  ;;  %v7479_v36 = vpop.eup %4840  ;;  %v2158_v27 = vadd.f32 %v7476_v29, %v2157_v24  ;;  %4850 = vpow2.f32 %v2127_v34  ;;  %v3478_v63 = vsub.f32 %v1312_v28, %v5618_v45  ;;  %v1309_v7 = vmul.f32 %v988_v54, %v5577_v23  ;;  %v9168_v14 = vld [vmem:[#allocation56_spill] sm:$0xff] }
 0x2be   :  { %9138 = vst [vmem:[#allocation243_spill] sm:$0xff] %v7479_v36  ;;  %v7483_v13 = vpop.eup %4842  ;;  %v2864_v4 = vadd.f32 %v7479_v36, %v2863_v39  ;;  %4322 = vmatprep.subr.bf16.mxu0 %v4321_v16  ;;  %4852 = vpow2.f32 %v2833_v60  ;;  %v3219_v24 = vmul.f32 1.442695, %v3092_v1  ;;  %v1311_v37 = vmul.f32 %v988_v54, %v5598_v58  ;;  %v93_v54 = vld [vmem:[%s8491_s2 + $0x70] sm:$0xff]  ;;  %v9169_v36 = vld [vmem:[#allocation76_spill] sm:$0xff] }
 0x2bf   :  { %9139 = vst [vmem:[#allocation244_spill] sm:$0xff] %v7483_v13  ;;  %v7488_v25 = vpop.eup %4844  ;;  %v3281_v53 = vadd.f32 %v7483_v13, %v3280_v32  ;;  %4854 = vpow2.f32 %v2125_v2  ;;  %v3605_v15 = vmul.f32 1.442695, %v3478_v63  ;;  %v3091_v39 = vsub.f32 %v1309_v7, %v5590_v12 }
 0x2c0   :  { %9140 = vst [vmem:[#allocation245_spill] sm:$0xff] %v7488_v25  ;;  %v3667_v5 = vadd.f32 %v7488_v25, %v3666_v41  ;;  %4856 = vpow2.f32 %v2831_v35  ;;  %v4323_v56 = vpack.c.bf16 %v1311_v37, %v1309_v7  ;;  %v3477_v45 = vsub.f32 %v1311_v37, %v5614_v55  ;;  %v85_v41 = vld [vmem:[%s8491_s2 + $0x30] sm:$0xff]  ;;  %v94_v55 = vld [vmem:[%s8491_s2 + $0x78] sm:$0xff] }
 0x2c1   :  { %v7495_v28 = vpop.eup %4846  ;;  %4858 = vpow2.f32 %v3219_v24  ;;  %v3217_v23 = vmul.f32 1.442695, %v3091_v39  ;;  %v101_v35 = vld [vmem:[%s8491_s2 + $0xb0] sm:$0xff] }
 0x2c2   :  { %9141 = vst [vmem:[#allocation246_spill] sm:$0xff] %v7495_v28  ;;  %v7497_v0 = vpop.eup %4848  ;;  %v3250_v32 = vadd.f32 %v7495_v28, %v3249_v9  ;;  %4860 = vpow2.f32 %v3605_v15  ;;  %4324 = vmatpush1.bf16.msra.mxu0 %v4323_v56  ;;  %v3603_v58 = vmul.f32 1.442695, %v3477_v45 }
 0x2c3   :  { %9142 = vst [vmem:[#allocation247_spill] sm:$0xff] %v7497_v0  ;;  %v3636_v12 = vadd.f32 %v7497_v0, %v3635_v21  ;;  %4862 = vpow2.f32 %v3217_v23 }
 0x2c4   :  { %4864 = vpow2.f32 %v3603_v58 }
 0x2c5   :  { %1645 = vmatmul.mubr.f32.vlgmr.msra.gmra.mrb[0].mxu0 %v85_v41 }
 0x2c6   :  { %1650 = vmatprep.mubr.f32.mxu0 %v94_v55 }
 0x2c7   :  { %v7510_v9 = vpop.eup %4850 }
 0x2c8   :  { %9143 = vst [vmem:[#allocation248_spill] sm:$0xff] %v7510_v9  ;;  %v7515_v30 = vpop.eup %4852  ;;  %v2190_v21 = vadd.f32 %v7510_v9, %v2189_v46  ;;  %v110_v46 = vld [vmem:[%s8491_s2 + $0xf8] sm:$0xff] }
 0x2c9   :  { %9144 = vst [vmem:[#allocation249_spill] sm:$0xff] %v7515_v30  ;;  %v7518_v34 = vpop.eup %4854  ;;  %v2896_v60 = vadd.f32 %v7515_v30, %v2895_v8  ;;  %1651 = vmatmul.mubr.f32.gmra.mrb[2].mxu0 %v93_v54  ;;  %v9175_v9 = vld [vmem:[#allocation104_spill] sm:$0xff] }
 0x2ca   :  { %9145 = vst [vmem:[#allocation250_spill] sm:$0xff] %v7518_v34  ;;  %v7521_v16 = vpop.eup %4856  ;;  %v2159_v2 = vadd.f32 %v7518_v34, %v2158_v27  ;;  %1656 = vmatprep.mubr.f32.mxu0 %v102_v44  ;;  %4866 = vrcp.f32 %v2190_v21  ;;  %v9176_v34 = vld [vmem:[#allocation123_spill] sm:$0xff] }
 0x2cb   :  { %9146 = vst [vmem:[#allocation251_spill] sm:$0xff] %v7521_v16  ;;  %v7527_v1 = vpop.eup %4858  ;;  %v2865_v63 = vadd.f32 %v7521_v16, %v2864_v4  ;;  %v109_v4 = vld [vmem:[%s8491_s2 + $0xf0] sm:$0xff]  ;;  %4868 = vrcp.f32 %v2896_v60  ;;  %v9167_v16 = vld [vmem:[#allocation60_spill] sm:$0xff]  ;;  %s4908_s2 = smov [#allocation2]  }
 0x2cc   :  { %9147 = vst [vmem:[#allocation252_spill] sm:$0xff] %v7527_v1  ;;  %v7533_v7 = vpop.eup %4860  ;;  %v3282_v8 = vadd.f32 %v7527_v1, %v3281_v53  ;;  %4870 = vrcp.f32 %v2159_v2  ;;  %s3806_s7 = sshll.u32 %s4908_s2, 4  ;;  %s3807_s7 = int_to_ptr.vmem [resolvable:$true] %s3806_s7 }
 0x2cd   :  { %9148 = vst [vmem:[#allocation253_spill] sm:$0xff] %v7533_v7  ;;  %v7536_v24 = vpop.eup %4862  ;;  %v7539_v27 = vadd.f32 %v7533_v7, %v3667_v5  ;;  %1657 = vmatmul.mubr.f32.gmra.mrb[4].mxu0 %v101_v35  ;;  %v9157_v7 = vld [vmem:[#allocation5_spill] sm:$0xff]  ;;  %4872 = vrcp.f32 %v2865_v63  ;;  %s4882_s8 = scalar_lea.vmem %s3807_s7, 1024  ;;  %p4887_p1 = scmp.lt.s32.totalorder %s3807_s7, %s3807_s7 }
 0x2ce   :  { %9149 = vst [vmem:[#allocation254_spill] sm:$0xff] %v7536_v24  ;;  %v7541_v37 = vpop.eup %4864  ;;  %v7544_v15 = vadd.f32 %v7536_v24, %v3250_v32  ;;  %1662 = vmatprep.mubr.f32.mxu0 %v110_v46  ;;  %4874 = vrcp.f32 %v3282_v8  ;;  %p4883_p0 = scmp.ne.s32.totalorder %s3807_s7, %s4882_s8  ;;  %p4888_p2 = scmp.lt.s32.totalorder %s4882_s8, %s4882_s8 }
 0x2cf   :  { %9150 = vst [vmem:[#allocation255_spill] sm:$0xff] %v7539_v27  ;;  %9151 = vst [vmem:[#allocation256_spill] sm:$0xff] %v7541_v37  ;;  %v7550_v39 = vadd.f32 %v7541_v37, %v3636_v12 }
 0x2d0   :  { %9152 = vst [vmem:[#allocation257_spill] sm:$0xff] %v7544_v15  ;;  %v9190_v15 = vld [vmem:[#allocation105_spill] sm:$0xff]  ;;  %p4889_p3 = por %p4888_p2, %p4887_p1 }
 0x2d1   :  { %9153 = vst [vmem:[#allocation258_spill] sm:$0xff] %v7550_v39  ;;  %1663 = vmatmul.mubr.f32.gmra.mrb[6].mxu0 %v109_v4 }
 0x2d2   :  { %p4890_p4 = pnand %p4889_p3, %p4883_p0 }
 0x2d4   :  { %v7610_v42 = vpop.eup %4866 }
 0x2d5   :  { %9162 = vst [vmem:[#allocation266_spill] sm:$0xff] %v7610_v42  ;;  %v7624_v13 = vpop.eup %4868  ;;  %v9164_v42 = vld [vmem:[#allocation42_spill] sm:$0xff] }
 0x2d6   :  { %9163 = vst [vmem:[#allocation267_spill] sm:$0xff] %v7624_v13  ;;  %v7636_v30 = vpop.eup %4870 }
 0x2d7   :  { %9166 = vst [vmem:[#allocation42_spill] sm:$0xff] %v7636_v30  ;;  %v7646_v31 = vpop.eup %4872 }
 0x2d8   :  { %v7664_v22 = vpop.eup %4874 }
 0x2d9   :  { %9180 = vst [vmem:[#allocation60_spill] sm:$0xff] %v7664_v22  ;;  %v9184_v22 = vld [vmem:[#allocation57_spill] sm:$0xff] }
 0x324   :  { %v1379_v53 = vpop.f32.mrb[16].mxu1 }
 0x325   :  { %v1381_v56 = vpop.f32.mrb[17].mxu1 }
 0x328   :  { %v1385_v45 = vpop.f32.mrb[18].mxu1 }
 0x329   :  { %v1387_v5 = vpop.f32.mrb[19].mxu1 }
 0x32c   :  { %v1391_v23 = vpop.f32.mrb[20].mxu1 }
 0x32d   :  { %v7552_v58 = vpop.f32.mrb[21].mxu1 }
 0x32e   :  { %9154 = vst [vmem:[#allocation259_spill] sm:$0xff] %v7552_v58 }
 0x330   :  { %v7554_v44 = vpop.f32.mrb[22].mxu1 }
 0x331   :  { %9155 = vst [vmem:[#allocation260_spill] sm:$0xff] %v7554_v44  ;;  %v7556_v12 = vpop.f32.mrb[23].mxu1  ;;  %v9194_v44 = vld [vmem:[#allocation132_spill] sm:$0xff] }
 0x332   :  { %9156 = vst [vmem:[#allocation261_spill] sm:$0xff] %v7556_v12  ;;  %v9189_v12 = vld [vmem:[#allocation109_spill] sm:$0xff] }
 0x398   :  { %v1646_v41 = vpop.f32.mrb[0].mxu0 }
 0x399   :  { %v4325_v55 = vadd.f32 %v1646_v41, %v1379_v53  ;;  %v1648_v32 = vpop.f32.mrb[1].mxu0 }
 0x39a   :  { %v4326_v54 = vadd.f32 %v1648_v32, %v1381_v56 }
 0x39c   :  { %v1677_v35 = vcombine.low %v4325_v55, %v4326_v54  ;;  %v1678_v46 = vcombine.high %v4325_v55, %v4326_v54  ;;  %v1652_v27 = vpop.f32.mrb[2].mxu0 }
 0x39d   :  { %v7558_v4 = vadd.f32 %v1652_v27, %v1385_v45  ;;  %v1654_v39 = vpop.f32.mrb[3].mxu0 }
 0x39e   :  { %v1685_v37 = vrot.slane %v1677_v35, %v9157_v7  ;;  %v1692_v25 = vrot.slane %v1678_v46, %v9157_v7  ;;  %v7562_v53 = vadd.f32 %v1654_v39, %v1387_v5 }
 0x3a0   :  { %v1693_v56 = vcombine.high %v1685_v37, %v1685_v37  ;;  %v1694_v41 = vcombine.high %v1692_v25, %v1692_v25  ;;  %v1701_v21 = vrot.slane %v1685_v37, %v9157_v7  ;;  %v1708_v55 = vrot.slane %v1692_v25, %v9157_v7  ;;  %v1658_v32 = vpop.f32.mrb[4].mxu0 }
 0x3a1   :  { %v7570_v27 = vadd.f32 %v1658_v32, %v1391_v23  ;;  %v7572_v45 = vpop.f32.mrb[5].mxu0 }
 0x3a2   :  { %9159 = vst [vmem:[#allocation263_spill] sm:$0xff] %v7572_v45  ;;  %v1715_v63 = vrot.slane %v1693_v56, %v9157_v7  ;;  %v1722_v39 = vrot.slane %v1694_v41, %v9157_v7  ;;  %v1723_v5 = vcombine.high %v1701_v21, %v1701_v21  ;;  %v1724_v37 = vcombine.high %v1708_v55, %v1708_v55 }
 0x3a3   :  { %9158 = vst [vmem:[#allocation262_spill] sm:$0xff] %v7570_v27  ;;  %v7577_v25 = vrot.slane %v1701_v21, %v9018_v62  ;;  %v7580_v8 = vrot.slane %v1701_v21, %v8942_v17  ;;  %v7583_v54 = vrot.slane %v1708_v55, %v9018_v62  ;;  %v7586_v23 = vrot.slane %v1708_v55, %v8942_v17 }
 0x3a4   :  { %v1725_v35 = vcombine.high %v1715_v63, %v1715_v63  ;;  %v1726_v46 = vcombine.high %v1722_v39, %v1722_v39  ;;  %v7589_v56 = vrot.slane %v1715_v63, %v9018_v62  ;;  %v7592_v41 = vrot.slane %v1715_v63, %v8942_v17  ;;  %v7594_v32 = vpop.f32.mrb[6].mxu0 }
 0x3a5   :  { %9160 = vst [vmem:[#allocation264_spill] sm:$0xff] %v7594_v32  ;;  %v7597_v2 = vrot.slane %v1723_v5, %v9018_v62  ;;  %v7600_v21 = vrot.slane %v1723_v5, %v8942_v17  ;;  %v7603_v60 = vrot.slane %v1722_v39, %v9018_v62  ;;  %v7606_v55 = vrot.slane %v1722_v39, %v8942_v17  ;;  %v7608_v0 = vpop.f32.mrb[7].mxu0  ;;  %v9193_v32 = vld [vmem:[#allocation11_spill] sm:$0xff] }
 0x3a6   :  { %9161 = vst [vmem:[#allocation265_spill] sm:$0xff] %v7608_v0  ;;  %v7613_v63 = vrot.slane %v1725_v35, %v9018_v62  ;;  %v7616_v1 = vrot.slane %v1725_v35, %v8942_v17  ;;  %v7619_v24 = vrot.slane %v1724_v37, %v9018_v62  ;;  %v7622_v5 = vrot.slane %v1724_v37, %v8942_v17  ;;  %v9165_v35 = vld [vmem:[#allocation40_spill] sm:$0xff]  ;;  %v9185_v0 = vld [vmem:[#allocation77_spill] sm:$0xff] }
 0x3a7   :  { %v7627_v39 = vrot.slane %v1726_v46, %v9018_v62  ;;  %v7630_v28 = vrot.slane %v1726_v46, %v8942_v17  ;;  %v2511_v20 = vmul.f32 %v9164_v42, %v7577_v25  ;;  %v2512_v38 = vmul.f32 %v9165_v35, %v7580_v8  ;;  %v9170_v46 = vld [vmem:[#allocation72_spill] sm:$0xff]  ;;  %9171 = vst [vmem:[#allocation40_spill] sm:$0xff] %v7646_v31 }
 0x3a8   :  { %v2513_v37 = vmul.f32 %v9167_v16, %v7589_v56  ;;  %v2514_v13 = vmul.f32 %v9168_v14, %v7592_v41  ;;  %v2515_v59 = vmul.f32 %v9169_v36, %v7597_v2  ;;  %v2516_v61 = vmul.f32 %v9170_v46, %v7600_v21  ;;  %v9172_v42 = vld [vmem:[#allocation92_spill] sm:$0xff] }
 0x3a9   :  { %v2517_v19 = vmul.f32 %v9172_v42, %v7613_v63  ;;  %v9173_v35 = vld [vmem:[#allocation88_spill] sm:$0xff]  ;;  %v2519_v16 = vmul.f32 %v9174_v57, %v7583_v54  ;;  %v2520_v14 = vmul.f32 %v9175_v9, %v7586_v23  ;;  %v2521_v36 = vmul.f32 %v9176_v34, %v7603_v60  ;;  %v9179_v42 = vld [vmem:[#allocation131_spill] sm:$0xff] }
 0x3aa   :  { %v2518_v30 = vmul.f32 %v9173_v35, %v7616_v1  ;;  %v2522_v46 = vmul.f32 %v9177_v33, %v7606_v55  ;;  %v9178_v31 = vld [vmem:[#allocation36_spill] sm:$0xff]  ;;  %v2524_v43 = vmul.f32 %v9179_v42, %v7622_v5  ;;  %v7668_v57 = vmul.f32 %v6400_v49, %v7627_v39  ;;  %v9181_v33 = vld [vmem:[#allocation45_spill] sm:$0xff] }
 0x3ab   :  { %v2523_v29 = vmul.f32 %v9178_v31, %v7619_v24  ;;  %v7672_v9 = vmul.f32 %v6388_v18, %v7630_v28  ;;  %v2575_v34 = vadd.f32 %v2513_v37, %v2511_v20  ;;  %v2606_v35 = vadd.f32 %v2514_v13, %v2512_v38  ;;  %v9182_v31 = vld [vmem:[#allocation43_spill] sm:$0xff]  ;;  %v9183_v42 = vld [vmem:[#allocation61_spill] sm:$0xff] }
 0x3ac   :  { %v2897_v51 = vmul.f32 %v9181_v33, %v7577_v25  ;;  %v2898_v50 = vmul.f32 %v9182_v31, %v7580_v8  ;;  %v2899_v40 = vmul.f32 %v9183_v42, %v7589_v56  ;;  %v2900_v6 = vmul.f32 %v9184_v22, %v7592_v41  ;;  %v9186_v20 = vld [vmem:[#allocation73_spill] sm:$0xff] }
 0x3ad   :  { %v2576_v49 = vadd.f32 %v2575_v34, %v2515_v59  ;;  %v2607_v48 = vadd.f32 %v2606_v35, %v2516_v61  ;;  %v2901_v18 = vmul.f32 %v9185_v0, %v7597_v2  ;;  %v2902_v38 = vmul.f32 %v9186_v20, %v7600_v21  ;;  %v9187_v13 = vld [vmem:[#allocation93_spill] sm:$0xff]  ;;  %v9191_v34 = vld [vmem:[#allocation35_spill] sm:$0xff]  ;;  %v9192_v35 = vld [vmem:[#allocation120_spill] sm:$0xff] }
 0x3ae   :  { %v2903_v37 = vmul.f32 %v9187_v13, %v7613_v63  ;;  %v9188_v33 = vld [vmem:[#allocation89_spill] sm:$0xff]  ;;  %v2905_v42 = vmul.f32 %v9189_v12, %v7583_v54  ;;  %v2906_v22 = vmul.f32 %v9190_v15, %v7586_v23  ;;  %v2907_v0 = vmul.f32 %v9191_v34, %v7603_v60  ;;  %v9196_v34 = vld [vmem:[#allocation52_spill] sm:$0xff] }
 0x3af   :  { %v2904_v31 = vmul.f32 %v9188_v33, %v7616_v1  ;;  %v2577_v59 = vadd.f32 %v2576_v49, %v2517_v19  ;;  %v2608_v61 = vadd.f32 %v2607_v48, %v2518_v30  ;;  %v2908_v20 = vmul.f32 %v9192_v35, %v7606_v55 }
 0x3b0   :  { %v2909_v13 = vmul.f32 %v9193_v32, %v7619_v24  ;;  %v2910_v33 = vmul.f32 %v9194_v44, %v7622_v5  ;;  %v7704_v12 = vmul.f32 %v6407_v26, %v7627_v39  ;;  %v7708_v19 = vmul.f32 %v6391_v47, %v7630_v28  ;;  %v9197_v32 = vld [vmem:[#allocation48_spill] sm:$0xff] }
 0x3b1   :  { %v2578_v48 = vadd.f32 %v2577_v59, %v2519_v16  ;;  %v2609_v30 = vadd.f32 %v2608_v61, %v2520_v14  ;;  %v2961_v15 = vadd.f32 %v2899_v40, %v2897_v51  ;;  %v2992_v49 = vadd.f32 %v2900_v6, %v2898_v50  ;;  %v9198_v44 = vld [vmem:[#allocation68_spill] sm:$0xff] }
 0x3b2   :  { %9195 = vst [vmem:[#allocation56_spill] sm:$0xff] %v7708_v19  ;;  %v3283_v35 = vmul.f32 %v9196_v34, %v7577_v25  ;;  %v3284_v27 = vmul.f32 %v9197_v32, %v7580_v8  ;;  %v3285_v45 = vmul.f32 %v9198_v44, %v7589_v56  ;;  %v9199_v26 = vld [vmem:[#allocation64_spill] sm:$0xff] }
 0x3b3   :  { %v3286_v58 = vmul.f32 %v9199_v26, %v7592_v41  ;;  %v2579_v17 = vadd.f32 %v2578_v48, %v2521_v36  ;;  %v2610_v62 = vadd.f32 %v2609_v30, %v2522_v46  ;;  %v2962_v47 = vadd.f32 %v2961_v15, %v2901_v18  ;;  %v9200_v16 = vld [vmem:[#allocation84_spill] sm:$0xff]  ;;  %v9204_v36 = vld [vmem:[#allocation115_spill] sm:$0xff]  ;;  %v9207_v15 = vld [vmem:[#allocation125_spill] sm:$0xff] }
 0x3b4   :  { %v2993_v19 = vadd.f32 %v2992_v49, %v2902_v38  ;;  %v3287_v51 = vmul.f32 %v9200_v16, %v7597_v2  ;;  %v9201_v40 = vld [vmem:[#allocation80_spill] sm:$0xff]  ;;  %v3291_v46 = vmul.f32 %v9204_v36, %v7583_v54  ;;  %v9206_v48 = vld [vmem:[#allocation127_spill] sm:$0xff]  ;;  %v3294_v49 = vmul.f32 %v9207_v15, %v7606_v55  ;;  %v9213_v15 = vld [vmem:[#allocation65_spill] sm:$0xff] }
 0x3b5   :  { %v3288_v6 = vmul.f32 %v9201_v40, %v7600_v21  ;;  %v9202_v50 = vld [vmem:[#allocation100_spill] sm:$0xff]  ;;  %v2580_v34 = vadd.f32 %v2579_v17, %v2523_v29  ;;  %v2611_v32 = vadd.f32 %v2610_v62, %v2524_v43  ;;  %v2963_v44 = vadd.f32 %v2962_v47, %v2903_v37 }
 0x3b6   :  { %v3289_v14 = vmul.f32 %v9202_v50, %v7613_v63  ;;  %v9203_v59 = vld [vmem:[#allocation96_spill] sm:$0xff]  ;;  %v2994_v26 = vadd.f32 %v2993_v19, %v2904_v31  ;;  %v3293_v30 = vmul.f32 %v9206_v48, %v7603_v60  ;;  %v7740_v29 = vmul.f32 %v6485_v11, %v7627_v39  ;;  %v9212_v48 = vld [vmem:[#allocation69_spill] sm:$0xff] }
 0x3b7   :  { %v3290_v61 = vmul.f32 %v9203_v59, %v7616_v1  ;;  %v9205_v18 = vld [vmem:[#allocation112_spill] sm:$0xff]  ;;  %v2964_v16 = vadd.f32 %v2963_v44, %v2905_v42  ;;  %v7744_v37 = vmul.f32 %v6450_v10, %v7630_v28  ;;  %v3347_v31 = vadd.f32 %v3285_v45, %v3283_v35  ;;  %v9210_v42 = vld [vmem:[#allocation53_spill] sm:$0xff] }
 0x3b8   :  { %v3292_v38 = vmul.f32 %v9205_v18, %v7586_v23  ;;  %v2995_v40 = vadd.f32 %v2994_v26, %v2906_v22  ;;  %v9208_v50 = vld [vmem:[#allocation140_spill] sm:$0xff]  ;;  %v3378_v19 = vadd.f32 %v3286_v58, %v3284_v27  ;;  %v3669_v22 = vmul.f32 %v9210_v42, %v7577_v25  ;;  %v9211_v44 = vld [vmem:[#allocation49_spill] sm:$0xff] }
 0x3b9   :  { %v3295_v17 = vmul.f32 %v9208_v50, %v7619_v24  ;;  %v9209_v62 = vld [vmem:[#allocation136_spill] sm:$0xff]  ;;  %v2965_v47 = vadd.f32 %v2964_v16, %v2907_v0  ;;  %v3670_v26 = vmul.f32 %v9211_v44, %v7580_v8  ;;  %v3348_v36 = vadd.f32 %v3347_v31, %v3287_v51  ;;  %v9214_v58 = vld [vmem:[#allocation85_spill] sm:$0xff] }
 0x3ba   :  { %v3296_v43 = vmul.f32 %v9209_v62, %v7622_v5  ;;  %v2996_v59 = vadd.f32 %v2995_v40, %v2908_v20  ;;  %v3379_v18 = vadd.f32 %v3378_v19, %v3288_v6  ;;  %v3671_v11 = vmul.f32 %v9212_v48, %v7589_v56  ;;  %v9215_v45 = vld [vmem:[#allocation81_spill] sm:$0xff]  ;;  %v9218_v56 = vld [vmem:[#allocation116_spill] sm:$0xff] }
 0x3bb   :  { %v3672_v50 = vmul.f32 %v9213_v15, %v7592_v41  ;;  %v2966_v10 = vadd.f32 %v2965_v47, %v2909_v13  ;;  %v3673_v27 = vmul.f32 %v9214_v58, %v7597_v2  ;;  %v3674_v0 = vmul.f32 %v9215_v45, %v7600_v21  ;;  %v9216_v8 = vld [vmem:[#allocation101_spill] sm:$0xff]  ;;  %v9219_v41 = vld [vmem:[#allocation34_spill] sm:$0xff]  ;;  %v9221_v40 = vld [vmem:[#allocation8_spill] sm:$0xff] }
 0x3bc   :  { %v2997_v62 = vadd.f32 %v2996_v59, %v2910_v33  ;;  %v3349_v25 = vadd.f32 %v3348_v36, %v3289_v14  ;;  %v3380_v20 = vadd.f32 %v3379_v18, %v3290_v61  ;;  %v3675_v35 = vmul.f32 %v9216_v8, %v7613_v63  ;;  %v9217_v51 = vld [vmem:[#allocation97_spill] sm:$0xff]  ;;  %v9220_v33 = vld [vmem:[#allocation128_spill] sm:$0xff] }
 0x3bd   :  { %v3676_v6 = vmul.f32 %v9217_v51, %v7616_v1  ;;  %v3677_v16 = vmul.f32 %v9218_v56, %v7583_v54  ;;  %v3678_v13 = vmul.f32 %v9219_v41, %v7586_v23  ;;  %v3679_v2 = vmul.f32 %v9220_v33, %v7603_v60  ;;  %v9222_v31 = vld [vmem:[#allocation141_spill] sm:$0xff] }
 0x3be   :  { %v3680_v21 = vmul.f32 %v9221_v40, %v7606_v55  ;;  %v3350_v14 = vadd.f32 %v3349_v25, %v3291_v46  ;;  %v3381_v61 = vadd.f32 %v3380_v20, %v3292_v38  ;;  %v3681_v63 = vmul.f32 %v9222_v31, %v7619_v24  ;;  %v9223_v19 = vld [vmem:[#allocation137_spill] sm:$0xff] }
 0x3bf   :  { %v3682_v1 = vmul.f32 %v9223_v19, %v7622_v5  ;;  %v7776_v54 = vmul.f32 %v6491_v52, %v7627_v39  ;;  %v7780_v23 = vmul.f32 %v6457_v3, %v7630_v28  ;;  %v3733_v60 = vadd.f32 %v3671_v11, %v3669_v22  ;;  %v9232_v31 = vld [vmem:[#allocation41_spill] sm:$0xff]  ;;  %v9233_v19 = vld [vmem:[#allocation62_spill] sm:$0xff] }
 0x3c0   :  { %v3764_v47 = vadd.f32 %v3672_v50, %v3670_v26  ;;  %v3351_v59 = vadd.f32 %v3350_v14, %v3293_v30  ;;  %v3382_v55 = vadd.f32 %v3381_v61, %v3294_v49  ;;  %v9225_v46 = vcombine.low %v7558_v4, %v7562_v53  ;;  %v9228_v50 = vld [vmem:[#allocation6_spill] sm:$0xff] }
 0x3c1   :  { %9224 = vst [vmem:[#allocation76_spill] sm:$0xff] %v7780_v23  ;;  %v9226_v5 = vcombine.high %v7558_v4, %v7562_v53  ;;  %v3734_v52 = vadd.f32 %v3733_v60, %v3673_v27  ;;  %v2581_v42 = vadd.f32 %v2580_v34, %v7668_v57  ;;  %v2612_v3 = vadd.f32 %v2611_v32, %v7672_v9  ;;  %v9227_v9 = vld [vmem:[#allocation56_spill] sm:$0xff]  ;;  %v9229_v27 = vld [vmem:[#allocation7_spill] sm:$0xff]  ;;  %v9231_v14 = vld [vmem:[#allocation46_spill] sm:$0xff] }
 0x3c2   :  { %v1735_v24 = vrot.slane %v9225_v46, %v9157_v7  ;;  %v3765_v39 = vadd.f32 %v3764_v47, %v3674_v0  ;;  %v7792_v28 = vadd.f32 %v3351_v59, %v3295_v17  ;;  %v7794_v30 = vadd.f32 %v3382_v55, %v3296_v43  ;;  %v9234_v60 = vld [vmem:[#allocation58_spill] sm:$0xff] }
 0x3c3   :  { %v1742_v38 = vrot.slane %v9226_v5, %v9157_v7  ;;  %v3735_v44 = vadd.f32 %v3734_v52, %v3675_v35  ;;  %v7801_v57 = vadd.f32 %v2966_v10, %v7704_v12  ;;  %v7804_v34 = vadd.f32 %v2997_v62, %v9227_v9  ;;  %v9235_v59 = vld [vmem:[#allocation78_spill] sm:$0xff]  ;;  %v9243_v9 = vld [vmem:[#allocation37_spill] sm:$0xff] }
 0x3c4   :  { %v1743_v49 = vcombine.high %v1735_v24, %v1735_v24  ;;  %v3766_v26 = vadd.f32 %v3765_v39, %v3676_v6  ;;  %v1751_v36 = vrot.slane %v1735_v24, %v9157_v7  ;;  %v9236_v46 = vld [vmem:[#allocation74_spill] sm:$0xff] }
 0x3c5   :  { %v1744_v22 = vcombine.high %v1742_v38, %v1742_v38  ;;  %v1758_v18 = vrot.slane %v1742_v38, %v9157_v7  ;;  %v3736_v32 = vadd.f32 %v3735_v44, %v3677_v16  ;;  %v9237_v5 = vld [vmem:[#allocation94_spill] sm:$0xff] }
 0x3c6   :  { %v1765_v4 = vrot.slane %v1743_v49, %v9157_v7  ;;  %v3767_v17 = vadd.f32 %v3766_v26, %v3678_v13  ;;  %v1773_v43 = vcombine.high %v1751_v36, %v1751_v36  ;;  %v7807_v58 = vrot.slane %v1751_v36, %v9228_v50  ;;  %v9238_v52 = vld [vmem:[#allocation90_spill] sm:$0xff] }
 0x3c7   :  { %v1772_v53 = vrot.slane %v1744_v22, %v9157_v7  ;;  %v1774_v48 = vcombine.high %v1758_v18, %v1758_v18  ;;  %v7810_v45 = vrot.slane %v1751_v36, %v9229_v27  ;;  %v3737_v0 = vadd.f32 %v3736_v32, %v3679_v2  ;;  %v9239_v49 = vld [vmem:[#allocation110_spill] sm:$0xff] }
 0x3c8   :  { %v1775_v11 = vcombine.high %v1765_v4, %v1765_v4  ;;  %v3768_v25 = vadd.f32 %v3767_v17, %v3680_v21  ;;  %v7813_v12 = vrot.slane %v1765_v4, %v9228_v50  ;;  %v7816_v10 = vrot.slane %v1765_v4, %v9229_v27  ;;  %v9240_v44 = vld [vmem:[#allocation106_spill] sm:$0xff]  ;;  %v9242_v4 = vld [vmem:[#allocation121_spill] sm:$0xff] }
 0x3c9   :  { %v1776_v15 = vcombine.high %v1772_v53, %v1772_v53  ;;  %v7819_v62 = vrot.slane %v1773_v43, %v9228_v50  ;;  %v7822_v20 = vrot.slane %v1773_v43, %v9229_v27  ;;  %v7830_v51 = vadd.f32 %v3737_v0, %v3681_v63  ;;  %v9241_v36 = vld [vmem:[#allocation38_spill] sm:$0xff]  ;;  %v9244_v17 = vld [vmem:[#allocation133_spill] sm:$0xff] }
 0x3ca   :  { %v7825_v8 = vrot.slane %v1775_v11, %v9228_v50  ;;  %v7828_v35 = vrot.slane %v1775_v11, %v9229_v27  ;;  %v7832_v6 = vadd.f32 %v3768_v25, %v3682_v1  ;;  %v7835_v56 = vrot.slane %v1758_v18, %v9228_v50  ;;  %v9268_v7 = vld [vmem:[#allocation50_spill] sm:$0xff] }
 0x3cb   :  { %v7838_v16 = vrot.slane %v1758_v18, %v9229_v27  ;;  %v7841_v41 = vrot.slane %v1772_v53, %v9228_v50  ;;  %v7844_v13 = vrot.slane %v1772_v53, %v9229_v27  ;;  %v7847_v33 = vrot.slane %v1774_v48, %v9228_v50 }
 0x3cc   :  { %9230 = vst [vmem:[#allocation72_spill] sm:$0xff] %v7832_v6  ;;  %v7850_v2 = vrot.slane %v1774_v48, %v9229_v27  ;;  %v7853_v40 = vrot.slane %v1776_v15, %v9228_v50  ;;  %v7856_v21 = vrot.slane %v1776_v15, %v9229_v27  ;;  %v2527_v61 = vmul.f32 %v9231_v14, %v7807_v58  ;;  %v9245_v48 = vld [vmem:[#allocation146_spill] sm:$0xff]  ;;  %v9247_v15 = vld [vmem:[#allocation144_spill] sm:$0xff]  ;;  %v9263_v50 = vld [vmem:[#allocation9_spill] sm:$0xff] }
 0x3cd   :  { %v2528_v63 = vmul.f32 %v9232_v31, %v7810_v45  ;;  %v2529_v1 = vmul.f32 %v9233_v19, %v7813_v12  ;;  %v2530_v47 = vmul.f32 %v9234_v60, %v7816_v10  ;;  %v2531_v55 = vmul.f32 %v9235_v59, %v7819_v62  ;;  %v9249_v31 = vld [vmem:[#allocation47_spill] sm:$0xff]  ;;  %v9250_v60 = vld [vmem:[#allocation44_spill] sm:$0xff]  ;;  %v9262_v27 = vld [vmem:[#allocation134_spill] sm:$0xff] }
 0x3ce   :  { %v2532_v24 = vmul.f32 %v9236_v46, %v7822_v20  ;;  %v2533_v38 = vmul.f32 %v9237_v5, %v7825_v8  ;;  %v2534_v39 = vmul.f32 %v9238_v52, %v7828_v35  ;;  %v2535_v22 = vmul.f32 %v9239_v49, %v7835_v56  ;;  %v9251_v46 = vld [vmem:[#allocation63_spill] sm:$0xff] }
 0x3cf   :  { %v2536_v26 = vmul.f32 %v9240_v44, %v7838_v16  ;;  %v2537_v18 = vmul.f32 %v9241_v36, %v7841_v41  ;;  %v2538_v53 = vmul.f32 %v9242_v4, %v7844_v13  ;;  %v2539_v32 = vmul.f32 %v9243_v9, %v7847_v33  ;;  %v9252_v52 = vld [vmem:[#allocation59_spill] sm:$0xff] }
 0x3d0   :  { %v2540_v43 = vmul.f32 %v9244_v17, %v7850_v2  ;;  %v7888_v11 = vmul.f32 %v9245_v48, %v7853_v40  ;;  %v7892_v0 = vmul.f32 %v9247_v15, %v7856_v21  ;;  %v2582_v25 = vadd.f32 %v2581_v42, %v2527_v61  ;;  %v9253_v4 = vld [vmem:[#allocation79_spill] sm:$0xff] }
 0x3d1   :  { %v2613_v14 = vadd.f32 %v2612_v3, %v2528_v63  ;;  %v2913_v19 = vmul.f32 %v9249_v31, %v7807_v58  ;;  %v2914_v59 = vmul.f32 %v9250_v60, %v7810_v45  ;;  %v2915_v5 = vmul.f32 %v9251_v46, %v7813_v12  ;;  %v9254_v42 = vld [vmem:[#allocation75_spill] sm:$0xff] }
 0x3d2   :  { %9246 = vst [vmem:[#allocation92_spill] sm:$0xff] %v7888_v11  ;;  %9248 = vst [vmem:[#allocation88_spill] sm:$0xff] %v7892_v0  ;;  %v2916_v49 = vmul.f32 %v9252_v52, %v7816_v10  ;;  %v2583_v44 = vadd.f32 %v2582_v25, %v2529_v1  ;;  %v2917_v9 = vmul.f32 %v9253_v4, %v7819_v62  ;;  %v9255_v61 = vld [vmem:[#allocation95_spill] sm:$0xff]  ;;  %v9259_v25 = vld [vmem:[#allocation124_spill] sm:$0xff] }
 0x3d3   :  { %v2614_v36 = vadd.f32 %v2613_v14, %v2530_v47  ;;  %v2918_v3 = vmul.f32 %v9254_v42, %v7822_v20  ;;  %v2919_v63 = vmul.f32 %v9255_v61, %v7825_v8  ;;  %v9256_v17 = vld [vmem:[#allocation91_spill] sm:$0xff]  ;;  %v2923_v14 = vmul.f32 %v9259_v25, %v7841_v41  ;;  %v9260_v52 = vld [vmem:[#allocation122_spill] sm:$0xff] }
 0x3d4   :  { %v2920_v48 = vmul.f32 %v9256_v17, %v7828_v35  ;;  %v9257_v15 = vld [vmem:[#allocation111_spill] sm:$0xff]  ;;  %v2584_v1 = vadd.f32 %v2583_v44, %v2531_v55  ;;  %v2924_v4 = vmul.f32 %v9260_v52, %v7844_v13  ;;  %v2926_v17 = vmul.f32 %v9262_v27, %v7850_v2  ;;  %v9267_v52 = vld [vmem:[#allocation54_spill] sm:$0xff] }
 0x3d5   :  { %v2921_v31 = vmul.f32 %v9257_v15, %v7835_v56  ;;  %v9258_v60 = vld [vmem:[#allocation107_spill] sm:$0xff]  ;;  %v2615_v47 = vadd.f32 %v2614_v36, %v2532_v24  ;;  %v7924_v15 = vmul.f32 %v9263_v50, %v7853_v40  ;;  %v2968_v36 = vadd.f32 %v7801_v57, %v2913_v19  ;;  %v9269_v0 = vld [vmem:[#allocation70_spill] sm:$0xff] }
 0x3d6   :  { %v2922_v46 = vmul.f32 %v9258_v60, %v7838_v16  ;;  %v9261_v42 = vld [vmem:[#allocation135_spill] sm:$0xff]  ;;  %v9265_v60 = vld [vmem:[#allocation145_spill] sm:$0xff]  ;;  %v2585_v24 = vadd.f32 %v2584_v1, %v2533_v38  ;;  %v2999_v25 = vadd.f32 %v7804_v34, %v2914_v59  ;;  %v3300_v27 = vmul.f32 %v9268_v7, %v7810_v45  ;;  %v9271_v57 = vld [vmem:[#allocation86_spill] sm:$0xff] }
 0x3d7   :  { %v2925_v61 = vmul.f32 %v9261_v42, %v7847_v33  ;;  %9264 = vst [vmem:[#allocation108_spill] sm:$0xff] %v7924_v15  ;;  %v7928_v55 = vmul.f32 %v9265_v60, %v7856_v21  ;;  %v2616_v44 = vadd.f32 %v2615_v47, %v2534_v39  ;;  %v3299_v42 = vmul.f32 %v9267_v52, %v7807_v58  ;;  %v9270_v15 = vld [vmem:[#allocation66_spill] sm:$0xff] }
 0x3d8   :  { %v3301_v50 = vmul.f32 %v9269_v0, %v7813_v12  ;;  %v3302_v11 = vmul.f32 %v9270_v15, %v7816_v10  ;;  %v2586_v60 = vadd.f32 %v2585_v24, %v2535_v22  ;;  %v2969_v38 = vadd.f32 %v2968_v36, %v2915_v5  ;;  %v9272_v34 = vld [vmem:[#allocation82_spill] sm:$0xff]  ;;  %v9275_v22 = vld [vmem:[#allocation117_spill] sm:$0xff]  ;;  %v9278_v36 = vld [vmem:[#allocation39_spill] sm:$0xff] }
 0x3d9   :  { %9266 = vst [vmem:[#allocation104_spill] sm:$0xff] %v7928_v55  ;;  %v2617_v55 = vadd.f32 %v2616_v44, %v2536_v26  ;;  %v3000_v39 = vadd.f32 %v2999_v25, %v2916_v49  ;;  %v3303_v19 = vmul.f32 %v9271_v57, %v7819_v62  ;;  %v3304_v59 = vmul.f32 %v9272_v34, %v7822_v20  ;;  %v9273_v1 = vld [vmem:[#allocation102_spill] sm:$0xff]  ;;  %v9276_v5 = vld [vmem:[#allocation113_spill] sm:$0xff] }
 0x3da   :  { %v3305_v47 = vmul.f32 %v9273_v1, %v7825_v8  ;;  %v9274_v7 = vld [vmem:[#allocation98_spill] sm:$0xff]  ;;  %v2587_v0 = vadd.f32 %v2586_v60, %v2537_v18  ;;  %v2970_v23 = vadd.f32 %v2969_v38, %v2917_v9  ;;  %v3307_v26 = vmul.f32 %v9275_v22, %v7835_v56  ;;  %v9277_v24 = vld [vmem:[#allocation129_spill] sm:$0xff] }
 0x3db   :  { %v3306_v52 = vmul.f32 %v9274_v7, %v7828_v35  ;;  %v2618_v6 = vadd.f32 %v2617_v55, %v2538_v53  ;;  %v3001_v15 = vadd.f32 %v3000_v39, %v2918_v3  ;;  %v3308_v49 = vmul.f32 %v9276_v5, %v7838_v16  ;;  %v9279_v18 = vld [vmem:[#allocation142_spill] sm:$0xff]  ;;  %v9281_v55 = vld [vmem:[#allocation148_spill] sm:$0xff] }
 0x3dc   :  { %v3309_v44 = vmul.f32 %v9277_v24, %v7841_v41  ;;  %v3310_v25 = vmul.f32 %v9278_v36, %v7844_v13  ;;  %v2588_v57 = vadd.f32 %v2587_v0, %v2539_v32  ;;  %v2971_v1 = vadd.f32 %v2970_v23, %v2919_v63  ;;  %v9280_v9 = vld [vmem:[#allocation138_spill] sm:$0xff]  ;;  %v9283_v32 = vld [vmem:[#allocation55_spill] sm:$0xff] }
 0x3dd   :  { %v2619_v34 = vadd.f32 %v2618_v6, %v2540_v43  ;;  %v3002_v7 = vadd.f32 %v3001_v15, %v2920_v48  ;;  %v3311_v53 = vmul.f32 %v9279_v18, %v7847_v33  ;;  %v3312_v3 = vmul.f32 %v9280_v9, %v7850_v2  ;;  %v9282_v38 = vld [vmem:[#allocation18_spill] sm:$0xff]  ;;  %v9284_v63 = vld [vmem:[#allocation51_spill] sm:$0xff] }
 0x3de   :  { %v7962_v60 = vmul.f32 %v9281_v55, %v7853_v40  ;;  %v7966_v39 = vmul.f32 %v9282_v38, %v7856_v21  ;;  %v2972_v22 = vadd.f32 %v2971_v1, %v2921_v31  ;;  %v3353_v23 = vadd.f32 %v7792_v28, %v7740_v29  ;;  %v9285_v0 = vld [vmem:[#allocation71_spill] sm:$0xff] }
 0x3df   :  { %v3003_v5 = vadd.f32 %v3002_v7, %v2922_v46  ;;  %v3384_v6 = vadd.f32 %v7794_v30, %v7744_v37  ;;  %v3685_v43 = vmul.f32 %v9283_v32, %v7807_v58  ;;  %v3686_v48 = vmul.f32 %v9284_v63, %v7810_v45  ;;  %v9286_v24 = vld [vmem:[#allocation67_spill] sm:$0xff] }
 0x3e0   :  { %v3687_v15 = vmul.f32 %v9285_v0, %v7813_v12  ;;  %v3688_v36 = vmul.f32 %v9286_v24, %v7816_v10  ;;  %v2973_v31 = vadd.f32 %v2972_v22, %v2923_v14  ;;  %v3354_v1 = vadd.f32 %v3353_v23, %v3299_v42  ;;  %v9287_v29 = vld [vmem:[#allocation87_spill] sm:$0xff]  ;;  %v9291_v14 = vld [vmem:[#allocation118_spill] sm:$0xff] }
 0x3e1   :  { %v3004_v46 = vadd.f32 %v3003_v5, %v2924_v4  ;;  %v3385_v7 = vadd.f32 %v3384_v6, %v3300_v27  ;;  %v3689_v28 = vmul.f32 %v9287_v29, %v7819_v62  ;;  %v9288_v37 = vld [vmem:[#allocation83_spill] sm:$0xff]  ;;  %v3693_v4 = vmul.f32 %v9291_v14, %v7835_v56  ;;  %v9292_v42 = vld [vmem:[#allocation114_spill] sm:$0xff] }
 0x3e2   :  { %v3690_v30 = vmul.f32 %v9288_v37, %v7822_v20  ;;  %v9289_v58 = vld [vmem:[#allocation103_spill] sm:$0xff]  ;;  %v2974_v12 = vadd.f32 %v2973_v31, %v2925_v61  ;;  %v3355_v38 = vadd.f32 %v3354_v1, %v3301_v50  ;;  %v3694_v27 = vmul.f32 %v9292_v42, %v7838_v16  ;;  %v9293_v62 = vld [vmem:[#allocation130_spill] sm:$0xff]  ;;  %v9297_v50 = vld [vmem:[#allocation149_spill] sm:$0xff] }
 0x3e3   :  { %v3691_v18 = vmul.f32 %v9289_v58, %v7825_v8  ;;  %v9290_v45 = vld [vmem:[#allocation99_spill] sm:$0xff]  ;;  %v3005_v55 = vadd.f32 %v3004_v46, %v2926_v17  ;;  %v3386_v10 = vadd.f32 %v3385_v7, %v3302_v11  ;;  %v3695_v22 = vmul.f32 %v9293_v62, %v7841_v41  ;;  %v9294_v20 = vld [vmem:[#allocation126_spill] sm:$0xff]  ;;  %v9304_v1 = vld [vmem:[#allocation88_spill] sm:$0xff] }
 0x3e4   :  { %v3692_v9 = vmul.f32 %v9290_v45, %v7828_v35  ;;  %v3696_v5 = vmul.f32 %v9294_v20, %v7844_v13  ;;  %v3356_v8 = vadd.f32 %v3355_v38, %v3303_v19  ;;  %v9295_v35 = vld [vmem:[#allocation143_spill] sm:$0xff]  ;;  %v8002_v56 = vmul.f32 %v9297_v50, %v7853_v40  ;;  %v9299_v13 = vld [vmem:[#allocation76_spill] sm:$0xff]  ;;  %v9306_v37 = vld [vmem:[#allocation262_spill] sm:$0xff] }
 0x3e5   :  { %v3387_v23 = vadd.f32 %v3386_v10, %v3304_v59  ;;  %v3697_v61 = vmul.f32 %v9295_v35, %v7847_v33  ;;  %v9296_v17 = vld [vmem:[#allocation139_spill] sm:$0xff]  ;;  %v3739_v41 = vadd.f32 %v7830_v51, %v7776_v54  ;;  %v9300_v19 = vld [vmem:[#allocation72_spill] sm:$0xff]  ;;  %v8018_v7 = vadd.f32 %v2619_v34, %v9304_v1  ;;  %v9311_v42 = vld [vmem:[#allocation5_spill] sm:$0xff] }
 0x3e6   :  { %v3698_v11 = vmul.f32 %v9296_v17, %v7850_v2  ;;  %v9298_v16 = vld [vmem:[#allocation147_spill] sm:$0xff]  ;;  %v3770_v59 = vadd.f32 %v9300_v19, %v9299_v13  ;;  %v3357_v32 = vadd.f32 %v3356_v8, %v3305_v47  ;;  %v9303_v2 = vld [vmem:[#allocation92_spill] sm:$0xff]  ;;  %v9313_v8 = vld [vmem:[#allocation261_spill] sm:$0xff] }
 0x3e7   :  { %v8006_v6 = vmul.f32 %v9298_v16, %v7856_v21  ;;  %v3388_v63 = vadd.f32 %v3387_v23, %v3306_v52  ;;  %v9301_v33 = vld [vmem:[#allocation259_spill] sm:$0xff]  ;;  %v8015_v31 = vadd.f32 %v2588_v57, %v9303_v2  ;;  %v3740_v40 = vadd.f32 %v3739_v41, %v3685_v43  ;;  %v9305_v21 = vld [vmem:[#allocation108_spill] sm:$0xff] }
 0x3e8   :  { %v9302_v0 = vld [vmem:[#allocation263_spill] sm:$0xff]  ;;  %v3771_v46 = vadd.f32 %v3770_v59, %v3686_v48  ;;  %v8021_v29 = vadd.f32 %v2974_v12, %v9305_v21  ;;  %v3358_v54 = vadd.f32 %v3357_v32, %v3307_v26  ;;  %v9307_v38 = vld [vmem:[#allocation104_spill] sm:$0xff]  ;;  %v9316_v32 = vld [vmem:[#allocation6_spill] sm:$0xff] }
 0x3e9   :  { %v4330_v24 = vadd.f32 %v9302_v0, %v9301_v33  ;;  %v3389_v51 = vadd.f32 %v3388_v63, %v3308_v49  ;;  %v3741_v52 = vadd.f32 %v3740_v40, %v3687_v15  ;;  %v8026_v10 = vadd.f32 %v3005_v55, %v9307_v38  ;;  %v9308_v57 = vld [vmem:[#allocation260_spill] sm:$0xff]  ;;  %v9312_v49 = vld [vmem:[#allocation257_spill] sm:$0xff]  ;;  %v9317_v33 = vld [vmem:[#allocation7_spill] sm:$0xff] }
 0x3ea   :  { %v3772_v45 = vadd.f32 %v3771_v46, %v3688_v36  ;;  %v9309_v43 = vld [vmem:[#allocation264_spill] sm:$0xff]  ;;  %v3359_v34 = vadd.f32 %v3358_v54, %v3309_v44  ;;  %4876 = vrcp.f32 %v9312_v49  ;;  %v9314_v15 = vld [vmem:[#allocation265_spill] sm:$0xff]  ;;  %v9320_v38 = vld [vmem:[#allocation150_spill] sm:$0xff] }
 0x3eb   :  { %v1777_v58 = vcombine.low %v9306_v37, %v4330_v24  ;;  %v1778_v47 = vcombine.high %v9306_v37, %v4330_v24  ;;  %v8030_v48 = vadd.f32 %v9309_v43, %v9308_v57  ;;  %v3390_v14 = vadd.f32 %v3389_v51, %v3310_v25  ;;  %v9321_v43 = vld [vmem:[#allocation154_spill] sm:$0xff] }
 0x3ec   :  { %v3742_v62 = vadd.f32 %v3741_v52, %v3689_v28  ;;  %v3773_v20 = vadd.f32 %v3772_v45, %v3690_v30  ;;  %v8037_v36 = vadd.f32 %v9314_v15, %v9313_v8  ;;  %v3360_v55 = vadd.f32 %v3359_v34, %v3311_v53  ;;  %v9319_v52 = vld [vmem:[#allocation21_spill] sm:$0xff]  ;;  %v9325_v8 = vld [vmem:[#allocation170_spill] sm:$0xff] }
 0x3ed   :  { %9310 = vst [vmem:[#allocation123_spill] sm:$0xff] %v8030_v48  ;;  %v1785_v12 = vrot.slane %v1777_v58, %v9311_v42  ;;  %v1792_v26 = vrot.slane %v1778_v47, %v9311_v42  ;;  %v3391_v23 = vadd.f32 %v3390_v14, %v3312_v3  ;;  %v9322_v14 = vld [vmem:[#allocation155_spill] sm:$0xff] }
 0x3ee   :  { %9315 = vst [vmem:[#allocation119_spill] sm:$0xff] %v8037_v36  ;;  %v3743_v50 = vadd.f32 %v3742_v62, %v3691_v18  ;;  %v3774_v16 = vadd.f32 %v3773_v20, %v3692_v9  ;;  %v8044_v28 = vadd.f32 %v3360_v55, %v7962_v60  ;;  %v9324_v62 = vld [vmem:[#allocation162_spill] sm:$0xff]  ;;  %v9326_v55 = vld [vmem:[#allocation19_spill] sm:$0xff] }
 0x3ef   :  { %v1793_v35 = vcombine.high %v1785_v12, %v1785_v12  ;;  %v1794_v17 = vcombine.high %v1792_v26, %v1792_v26  ;;  %v1801_v44 = vrot.slane %v1785_v12, %v9311_v42  ;;  %v1808_v25 = vrot.slane %v1792_v26, %v9311_v42  ;;  %v9323_v26 = vld [vmem:[#allocation161_spill] sm:$0xff] }
 0x3f0   :  { %v8047_v30 = vadd.f32 %v3391_v23, %v7966_v39  ;;  %v3744_v53 = vadd.f32 %v3743_v50, %v3693_v4  ;;  %v3775_v3 = vadd.f32 %v3774_v16, %v3694_v27  ;;  %v9328_v50 = vld [vmem:[#allocation174_spill] sm:$0xff] }
 0x3f1   :  { %v1815_v41 = vrot.slane %v1793_v35, %v9311_v42  ;;  %v1822_v13 = vrot.slane %v1794_v17, %v9311_v42  ;;  %v1823_v19 = vcombine.high %v1801_v44, %v1801_v44  ;;  %v1824_v59 = vcombine.high %v1808_v25, %v1808_v25  ;;  %v9327_v35 = vld [vmem:[#allocation176_spill] sm:$0xff] }
 0x3f2   :  { %v8050_v63 = vrot.slane %v1801_v44, %v9316_v32  ;;  %v8053_v0 = vrot.slane %v1801_v44, %v9317_v33  ;;  %v3745_v24 = vadd.f32 %v3744_v53, %v3695_v22  ;;  %v3776_v2 = vadd.f32 %v3775_v3, %v3696_v5  ;;  %v9329_v44 = vld [vmem:[#allocation182_spill] sm:$0xff]  ;;  %v9331_v53 = vld [vmem:[#allocation188_spill] sm:$0xff] }
 0x3f3   :  { %v1825_v18 = vcombine.high %v1815_v41, %v1815_v41  ;;  %v1826_v9 = vcombine.high %v1822_v13, %v1822_v13  ;;  %v8056_v60 = vrot.slane %v1815_v41, %v9316_v32  ;;  %v8059_v39 = vrot.slane %v1815_v41, %v9317_v33  ;;  %v9330_v41 = vld [vmem:[#allocation27_spill] sm:$0xff]  ;;  %v9356_v42 = vld [vmem:[#allocation152_spill] sm:$0xff] }
 0x3f4   :  { %v8062_v4 = vrot.slane %v1823_v19, %v9316_v32  ;;  %v8065_v27 = vrot.slane %v1823_v19, %v9317_v33  ;;  %v8073_v22 = vadd.f32 %v3745_v24, %v3697_v61  ;;  %v8075_v5 = vadd.f32 %v3776_v2, %v3698_v11  ;;  %v8095_v11 = vpop.eup %4876  ;;  %v9332_v19 = vld [vmem:[#allocation28_spill] sm:$0xff]  ;;  %v9335_v24 = vld [vmem:[#allocation194_spill] sm:$0xff] }
 0x3f5   :  { %v8068_v40 = vrot.slane %v1825_v18, %v9316_v32  ;;  %v8071_v46 = vrot.slane %v1825_v18, %v9317_v33  ;;  %v8078_v1 = vrot.slane %v1808_v25, %v9316_v32  ;;  %v8081_v21 = vrot.slane %v1808_v25, %v9317_v33  ;;  %9318 = vst [vmem:[#allocation36_spill] sm:$0xff] %v8095_v11  ;;  %v9333_v18 = vld [vmem:[#allocation196_spill] sm:$0xff]  ;;  %v9349_v11 = vld [vmem:[#allocation189_spill] sm:$0xff] }
 0x3f6   :  { %v8084_v54 = vrot.slane %v1822_v13, %v9316_v32  ;;  %v8087_v51 = vrot.slane %v1822_v13, %v9317_v33  ;;  %v8090_v37 = vrot.slane %v1824_v59, %v9316_v32  ;;  %v8093_v61 = vrot.slane %v1824_v59, %v9317_v33 }
 0x3f7   :  { %v8098_v58 = vrot.slane %v1826_v9, %v9316_v32  ;;  %v8101_v47 = vrot.slane %v1826_v9, %v9317_v33  ;;  %v2543_v45 = vmul.f32 %v9319_v52, %v8050_v63  ;;  %v2544_v57 = vmul.f32 %v9320_v38, %v8053_v0  ;;  %v9350_v33 = vld [vmem:[#allocation187_spill] sm:$0xff]  ;;  %v9351_v32 = vld [vmem:[#allocation25_spill] sm:$0xff] }
 0x3f8   :  { %v2545_v34 = vmul.f32 %v9321_v43, %v8056_v60  ;;  %v2546_v12 = vmul.f32 %v9322_v14, %v8059_v39  ;;  %v2547_v49 = vmul.f32 %v9323_v26, %v8062_v4  ;;  %v2548_v20 = vmul.f32 %v9324_v62, %v8065_v27  ;;  %v9337_v43 = vld [vmem:[#allocation151_spill] sm:$0xff] }
 0x3f9   :  { %v2549_v15 = vmul.f32 %v9325_v8, %v8068_v40  ;;  %v2550_v23 = vmul.f32 %v9326_v55, %v8071_v46  ;;  %v2551_v17 = vmul.f32 %v9327_v35, %v8078_v1  ;;  %v2552_v16 = vmul.f32 %v9328_v50, %v8081_v21  ;;  %v9338_v26 = vld [vmem:[#allocation15_spill] sm:$0xff]  ;;  %v9339_v8 = vld [vmem:[#allocation157_spill] sm:$0xff]  ;;  %v9340_v35 = vld [vmem:[#allocation156_spill] sm:$0xff] }
 0x3fa   :  { %v2553_v25 = vmul.f32 %v9329_v44, %v8084_v54  ;;  %v2554_v13 = vmul.f32 %v9330_v41, %v8087_v51  ;;  %v2555_v3 = vmul.f32 %v9331_v53, %v8090_v37  ;;  %v2556_v59 = vmul.f32 %v9332_v19, %v8093_v61  ;;  %v9341_v53 = vld [vmem:[#allocation164_spill] sm:$0xff] }
 0x3fb   :  { %v8133_v9 = vmul.f32 %v9333_v18, %v8098_v58  ;;  %v8137_v2 = vmul.f32 %v9335_v24, %v8101_v47  ;;  %v2590_v52 = vadd.f32 %v8015_v31, %v2543_v45  ;;  %v2621_v38 = vadd.f32 %v8018_v7, %v2544_v57  ;;  %v9342_v31 = vld [vmem:[#allocation163_spill] sm:$0xff]  ;;  %v9344_v18 = vld [vmem:[#allocation169_spill] sm:$0xff] }
 0x3fc   :  { %v2929_v14 = vmul.f32 %v9337_v43, %v8050_v63  ;;  %v2930_v62 = vmul.f32 %v9338_v26, %v8053_v0  ;;  %v2931_v55 = vmul.f32 %v9339_v8, %v8056_v60  ;;  %v2932_v50 = vmul.f32 %v9340_v35, %v8059_v39  ;;  %v9343_v45 = vld [vmem:[#allocation171_spill] sm:$0xff]  ;;  %v9345_v43 = vld [vmem:[#allocation177_spill] sm:$0xff] }
 0x3fd   :  { %9334 = vst [vmem:[#allocation131_spill] sm:$0xff] %v8133_v9  ;;  %9336 = vst [vmem:[#allocation45_spill] sm:$0xff] %v8137_v2  ;;  %v2591_v44 = vadd.f32 %v2590_v52, %v2545_v34  ;;  %v2622_v41 = vadd.f32 %v2621_v38, %v2546_v12  ;;  %v2933_v19 = vmul.f32 %v9341_v53, %v8062_v4  ;;  %v9346_v8 = vld [vmem:[#allocation175_spill] sm:$0xff]  ;;  %v9348_v53 = vld [vmem:[#allocation181_spill] sm:$0xff] }
 0x3fe   :  { %v2934_v7 = vmul.f32 %v9342_v31, %v8065_v27  ;;  %v2935_v57 = vmul.f32 %v9343_v45, %v8068_v40  ;;  %v2936_v24 = vmul.f32 %v9344_v18, %v8071_v46  ;;  %v2937_v26 = vmul.f32 %v9345_v43, %v8078_v1  ;;  %v9347_v52 = vld [vmem:[#allocation183_spill] sm:$0xff]  ;;  %v9357_v2 = vld [vmem:[#allocation160_spill] sm:$0xff] }
 0x3ff   :  { %v2938_v35 = vmul.f32 %v9346_v8, %v8081_v21  ;;  %v2592_v34 = vadd.f32 %v2591_v44, %v2547_v49  ;;  %v2623_v12 = vadd.f32 %v2622_v41, %v2548_v20  ;;  %v2939_v38 = vmul.f32 %v9347_v52, %v8084_v54  ;;  %v9353_v8 = vld [vmem:[#allocation195_spill] sm:$0xff] }
 0x400   :  { %v2940_v31 = vmul.f32 %v9348_v53, %v8087_v51  ;;  %v2941_v45 = vmul.f32 %v9349_v11, %v8090_v37  ;;  %v2942_v18 = vmul.f32 %v9350_v33, %v8093_v61  ;;  %v8171_v43 = vmul.f32 %v9351_v32, %v8098_v58  ;;  %v9355_v53 = vld [vmem:[#allocation14_spill] sm:$0xff] }
 0x401   :  { %v8175_v49 = vmul.f32 %v9353_v8, %v8101_v47  ;;  %v2593_v20 = vadd.f32 %v2592_v34, %v2549_v15  ;;  %v2624_v44 = vadd.f32 %v2623_v12, %v2550_v23  ;;  %v2976_v41 = vadd.f32 %v8021_v29, %v2929_v14  ;;  %v9359_v29 = vld [vmem:[#allocation167_spill] sm:$0xff]  ;;  %v9361_v34 = vld [vmem:[#allocation172_spill] sm:$0xff] }
 0x402   :  { %9352 = vst [vmem:[#allocation43_spill] sm:$0xff] %v8171_v43  ;;  %v3007_v52 = vadd.f32 %v8026_v10, %v2930_v62  ;;  %v3315_v11 = vmul.f32 %v9355_v53, %v8050_v63  ;;  %v3316_v33 = vmul.f32 %v9356_v42, %v8053_v0  ;;  %v3317_v32 = vmul.f32 %v9357_v2, %v8056_v60  ;;  %v9358_v43 = vld [vmem:[#allocation158_spill] sm:$0xff]  ;;  %v9360_v10 = vld [vmem:[#allocation165_spill] sm:$0xff] }
 0x403   :  { %9354 = vst [vmem:[#allocation61_spill] sm:$0xff] %v8175_v49  ;;  %v3318_v9 = vmul.f32 %v9358_v43, %v8059_v39  ;;  %v2594_v8 = vadd.f32 %v2593_v20, %v2551_v17  ;;  %v2625_v49 = vadd.f32 %v2624_v44, %v2552_v16  ;;  %v2977_v15 = vadd.f32 %v2976_v41, %v2931_v55  ;;  %v9362_v42 = vld [vmem:[#allocation17_spill] sm:$0xff]  ;;  %v9363_v17 = vld [vmem:[#allocation179_spill] sm:$0xff]  ;;  %v9364_v55 = vld [vmem:[#allocation178_spill] sm:$0xff] }
 0x404   :  { %v3008_v23 = vadd.f32 %v3007_v52, %v2932_v50  ;;  %v3319_v14 = vmul.f32 %v9359_v29, %v8062_v4  ;;  %v3320_v62 = vmul.f32 %v9360_v10, %v8065_v27  ;;  %v3321_v12 = vmul.f32 %v9361_v34, %v8068_v40  ;;  %v9365_v20 = vld [vmem:[#allocation186_spill] sm:$0xff]  ;;  %v9366_v41 = vld [vmem:[#allocation184_spill] sm:$0xff] }
 0x405   :  { %v3322_v53 = vmul.f32 %v9362_v42, %v8071_v46  ;;  %v2595_v2 = vadd.f32 %v2594_v8, %v2553_v25  ;;  %v2626_v48 = vadd.f32 %v2625_v49, %v2554_v13  ;;  %v2978_v36 = vadd.f32 %v2977_v15, %v2933_v19  ;;  %v9367_v25 = vld [vmem:[#allocation192_spill] sm:$0xff]  ;;  %v9368_v19 = vld [vmem:[#allocation190_spill] sm:$0xff]  ;;  %v9370_v15 = vld [vmem:[#allocation29_spill] sm:$0xff] }
 0x406   :  { %v3009_v43 = vadd.f32 %v3008_v23, %v2934_v7  ;;  %v3323_v16 = vmul.f32 %v9363_v17, %v8078_v1  ;;  %v3324_v50 = vmul.f32 %v9364_v55, %v8081_v21  ;;  %v3325_v44 = vmul.f32 %v9365_v20, %v8084_v54  ;;  %v9369_v49 = vld [vmem:[#allocation198_spill] sm:$0xff] }
 0x407   :  { %v3326_v52 = vmul.f32 %v9366_v41, %v8087_v51  ;;  %v2596_v29 = vadd.f32 %v2595_v2, %v2555_v3  ;;  %v2627_v10 = vadd.f32 %v2626_v48, %v2556_v59  ;;  %v2979_v34 = vadd.f32 %v2978_v36, %v2935_v57  ;;  %v9371_v36 = vld [vmem:[#allocation23_spill] sm:$0xff]  ;;  %v9372_v59 = vld [vmem:[#allocation153_spill] sm:$0xff] }
 0x408   :  { %v3010_v42 = vadd.f32 %v3009_v43, %v2936_v24  ;;  %v3327_v13 = vmul.f32 %v9367_v25, %v8090_v37  ;;  %v3328_v7 = vmul.f32 %v9368_v19, %v8093_v61  ;;  %v3329_v8 = vmul.f32 %v9369_v49, %v8098_v58  ;;  %v9373_v24 = vld [vmem:[#allocation10_spill] sm:$0xff]  ;;  %v9374_v43 = vld [vmem:[#allocation159_spill] sm:$0xff] }
 0x409   :  { %v3330_v23 = vmul.f32 %v9370_v15, %v8101_v47  ;;  %v2980_v17 = vadd.f32 %v2979_v34, %v2937_v26  ;;  %v3362_v20 = vadd.f32 %v8044_v28, %v3315_v11  ;;  %v3393_v48 = vadd.f32 %v8047_v30, %v3316_v33  ;;  %v9375_v28 = vld [vmem:[#allocation168_spill] sm:$0xff]  ;;  %v9376_v30 = vld [vmem:[#allocation166_spill] sm:$0xff] }
 0x40a   :  { %v3011_v55 = vadd.f32 %v3010_v42, %v2938_v35  ;;  %v3701_v3 = vmul.f32 %v9371_v36, %v8050_v63  ;;  %v3702_v57 = vmul.f32 %v9372_v59, %v8053_v0  ;;  %v3703_v2 = vmul.f32 %v9373_v24, %v8056_v60  ;;  %v9377_v63 = vld [vmem:[#allocation173_spill] sm:$0xff]  ;;  %v9378_v0 = vld [vmem:[#allocation24_spill] sm:$0xff]  ;;  %v9389_v36 = vld [vmem:[#allocation123_spill] sm:$0xff] }
 0x40b   :  { %v3704_v41 = vmul.f32 %v9374_v43, %v8059_v39  ;;  %v2981_v25 = vadd.f32 %v2980_v17, %v2939_v38  ;;  %v3363_v26 = vadd.f32 %v3362_v20, %v3317_v32  ;;  %v3394_v35 = vadd.f32 %v3393_v48, %v3318_v9  ;;  %v9379_v38 = vld [vmem:[#allocation180_spill] sm:$0xff]  ;;  %v9390_v43 = vld [vmem:[#allocation131_spill] sm:$0xff] }
 0x40c   :  { %v3012_v19 = vadd.f32 %v3011_v55, %v2940_v31  ;;  %v3705_v11 = vmul.f32 %v9375_v28, %v8062_v4  ;;  %v3706_v33 = vmul.f32 %v9376_v30, %v8065_v27  ;;  %v3707_v34 = vmul.f32 %v9377_v63, %v8068_v40  ;;  %v9380_v9 = vld [vmem:[#allocation16_spill] sm:$0xff]  ;;  %v9382_v27 = vld [vmem:[#allocation185_spill] sm:$0xff] }
 0x40d   :  { %v3708_v42 = vmul.f32 %v9378_v0, %v8071_v46  ;;  %v2982_v60 = vadd.f32 %v2981_v25, %v2941_v45  ;;  %v3364_v15 = vadd.f32 %v3363_v26, %v3319_v14  ;;  %v3395_v39 = vadd.f32 %v3394_v35, %v3320_v62  ;;  %v9381_v4 = vld [vmem:[#allocation12_spill] sm:$0xff]  ;;  %v9383_v46 = vld [vmem:[#allocation193_spill] sm:$0xff]  ;;  %v9385_v62 = vld [vmem:[#allocation199_spill] sm:$0xff] }
 0x40e   :  { %v3013_v49 = vadd.f32 %v3012_v19, %v2942_v18  ;;  %v3709_v31 = vmul.f32 %v9379_v38, %v8078_v1  ;;  %v3710_v32 = vmul.f32 %v9380_v9, %v8081_v21  ;;  %v3711_v17 = vmul.f32 %v9381_v4, %v8084_v54  ;;  %v9384_v18 = vld [vmem:[#allocation191_spill] sm:$0xff]  ;;  %v9386_v21 = vld [vmem:[#allocation197_spill] sm:$0xff] }
 0x40f   :  { %v3712_v55 = vmul.f32 %v9382_v27, %v8087_v51  ;;  %v3365_v40 = vadd.f32 %v3364_v15, %v3321_v12  ;;  %v3396_v20 = vadd.f32 %v3395_v39, %v3322_v53  ;;  %v3713_v45 = vmul.f32 %v9383_v46, %v8090_v37  ;;  %v9388_v37 = vld [vmem:[#allocation119_spill] sm:$0xff]  ;;  %v9392_v26 = vld [vmem:[#allocation5_spill] sm:$0xff] }
 0x410   :  { %v3714_v14 = vmul.f32 %v9384_v18, %v8093_v61  ;;  %v8243_v1 = vmul.f32 %v9385_v62, %v8098_v58  ;;  %v8247_v48 = vmul.f32 %v9386_v21, %v8101_v47  ;;  %v3747_v54 = vadd.f32 %v8073_v22, %v8002_v56  ;;  %v9391_v47 = vld [vmem:[#allocation45_spill] sm:$0xff]  ;;  %v9393_v35 = vld [vmem:[#allocation43_spill] sm:$0xff] }
 0x411   :  { %v3778_v51 = vadd.f32 %v8075_v5, %v8006_v6  ;;  %v3366_v12 = vadd.f32 %v3365_v40, %v3323_v16  ;;  %v3397_v53 = vadd.f32 %v3396_v20, %v3324_v50  ;;  %v1827_v59 = vcombine.low %v9389_v36, %v9388_v37  ;;  %v9394_v30 = vld [vmem:[#allocation61_spill] sm:$0xff]  ;;  %v9396_v27 = vld [vmem:[#allocation7_spill] sm:$0xff] }
 0x412   :  { %9387 = vst [vmem:[#allocation57_spill] sm:$0xff] %v8247_v48  ;;  %v1828_v61 = vcombine.high %v9389_v36, %v9388_v37  ;;  %v3748_v58 = vadd.f32 %v3747_v54, %v3701_v3  ;;  %v8258_v25 = vadd.f32 %v2596_v29, %v9390_v43  ;;  %v8261_v19 = vadd.f32 %v2627_v10, %v9391_v47  ;;  %v9401_v47 = vld [vmem:[#allocation30_spill] sm:$0xff] }
 0x413   :  { %v3779_v24 = vadd.f32 %v3778_v51, %v3702_v57  ;;  %v3367_v56 = vadd.f32 %v3366_v12, %v3325_v44  ;;  %v3398_v22 = vadd.f32 %v3397_v53, %v3326_v52  ;;  %v1835_v6 = vrot.slane %v1827_v59, %v9392_v26  ;;  %v9434_v48 = vld [vmem:[#allocation210_spill] sm:$0xff] }
 0x414   :  { %v1842_v5 = vrot.slane %v1828_v61, %v9392_v26  ;;  %v3749_v16 = vadd.f32 %v3748_v58, %v3703_v2  ;;  %v8266_v28 = vadd.f32 %v2982_v60, %v9393_v35  ;;  %v8269_v3 = vadd.f32 %v3013_v49, %v9394_v30  ;;  %v9399_v61 = vld [vmem:[#allocation202_spill] sm:$0xff]  ;;  %v9406_v35 = vld [vmem:[#allocation220_spill] sm:$0xff] }
 0x415   :  { %v3780_v50 = vadd.f32 %v3779_v24, %v3704_v41  ;;  %v3368_v57 = vadd.f32 %v3367_v56, %v3327_v13  ;;  %v3399_v29 = vadd.f32 %v3398_v22, %v3328_v7  ;;  %v1843_v63 = vcombine.high %v1835_v6, %v1835_v6  ;;  %v9400_v24 = vld [vmem:[#allocation200_spill] sm:$0xff] }
 0x416   :  { %v1844_v0 = vcombine.high %v1842_v5, %v1842_v5  ;;  %v3750_v10 = vadd.f32 %v3749_v16, %v3705_v11  ;;  %v1851_v44 = vrot.slane %v1835_v6, %v9392_v26  ;;  %v1858_v52 = vrot.slane %v1842_v5, %v9392_v26  ;;  %v9395_v11 = vld [vmem:[#allocation6_spill] sm:$0xff]  ;;  %v9404_v6 = vld [vmem:[#allocation212_spill] sm:$0xff]  ;;  %v9405_v16 = vld [vmem:[#allocation221_spill] sm:$0xff] }
 0x417   :  { %v3781_v15 = vadd.f32 %v3780_v50, %v3706_v33  ;;  %v1865_v39 = vrot.slane %v1843_v63, %v9392_v26  ;;  %v8275_v41 = vadd.f32 %v3368_v57, %v3329_v8  ;;  %v8277_v60 = vadd.f32 %v3399_v29, %v3330_v23  ;;  %v9407_v57 = vld [vmem:[#allocation228_spill] sm:$0xff]  ;;  %v9408_v63 = vld [vmem:[#allocation226_spill] sm:$0xff] }
 0x418   :  { %v1872_v2 = vrot.slane %v1844_v0, %v9392_v26  ;;  %v3751_v49 = vadd.f32 %v3750_v10, %v3707_v34  ;;  %v1873_v13 = vcombine.high %v1851_v44, %v1851_v44  ;;  %v1874_v7 = vcombine.high %v1858_v52, %v1858_v52  ;;  %v9409_v10 = vld [vmem:[#allocation234_spill] sm:$0xff] }
 0x419   :  { %v3782_v38 = vadd.f32 %v3781_v15, %v3708_v42  ;;  %v1875_v9 = vcombine.high %v1865_v39, %v1865_v39  ;;  %v8280_v33 = vrot.slane %v1851_v44, %v9395_v11  ;;  %v8283_v40 = vrot.slane %v1851_v44, %v9396_v27  ;;  %v9410_v44 = vld [vmem:[#allocation33_spill] sm:$0xff] }
 0x41a   :  { %v1876_v4 = vcombine.high %v1872_v2, %v1872_v2  ;;  %v3752_v20 = vadd.f32 %v3751_v49, %v3709_v31  ;;  %v8286_v18 = vrot.slane %v1865_v39, %v9395_v11  ;;  %v8289_v8 = vrot.slane %v1865_v39, %v9396_v27  ;;  %v9411_v39 = vld [vmem:[#allocation242_spill] sm:$0xff]  ;;  %v9412_v49 = vld [vmem:[#allocation240_spill] sm:$0xff] }
 0x41b   :  { %v3783_v46 = vadd.f32 %v3782_v38, %v3710_v32  ;;  %v8292_v23 = vrot.slane %v1873_v13, %v9395_v11  ;;  %v8295_v34 = vrot.slane %v1873_v13, %v9396_v27  ;;  %v8298_v42 = vrot.slane %v1875_v9, %v9395_v11  ;;  %v9413_v13 = vld [vmem:[#allocation250_spill] sm:$0xff] }
 0x41c   :  { %v8301_v62 = vrot.slane %v1875_v9, %v9396_v27  ;;  %v3753_v31 = vadd.f32 %v3752_v20, %v3711_v17  ;;  %v8304_v21 = vrot.slane %v1858_v52, %v9395_v11  ;;  %v8307_v54 = vrot.slane %v1858_v52, %v9396_v27  ;;  %v9414_v9 = vld [vmem:[#allocation248_spill] sm:$0xff]  ;;  %v9415_v20 = vld [vmem:[#allocation203_spill] sm:$0xff] }
 0x41d   :  { %v3784_v32 = vadd.f32 %v3783_v46, %v3712_v55  ;;  %v8310_v51 = vrot.slane %v1872_v2, %v9395_v11  ;;  %v8313_v12 = vrot.slane %v1872_v2, %v9396_v27  ;;  %v8316_v53 = vrot.slane %v1874_v7, %v9395_v11 }
 0x41e   :  { %v8319_v37 = vrot.slane %v1874_v7, %v9396_v27  ;;  %v8321_v17 = vadd.f32 %v3753_v31, %v3713_v45  ;;  %v8326_v36 = vrot.slane %v1876_v4, %v9395_v11  ;;  %v8329_v59 = vrot.slane %v1876_v4, %v9396_v27  ;;  %v9402_v45 = vld [vmem:[#allocation207_spill] sm:$0xff]  ;;  %v9416_v31 = vld [vmem:[#allocation201_spill] sm:$0xff] }
 0x41f   :  { %v8323_v55 = vadd.f32 %v3784_v32, %v3714_v14  ;;  %v2559_v58 = vmul.f32 %v9399_v61, %v8280_v33  ;;  %v2560_v43 = vmul.f32 %v9400_v24, %v8283_v40  ;;  %v2561_v56 = vmul.f32 %v9401_v47, %v8286_v18  ;;  %v9403_v14 = vld [vmem:[#allocation214_spill] sm:$0xff]  ;;  %v9417_v61 = vld [vmem:[#allocation209_spill] sm:$0xff]  ;;  %v9418_v47 = vld [vmem:[#allocation208_spill] sm:$0xff] }
 0x420   :  { %9397 = vst [vmem:[#allocation77_spill] sm:$0xff] %v8321_v17  ;;  %v2562_v22 = vmul.f32 %v9402_v45, %v8289_v8  ;;  %v2563_v26 = vmul.f32 %v9403_v14, %v8292_v23  ;;  %v2564_v5 = vmul.f32 %v9404_v6, %v8295_v34  ;;  %v2565_v50 = vmul.f32 %v9405_v16, %v8298_v42  ;;  %v9419_v14 = vld [vmem:[#allocation215_spill] sm:$0xff]  ;;  %v9420_v16 = vld [vmem:[#allocation213_spill] sm:$0xff] }
 0x421   :  { %9398 = vst [vmem:[#allocation73_spill] sm:$0xff] %v8323_v55  ;;  %v2566_v30 = vmul.f32 %v9406_v35, %v8301_v62  ;;  %v2567_v29 = vmul.f32 %v9407_v57, %v8304_v21  ;;  %v2568_v0 = vmul.f32 %v9408_v63, %v8307_v54  ;;  %v2569_v15 = vmul.f32 %v9409_v10, %v8310_v51  ;;  %v9422_v57 = vld [vmem:[#allocation26_spill] sm:$0xff]  ;;  %v9423_v10 = vld [vmem:[#allocation229_spill] sm:$0xff] }
 0x422   :  { %v2570_v52 = vmul.f32 %v9410_v44, %v8313_v12  ;;  %v2571_v2 = vmul.f32 %v9411_v39, %v8316_v53  ;;  %v2572_v38 = vmul.f32 %v9412_v49, %v8319_v37  ;;  %v2573_v7 = vmul.f32 %v9413_v13, %v8326_v36  ;;  %v9424_v39 = vld [vmem:[#allocation227_spill] sm:$0xff]  ;;  %v9433_v55 = vld [vmem:[#allocation13_spill] sm:$0xff] }
 0x423   :  { %v2574_v4 = vmul.f32 %v9414_v9, %v8329_v59  ;;  %v2598_v11 = vadd.f32 %v8258_v25, %v2559_v58  ;;  %v2629_v27 = vadd.f32 %v8261_v19, %v2560_v43  ;;  %v2945_v46 = vmul.f32 %v9415_v20, %v8280_v33  ;;  %v9421_v43 = vld [vmem:[#allocation222_spill] sm:$0xff]  ;;  %v9425_v13 = vld [vmem:[#allocation235_spill] sm:$0xff]  ;;  %v9426_v20 = vld [vmem:[#allocation233_spill] sm:$0xff] }
 0x424   :  { %v2946_v32 = vmul.f32 %v9416_v31, %v8283_v40  ;;  %v2947_v24 = vmul.f32 %v9417_v61, %v8286_v18  ;;  %v2948_v45 = vmul.f32 %v9418_v47, %v8289_v8  ;;  %v2949_v6 = vmul.f32 %v9419_v14, %v8292_v23  ;;  %v9428_v61 = vld [vmem:[#allocation241_spill] sm:$0xff]  ;;  %v9429_v14 = vld [vmem:[#allocation251_spill] sm:$0xff] }
 0x425   :  { %v2950_v25 = vmul.f32 %v9420_v16, %v8295_v34  ;;  %v2599_v58 = vadd.f32 %v2598_v11, %v2561_v56  ;;  %v2630_v19 = vadd.f32 %v2629_v27, %v2562_v22  ;;  %v2951_v35 = vmul.f32 %v9421_v43, %v8298_v42  ;;  %v9427_v11 = vld [vmem:[#allocation243_spill] sm:$0xff]  ;;  %v9430_v43 = vld [vmem:[#allocation249_spill] sm:$0xff] }
 0x426   :  { %v2952_v63 = vmul.f32 %v9422_v57, %v8301_v62  ;;  %v2953_v44 = vmul.f32 %v9423_v10, %v8304_v21  ;;  %v2954_v49 = vmul.f32 %v9424_v39, %v8307_v54  ;;  %v2955_v9 = vmul.f32 %v9425_v13, %v8310_v51 }
 0x427   :  { %v2956_v31 = vmul.f32 %v9426_v20, %v8313_v12  ;;  %v2600_v56 = vadd.f32 %v2599_v58, %v2563_v26  ;;  %v2631_v22 = vadd.f32 %v2630_v19, %v2564_v5  ;;  %v2957_v27 = vmul.f32 %v9427_v11, %v8316_v53  ;;  %v9431_v26 = vld [vmem:[#allocation20_spill] sm:$0xff] }
 0x428   :  { %v2958_v47 = vmul.f32 %v9428_v61, %v8319_v37  ;;  %v2959_v16 = vmul.f32 %v9429_v14, %v8326_v36  ;;  %v2960_v57 = vmul.f32 %v9430_v43, %v8329_v59  ;;  %v2984_v10 = vadd.f32 %v8266_v28, %v2945_v46  ;;  %v9432_v58 = vld [vmem:[#allocation204_spill] sm:$0xff] }
 0x429   :  { %v3015_v39 = vadd.f32 %v8269_v3, %v2946_v32  ;;  %v2601_v13 = vadd.f32 %v2600_v56, %v2565_v50  ;;  %v2632_v20 = vadd.f32 %v2631_v22, %v2566_v30  ;;  %v3331_v5 = vmul.f32 %v9431_v26, %v8280_v33  ;;  %v9435_v3 = vld [vmem:[#allocation218_spill] sm:$0xff]  ;;  %v9436_v30 = vld [vmem:[#allocation216_spill] sm:$0xff] }
 0x42a   :  { %v3332_v19 = vmul.f32 %v9432_v58, %v8283_v40  ;;  %v2985_v11 = vadd.f32 %v2984_v10, %v2947_v24  ;;  %v3333_v14 = vmul.f32 %v9433_v55, %v8286_v18  ;;  %v3334_v43 = vmul.f32 %v9434_v48, %v8289_v8  ;;  %v9437_v22 = vld [vmem:[#allocation224_spill] sm:$0xff]  ;;  %v9439_v48 = vld [vmem:[#allocation231_spill] sm:$0xff]  ;;  %v9441_v58 = vld [vmem:[#allocation238_spill] sm:$0xff] }
 0x42b   :  { %v3016_v61 = vadd.f32 %v3015_v39, %v2948_v45  ;;  %v2602_v17 = vadd.f32 %v2601_v13, %v2567_v29  ;;  %v2633_v28 = vadd.f32 %v2632_v20, %v2568_v0  ;;  %v3335_v50 = vmul.f32 %v9435_v3, %v8292_v23  ;;  %v9438_v45 = vld [vmem:[#allocation32_spill] sm:$0xff]  ;;  %v9440_v0 = vld [vmem:[#allocation230_spill] sm:$0xff] }
 0x42c   :  { %v3336_v46 = vmul.f32 %v9436_v30, %v8295_v34  ;;  %v2986_v32 = vadd.f32 %v2985_v11, %v2949_v6  ;;  %v3337_v24 = vmul.f32 %v9437_v22, %v8298_v42  ;;  %v3338_v10 = vmul.f32 %v9438_v45, %v8301_v62  ;;  %v9443_v30 = vld [vmem:[#allocation246_spill] sm:$0xff] }
 0x42d   :  { %v3017_v56 = vadd.f32 %v3016_v61, %v2950_v25  ;;  %v2603_v55 = vadd.f32 %v2602_v17, %v2569_v15  ;;  %v2634_v39 = vadd.f32 %v2633_v28, %v2570_v52  ;;  %v3339_v29 = vmul.f32 %v9439_v48, %v8304_v21  ;;  %v9442_v25 = vld [vmem:[#allocation236_spill] sm:$0xff]  ;;  %v9445_v45 = vld [vmem:[#allocation254_spill] sm:$0xff] }
 0x42e   :  { %v3340_v13 = vmul.f32 %v9440_v0, %v8307_v54  ;;  %v2987_v20 = vadd.f32 %v2986_v32, %v2951_v35  ;;  %v3341_v6 = vmul.f32 %v9441_v58, %v8310_v51  ;;  %v3342_v11 = vmul.f32 %v9442_v25, %v8313_v12  ;;  %v9444_v15 = vld [vmem:[#allocation244_spill] sm:$0xff]  ;;  %v9450_v25 = vld [vmem:[#allocation266_spill] sm:$0xff] }
 0x42f   :  { %v3018_v26 = vadd.f32 %v3017_v56, %v2952_v63  ;;  %v2604_v61 = vadd.f32 %v2603_v55, %v2571_v2  ;;  %v2635_v3 = vadd.f32 %v2634_v39, %v2572_v38  ;;  %v3343_v17 = vmul.f32 %v9443_v30, %v8316_v53  ;;  %v9446_v63 = vld [vmem:[#allocation252_spill] sm:$0xff]  ;;  %v9447_v39 = vld [vmem:[#allocation206_spill] sm:$0xff] }
 0x430   :  { %v3344_v52 = vmul.f32 %v9444_v15, %v8319_v37  ;;  %v2988_v28 = vadd.f32 %v2987_v20, %v2953_v44  ;;  %v3345_v35 = vmul.f32 %v9445_v45, %v8326_v36  ;;  %v3346_v32 = vmul.f32 %v9446_v63, %v8329_v59  ;;  %v9448_v44 = vld [vmem:[#allocation205_spill] sm:$0xff]  ;;  %v9449_v20 = vld [vmem:[#allocation42_spill] sm:$0xff]  ;;  %v9457_v63 = vld [vmem:[#allocation232_spill] sm:$0xff] }
 0x431   :  { %v3019_v22 = vadd.f32 %v3018_v26, %v2954_v49  ;;  %v2605_v56 = vadd.f32 %v2604_v61, %v2573_v7  ;;  %v2636_v48 = vadd.f32 %v2635_v3, %v2574_v4  ;;  %v3370_v0 = vadd.f32 %v8275_v41, %v3331_v5  ;;  %v9451_v41 = vld [vmem:[#allocation31_spill] sm:$0xff]  ;;  %v9454_v61 = vld [vmem:[#allocation217_spill] sm:$0xff] }
 0x432   :  { %v3401_v2 = vadd.f32 %v8277_v60, %v3332_v19  ;;  %v2989_v38 = vadd.f32 %v2988_v28, %v2955_v9  ;;  %v3717_v58 = vmul.f32 %v9447_v39, %v8280_v33  ;;  %v3718_v49 = vmul.f32 %v9448_v44, %v8283_v40  ;;  %v9452_v60 = vld [vmem:[#allocation211_spill] sm:$0xff]  ;;  %v9466_v44 = vld [vmem:[#allocation253_spill] sm:$0xff] }
 0x433   :  { %v3020_v55 = vadd.f32 %v3019_v22, %v2956_v31  ;;  %v2639_v26 = vmul.f32 %v9449_v20, %v2605_v56  ;;  %v2640_v30 = vmul.f32 %v9450_v25, %v2636_v48  ;;  %v3371_v15 = vadd.f32 %v3370_v0, %v3333_v14  ;;  %v9453_v40 = vld [vmem:[#allocation219_spill] sm:$0xff] }
 0x434   :  { %v3402_v45 = vadd.f32 %v3401_v2, %v3334_v43  ;;  %v2990_v7 = vadd.f32 %v2989_v38, %v2957_v27  ;;  %v3719_v5 = vmul.f32 %v9451_v41, %v8286_v18  ;;  %v3720_v9 = vmul.f32 %v9452_v60, %v8289_v8  ;;  %v9455_v27 = vld [vmem:[#allocation225_spill] sm:$0xff]  ;;  %v9456_v18 = vld [vmem:[#allocation223_spill] sm:$0xff] }
 0x435   :  { %v3021_v4 = vadd.f32 %v3020_v55, %v2958_v47  ;;  %2641 = vst [vmem:[#allocation2] sm:$0xff] %v2639_v26  ;;  %2642 = vst [vmem:[#allocation2 + $0x8] sm:$0xff] %v2640_v30  ;;  %v3372_v33 = vadd.f32 %v3371_v15, %v3335_v50  ;;  %v3721_v19 = vmul.f32 %v9453_v40, %v8292_v23  ;;  %v9459_v23 = vld [vmem:[#allocation40_spill] sm:$0xff]  ;;  %v9460_v0 = vld [vmem:[#allocation267_spill] sm:$0xff] }
 0x436   :  { %v3403_v31 = vadd.f32 %v3402_v45, %v3336_v46  ;;  %v3722_v3 = vmul.f32 %v9454_v61, %v8295_v34  ;;  %v2991_v14 = vadd.f32 %v2990_v7, %v2959_v16  ;;  %v3723_v47 = vmul.f32 %v9455_v27, %v8298_v42  ;;  %v9458_v46 = vld [vmem:[#allocation22_spill] sm:$0xff]  ;;  %v9461_v16 = vld [vmem:[#allocation239_spill] sm:$0xff]  ;;  %v9462_v42 = vld [vmem:[#allocation237_spill] sm:$0xff] }
 0x437   :  { %v3022_v43 = vadd.f32 %v3021_v4, %v2960_v57  ;;  %v3724_v28 = vmul.f32 %v9456_v18, %v8301_v62  ;;  %v3373_v22 = vadd.f32 %v3372_v33, %v3337_v24  ;;  %v3725_v50 = vmul.f32 %v9457_v63, %v8304_v21  ;;  %v9463_v24 = vld [vmem:[#allocation247_spill] sm:$0xff]  ;;  %v9464_v21 = vld [vmem:[#allocation245_spill] sm:$0xff]  ;;  %v9473_v61 = vld [vmem:[#allocation60_spill] sm:$0xff] }
 0x438   :  { %v3404_v8 = vadd.f32 %v3403_v31, %v3338_v10  ;;  %v3726_v56 = vmul.f32 %v9458_v46, %v8307_v54  ;;  %v3025_v48 = vmul.f32 %v9459_v23, %v2991_v14  ;;  %v3727_v57 = vmul.f32 %v9461_v16, %v8310_v51  ;;  %v9465_v54 = vld [vmem:[#allocation256_spill] sm:$0xff]  ;;  %v9467_v51 = vld [vmem:[#allocation77_spill] sm:$0xff]  ;;  %v9471_v31 = vld [vmem:[#allocation258_spill] sm:$0xff] }
 0x439   :  { %v3026_v34 = vmul.f32 %v9460_v0, %v3022_v43  ;;  %v3728_v2 = vmul.f32 %v9462_v42, %v8313_v12  ;;  %v3374_v38 = vadd.f32 %v3373_v22, %v3339_v29  ;;  %v3729_v10 = vmul.f32 %v9463_v24, %v8316_v53  ;;  %v9468_v12 = vld [vmem:[#allocation57_spill] sm:$0xff] }
 0x43a   :  { %v3405_v62 = vadd.f32 %v3404_v8, %v3340_v13  ;;  %v3730_v55 = vmul.f32 %v9464_v21, %v8319_v37  ;;  %3027 = vst [vmem:[#allocation2 + $0x10] sm:$0xff] %v3025_v48  ;;  %v3731_v39 = vmul.f32 %v9465_v54, %v8326_v36  ;;  %v3732_v20 = vmul.f32 %v9466_v44, %v8329_v59  ;;  %v9469_v29 = vld [vmem:[#allocation73_spill] sm:$0xff]  ;;  %v9470_v36 = vld [vmem:[#allocation255_spill] sm:$0xff] }
 0x43b   :  { %3028 = vst [vmem:[#allocation2 + $0x18] sm:$0xff] %v3026_v34  ;;  %v3755_v26 = vadd.f32 %v9467_v51, %v8243_v1  ;;  %v3786_v13 = vadd.f32 %v9469_v29, %v9468_v12  ;;  %v3375_v25 = vadd.f32 %v3374_v38, %v3341_v6  ;;  %4878 = vrcp.f32 %v9470_v36  ;;  %v9472_v1 = vld [vmem:[#allocation36_spill] sm:$0xff] }
 0x43c   :  { %v3406_v30 = vadd.f32 %v3405_v62, %v3342_v11  ;;  %4880 = vrcp.f32 %v9471_v31 }
 0x43d   :  { %v3756_v53 = vadd.f32 %v3755_v26, %v3717_v58  ;;  %v3787_v15 = vadd.f32 %v3786_v13, %v3718_v49  ;;  %v3376_v45 = vadd.f32 %v3375_v25, %v3343_v17 }
 0x43e   :  { %v3407_v37 = vadd.f32 %v3406_v30, %v3344_v52 }
 0x43f   :  { %v3757_v7 = vadd.f32 %v3756_v53, %v3719_v5  ;;  %v3788_v4 = vadd.f32 %v3787_v15, %v3720_v9  ;;  %v3377_v41 = vadd.f32 %v3376_v45, %v3345_v35 }
 0x440   :  { %v3408_v60 = vadd.f32 %v3407_v37, %v3346_v32 }
 0x441   :  { %v3758_v33 = vadd.f32 %v3757_v7, %v3721_v19  ;;  %v3789_v59 = vadd.f32 %v3788_v4, %v3722_v3  ;;  %v3411_v40 = vmul.f32 %v9472_v1, %v3377_v41 }
 0x442   :  { %v3412_v14 = vmul.f32 %v9473_v61, %v3408_v60 }
 0x443   :  { %v3759_v6 = vadd.f32 %v3758_v33, %v3723_v47  ;;  %v3790_v11 = vadd.f32 %v3789_v59, %v3724_v28  ;;  %3413 = vst [vmem:[#allocation2 + $0x20] sm:$0xff] %v3411_v40 }
 0x444   :  { %3414 = vst [vmem:[#allocation2 + $0x28] sm:$0xff] %v3412_v14 }
 0x445   :  { %v3760_v17 = vadd.f32 %v3759_v6, %v3725_v50  ;;  %v3791_v52 = vadd.f32 %v3790_v11, %v3726_v56  ;;  %v4879_v5 = vpop.eup %4878 }
 0x446   :  { %v4881_v3 = vpop.eup %4880 }
 0x447   :  { %v3761_v58 = vadd.f32 %v3760_v17, %v3727_v57  ;;  %v3792_v49 = vadd.f32 %v3791_v52, %v3728_v2 }
 0x449   :  { %v3762_v35 = vadd.f32 %v3761_v58, %v3729_v10  ;;  %v3793_v32 = vadd.f32 %v3792_v49, %v3730_v55 }
 0x44b   :  { %v3763_v9 = vadd.f32 %v3762_v35, %v3731_v39  ;;  %v3794_v19 = vadd.f32 %v3793_v32, %v3732_v20 }
 0x44d   :  { %v3797_v43 = vmul.f32 %v4881_v3, %v3763_v9  ;;  %v3798_v27 = vmul.f32 %v4879_v5, %v3794_v19 }
 0x44f   :  { %3799 = vst [vmem:[#allocation2 + $0x30] sm:$0xff] %v3797_v43  ;;  %3800 = vst [vmem:[#allocation2 + $0x38] sm:$0xff] %v3798_v27 }
 0x450   :  { %4893 = shalt.err (!%p4890_p4)
}
 0x451   :  { %s4894_s11 = scalar_lea.hbm %s8492_s3, 1024 }
 0x452   :  { %p4895_p5 = scmp.ne.s32.totalorder %s8492_s3, %s4894_s11  ;;  %p4898_p6 = scmp.lt.u32.totalorder %s4894_s11, %s8492_s3 }
 0x454   :  { %p4900_p7 = pnand %p4898_p6, %p4895_p5 }
 0x456   :  { %4903 = shalt.err (!%p4900_p7)
}
 0x457   :  { %s4909_s16 = smov 256   ;;  %s4910_s17 = smov 16  }
 0x458   :  { %3812 = dma.vmem_to_hbm [thread:$0]  %s3807_s7, 1024, %s8492_s3, [#allocation3], %s4909_s16, %s4909_s16, %s4910_s17  }
 0x459   :  { %4904 = dma.done.wait [#allocation3], 1024  }
 0x45a   :  { %4905 = vsyncadd [#allocation3], 4294966272 }
 0x45b   :  { %3816 = vsyncpa [#allocation3], 1 }

</bundles_post_ra>
